<compile_context>
chip_gen: v5e
topology: v5e:2x2
jax: 0.10.0
libtpu: 0.0.40
codegen_flags: <defaults>
</compile_context>

<pallas_src>
import functools

import jax
import jax.numpy as jnp
from jax.experimental import pallas as pl
from jax.experimental.pallas import tpu as pltpu


_VMEM_LIMIT = 48 * 1024 * 1024


def _round_up(x, m):
    return (x + m - 1) // m * m


def _cdiv(a, b):
    return -(-a // b)


# ----------------------------------------------------------------------------
# Pallas kernel 1: M-tiled matmul + bias + optional residual + optional act
# (used for the 1x1 convs; bf16 operands, f32 accumulate/epilogue).
# ----------------------------------------------------------------------------
def _matmul_kernel(x_ref, w_ref, b_ref, *rest, act, has_residual):
    if has_residual:
        r_ref, o_ref = rest
    else:
        (o_ref,) = rest
    acc = jnp.dot(x_ref[...], w_ref[...], preferred_element_type=jnp.float32)
    acc = acc + b_ref[...]
    if has_residual:
        acc = acc + r_ref[...].astype(jnp.float32)
    if act == "hardswish":
        acc = acc * jnp.clip(acc + 3.0, 0.0, 6.0) * (1.0 / 6.0)
    elif act == "relu":
        acc = jnp.maximum(acc, 0.0)
    o_ref[...] = acc.astype(o_ref.dtype)


def _pick_tm(M, max_tm=2048):
    """Full-M block when small; otherwise >=2 blocks (v7x megacore) of <=max_tm."""
    if M <= 512:
        return M
    half = _round_up(_cdiv(M, 2), 8)
    return min(max_tm, half)


def matmul_bias_act(x, w, b, act=None, residual=None, out_dtype=jnp.bfloat16,
                    max_tm=2048):
    """out = act(x @ w + b [+ residual]).  x:(M,K) bf16, w:(K,N) bf16,
    b:(1,N) f32, residual:(M,N) bf16.  No padding: ragged last M block is
    masked by Pallas (rows independent, OOB rows never read back)."""
    M, K = x.shape
    K2, N = w.shape
    assert K == K2
    tm = _pick_tm(M, max_tm)
    grid = _cdiv(M, tm)

    has_residual = residual is not None
    in_specs = [
        pl.BlockSpec((tm, K), lambda i: (i, 0)),
        pl.BlockSpec((K, N), lambda i: (0, 0)),
        pl.BlockSpec((1, N), lambda i: (0, 0)),
    ]
    args = [x, w, b]
    if has_residual:
        in_specs.append(pl.BlockSpec((tm, N), lambda i: (i, 0)))
        args.append(residual)

    return pl.pallas_call(
        functools.partial(_matmul_kernel, act=act, has_residual=has_residual),
        out_shape=jax.ShapeDtypeStruct((M, N), out_dtype),
        grid_spec=pltpu.PrefetchScalarGridSpec(
            num_scalar_prefetch=0,
            grid=(grid,),
            in_specs=in_specs,
            out_specs=pl.BlockSpec((tm, N), lambda i: (i, 0)),
        ),
        compiler_params=pltpu.CompilerParams(
            dimension_semantics=("parallel",),
            vmem_limit_bytes=_VMEM_LIMIT),
    )(*args)


# ----------------------------------------------------------------------------
# Pallas kernel 2: direct (im2col-free) KxK conv.
# The whole padded image (as parity planes) sits in VMEM for this batch
# element; per output row we accumulate the kh*kw per-tap matmuls in f32 and
# fuse bias + activation.  Stride is pre-folded into the parity planes, so
# every slice below is contiguous.
# ----------------------------------------------------------------------------
def _direct_conv_kernel(x_ref, w_ref, b_ref, o_ref, *, taps, th, wo, act):
    """x_ref: (P, Hq, Wq, Cin) bf16   all parity planes of one padded image
       w_ref: (ntaps, Cin, Cout) bf16 per-tap weight slices
       b_ref: (1, Cout) f32
       o_ref: (1, th, Wo, Cout)"""
    ro0 = pl.program_id(1) * th
    cout = w_ref.shape[-1]
    bias = b_ref[...]                                    # (1, Cout) f32
    w_taps = [w_ref[t] for t in range(len(taps))]        # (Cin, Cout) bf16

    def row_body(r, carry):
        acc = jnp.zeros((wo, cout), jnp.float32)
        for (p, dh, dw), wt in zip(taps, w_taps):
            xs = x_ref[p, ro0 + r + dh, pl.ds(dw, wo), :]      # (wo, Cin) bf16
            acc = acc + jnp.dot(xs, wt, preferred_element_type=jnp.float32)
        acc = acc + bias
        if act == "hardswish":
            acc = acc * jnp.clip(acc + 3.0, 0.0, 6.0) * (1.0 / 6.0)
        elif act == "relu":
            acc = jnp.maximum(acc, 0.0)
        o_ref[0, r] = acc.astype(o_ref.dtype)
        return carry

    jax.lax.fori_loop(0, th, row_body, 0)


def conv_kxk_direct(x, p, stride=1, act=None, out_dtype=jnp.bfloat16,
                    max_tile_elems=32 * 1024):
    """x: (B,H,W,Cin) NHWC (cast to bf16).  Returns (B,Ho,Wo,Cout)."""
    kh, kw, pad = p["kh"], p["kw"], p["pad"]
    B, H, W, cin = x.shape
    cout = p["w"].shape[-1]
    Ho = (H + 2 * pad - kh) // stride + 1
    Wo = (W + 2 * pad - kw) // stride + 1

    xp = x.astype(jnp.bfloat16)
    if pad:
        xp = jnp.pad(xp, ((0, 0), (pad, pad), (pad, pad), (0, 0)))

    if stride == 1:
        planes = xp[:, None]                               # (B, 1, Hp, Wp, C)
        taps = [(0, i, j) for i in range(kh) for j in range(kw)]
    elif stride == 2:
        # Parity (space-to-depth) split: a stride-2 conv becomes a stride-1
        # conv over 4 parity planes -> all in-kernel slices are contiguous.
        if xp.shape[1] % 2:
            xp = jnp.pad(xp, ((0, 0), (0, 1), (0, 0), (0, 0)))
        if xp.shape[2] % 2:
            xp = jnp.pad(xp, ((0, 0), (0, 0), (0, 1), (0, 0)))
        planes = jnp.stack([xp[:, 0::2, 0::2], xp[:, 0::2, 1::2],
                            xp[:, 1::2, 0::2], xp[:, 1::2, 1::2]], axis=1)
        taps = [((i % 2) * 2 + (j % 2), i // 2, j // 2)
                for i in range(kh) for j in range(kw)]
    else:
        raise NotImplementedError(f"stride {stride}")

    P, Hq, Wq = planes.shape[1], planes.shape[2], planes.shape[3]
    max_dh = max(t[1] for t in taps)

    # Output-row tile: whole image per grid step when small, else cap the
    # per-step output footprint.
    th = Ho if Ho * Wo <= max_tile_elems else max(1, max_tile_elems // Wo)
    n_rt = _cdiv(Ho, th)

    # Guarantee in-bounds in-kernel reads for a (possibly ragged) last tile.
    need_h = n_rt * th + max_dh
    if Hq < need_h:
        planes = jnp.pad(planes,
                         ((0, 0), (0, 0), (0, need_h - Hq), (0, 0), (0, 0)))
        Hq = need_h

    planes = planes.reshape(B * P, Hq, Wq, cin)

    kernel = functools.partial(_direct_conv_kernel, taps=taps, th=th, wo=Wo,
                               act=act)
    return pl.pallas_call(
        kernel,
        out_shape=jax.ShapeDtypeStruct((B, Ho, Wo, cout), out_dtype),
        grid_spec=pltpu.PrefetchScalarGridSpec(
            num_scalar_prefetch=0,
            grid=(B, n_rt),
            in_specs=[
                pl.BlockSpec((P, Hq, Wq, cin), lambda b, r: (b, 0, 0, 0)),
                pl.BlockSpec((kh * kw, cin, cout), lambda b, r: (0, 0, 0)),
                pl.BlockSpec((1, cout), lambda b, r: (0, 0)),
            ],
            out_specs=pl.BlockSpec((1, th, Wo, cout),
                                   lambda b, r: (b, r, 0, 0)),
        ),
        compiler_params=pltpu.CompilerParams(
            dimension_semantics=("parallel", "arbitrary"),
            vmem_limit_bytes=_VMEM_LIMIT),
    )(planes, p["w"], p["b"])


# ----------------------------------------------------------------------------
# Conv dispatcher + nearest-neighbour resizes
# ----------------------------------------------------------------------------
def conv1x1(x, p, act=None, residual=None, out_dtype=jnp.bfloat16):
    B, H, W, cin = x.shape
    cout = p["w"].shape[-1]
    x2 = x.reshape(B * H * W, cin).astype(jnp.bfloat16)
    r2 = None
    if residual is not None:
        r2 = residual.reshape(B * H * W, cout).astype(jnp.bfloat16)
    out = matmul_bias_act(x2, p["w"][0], p["b"], act=act, residual=r2,
                          out_dtype=out_dtype)
    return out.reshape(B, H, W, cout)


def conv2d(x, p, stride=1, act=None, residual=None, out_dtype=jnp.bfloat16):
    if p["kh"] == 1 and p["kw"] == 1 and stride == 1:
        return conv1x1(x, p, act=act, residual=residual, out_dtype=out_dtype)
    assert residual is None
    return conv_kxk_direct(x, p, stride=stride, act=act, out_dtype=out_dtype)


def nearest_resize_nhwc(x, size):
    # matches F.interpolate(x, size, mode="nearest"): src = floor(dst*in/out)
    H, W = x.shape[1], x.shape[2]
    Ho, Wo = int(size[0]), int(size[1])
    if (H, W) == (Ho, Wo):
        return x
    hi = (jnp.arange(Ho) * H) // Ho
    wi = (jnp.arange(Wo) * W) // Wo
    return x[:, hi[:, None], wi[None, :], :]          # single gather, keeps bf16


def nearest_resize_mask(m, size):
    # equivalent to F.interpolate(m[None].float(), size).to(bool)[0]
    H, W = m.shape[-2:]
    Ho, Wo = int(size[0]), int(size[1])
    if (H, W) == (Ho, Wo):
        return m
    hi = (jnp.arange(Ho) * H) // Ho
    wi = (jnp.arange(Wo) * W) // Wo
    return m[:, hi[:, None], wi[None, :]]


# ----------------------------------------------------------------------------
# Parameters: w stored once as (kh*kw, Cin, Cout) bf16, b as (1, Cout) f32.
# ----------------------------------------------------------------------------
def _init_conv(key, kh, kw, cin, cout, pad):
    k1, k2 = jax.random.split(key)
    fan_in = kh * kw * cin
    w = jax.random.normal(k1, (kh, kw, cin, cout), jnp.float32) / jnp.sqrt(
        float(fan_in))
    b = 0.01 * jax.random.normal(k2, (cout,), jnp.float32)
    return {
        "w": w.reshape(kh * kw, cin, cout).astype(jnp.bfloat16),
        "b": b.reshape(1, cout).astype(jnp.float32),
        "kh": kh, "kw": kw, "pad": pad,
    }


def init_params(key, num_channels):
    keys = jax.random.split(key, 10)
    p = {}
    # Backbone stages (MobileNetV3-large features[:7] split into 4 bodies):
    # out channels 16 / 24 / 40 / 40, total strides 2 / 4 / 8 / 8.
    p["body1"] = _init_conv(keys[0], 3, 3, 3, 16, pad=1)
    p["body2"] = _init_conv(keys[1], 3, 3, 16, 24, pad=1)
    p["body3"] = _init_conv(keys[2], 3, 3, 24, 40, pad=1)
    p["body4"] = _init_conv(keys[3], 3, 3, 40, 40, pad=1)
    # FeatsFusion(24, 40, 40, hidden=num_channels, out=num_channels, k=3)
    p["P5_1"] = _init_conv(keys[4], 1, 1, 40, num_channels, pad=0)
    p["P5_2"] = _init_conv(keys[5], 3, 3, num_channels, num_channels, pad=1)
    p["P4_1"] = _init_conv(keys[6], 1, 1, 40, num_channels, pad=0)
    p["P4_2"] = _init_conv(keys[7], 3, 3, num_channels, num_channels, pad=1)
    p["P3_1"] = _init_conv(keys[8], 1, 1, 24, num_channels, pad=0)
    p["P3_2"] = _init_conv(keys[9], 3, 3, num_channels, num_channels, pad=1)
    return p


# ----------------------------------------------------------------------------
# Forward pass (return_interm_layers=True path)
# ----------------------------------------------------------------------------
def backbone_mobilenetv3_forward(params, x_nchw, mask):
    x = jnp.transpose(x_nchw, (0, 2, 3, 1)).astype(jnp.bfloat16)   # -> NHWC

    feats = []
    xs = x
    for name, stride in (("body1", 2), ("body2", 2), ("body3", 2),
                         ("body4", 1)):
        xs = conv2d(xs, params[name], stride=stride, act="hardswish")
        feats.append(xs)

    C3, C4, C5 = feats[1], feats[2], feats[3]

    # FPN (FeatsFusion).  Residual adds are fused into the epilogue of the
    # 1x1-conv matmul kernels; intermediates stay bf16.
    P5_x = conv2d(C5, params["P5_1"])
    P5_up = nearest_resize_nhwc(P5_x, C4.shape[1:3])
    # P5_2(P5_x) is dead w.r.t. this module's outputs ('4x'/'8x' only) -> skipped.

    P4_x = conv2d(C4, params["P4_1"], residual=P5_up)    # fused P5_up + P4_1
    P4_up = nearest_resize_nhwc(P4_x, C3.shape[1:3])
    P4_out = conv2d(P4_x, params["P4_2"], out_dtype=jnp.float32)

    P3_x = conv2d(C3, params["P3_1"], residual=P4_up)    # fused P3_1 + P4_up
    P3_out = conv2d(P3_x, params["P3_2"], out_dtype=jnp.float32)

    # back to NCHW to match PyTorch outputs
    features_fpn_4x = jnp.transpose(P3_out, (0, 3, 1, 2))
    features_fpn_8x = jnp.transpose(P4_out, (0, 3, 1, 2))

    mask_4x = nearest_resize_mask(mask, features_fpn_4x.shape[-2:])
    mask_8x = nearest_resize_mask(mask, features_fpn_8x.shape[-2:])

    return {
        "4x": (features_fpn_4x, mask_4x),
        "8x": (features_fpn_8x, mask_8x),
    }


if __name__ == "__main__":
    key = jax.random.PRNGKey(0)
    kx, km, kp = jax.random.split(key, 3)

    B, H, W = 2, 32, 32
    num_channels = 32

    x = jax.random.normal(kx, (B, 3, H, W), jnp.float32)        # NCHW input
    mask = jax.random.uniform(km, (B, H, W)) > 0.5              # bool mask

    params = init_params(kp, num_channels)

    fwd = jax.jit(lambda xx, mm: backbone_mobilenetv3_forward(params, xx, mm))
    out = fwd(x, mask)
    jax.block_until_ready(out)

    # sanity: '4x' is stride-4 (H/4), '8x' is stride-8 (H/8)
    assert out["4x"][0].shape == (B, num_channels, H // 4, W // 4)
    assert out["8x"][0].shape == (B, num_channels, H // 8, W // 8)
    assert out["4x"][0].dtype == jnp.float32
    assert out["8x"][0].dtype == jnp.float32
    assert out["4x"][1].shape == (B, H // 4, W // 4)
    assert out["8x"][1].shape == (B, H // 8, W // 8)
    assert out["4x"][1].dtype == jnp.bool_

    print("KERNEL_OK")
</pallas_src>

<mosaic_0001>
module attributes {stable_mosaic.version = 11 : i64} {
  func.func @_direct_conv_kernel(%arg0: i32, %arg1: i32, %arg2: memref<4x17x17x3xbf16, #tpu.memory_space<vmem>>, %arg3: memref<9x3x16xbf16, #tpu.memory_space<vmem>>, %arg4: memref<1x16xf32, #tpu.memory_space<vmem>>, %arg5: memref<1x16x16x16xbf16, #tpu.memory_space<vmem>>) attributes {dimension_semantics = [#tpu.dimension_semantics<parallel>, #tpu.dimension_semantics<arbitrary>], iteration_bounds = array<i64: 2, 1>, scalar_prefetch = 0 : i64, scratch_operands = 0 : i64, tpu.core_type = #tpu.core_type<tc>, window_params = [{transform_indices = @transform_0, window_bounds = array<i64: 4, 17, 17, 3>}, {pipeline_mode = #tpu.pipeline_mode<synchronous>, transform_indices = @transform_1, window_bounds = array<i64: 9, 3, 16>}, {pipeline_mode = #tpu.pipeline_mode<synchronous>, transform_indices = @transform_2, window_bounds = array<i64: 1, 16>}, {transform_indices = @transform_3, window_bounds = array<i64: 1, 16, 16, 16>}]} {
    %c16_i32 = arith.constant 16 : i32
    %0 = arith.muli %arg1, %c16_i32 : i32
    %c0 = arith.constant 0 : index
    %c0_0 = arith.constant 0 : index
    %1 = vector.load %arg4[%c0, %c0_0] : memref<1x16xf32, #tpu.memory_space<vmem>>, vector<1x16xf32>
    %c0_1 = arith.constant 0 : index
    %c0_2 = arith.constant 0 : index
    %c0_3 = arith.constant 0 : index
    %2 = vector.load %arg3[%c0_1, %c0_2, %c0_3] : memref<9x3x16xbf16, #tpu.memory_space<vmem>>, vector<1x3x16xbf16>
    %3 = vector.shape_cast %2 : vector<1x3x16xbf16> to vector<3x16xbf16>
    %c1 = arith.constant 1 : index
    %c0_4 = arith.constant 0 : index
    %c0_5 = arith.constant 0 : index
    %4 = vector.load %arg3[%c1, %c0_4, %c0_5] : memref<9x3x16xbf16, #tpu.memory_space<vmem>>, vector<1x3x16xbf16>
    %5 = vector.shape_cast %4 : vector<1x3x16xbf16> to vector<3x16xbf16>
    %c2 = arith.constant 2 : index
    %c0_6 = arith.constant 0 : index
    %c0_7 = arith.constant 0 : index
    %6 = vector.load %arg3[%c2, %c0_6, %c0_7] : memref<9x3x16xbf16, #tpu.memory_space<vmem>>, vector<1x3x16xbf16>
    %7 = vector.shape_cast %6 : vector<1x3x16xbf16> to vector<3x16xbf16>
    %c3 = arith.constant 3 : index
    %c0_8 = arith.constant 0 : index
    %c0_9 = arith.constant 0 : index
    %8 = vector.load %arg3[%c3, %c0_8, %c0_9] : memref<9x3x16xbf16, #tpu.memory_space<vmem>>, vector<1x3x16xbf16>
    %9 = vector.shape_cast %8 : vector<1x3x16xbf16> to vector<3x16xbf16>
    %c4 = arith.constant 4 : index
    %c0_10 = arith.constant 0 : index
    %c0_11 = arith.constant 0 : index
    %10 = vector.load %arg3[%c4, %c0_10, %c0_11] : memref<9x3x16xbf16, #tpu.memory_space<vmem>>, vector<1x3x16xbf16>
    %11 = vector.shape_cast %10 : vector<1x3x16xbf16> to vector<3x16xbf16>
    %c5 = arith.constant 5 : index
    %c0_12 = arith.constant 0 : index
    %c0_13 = arith.constant 0 : index
    %12 = vector.load %arg3[%c5, %c0_12, %c0_13] : memref<9x3x16xbf16, #tpu.memory_space<vmem>>, vector<1x3x16xbf16>
    %13 = vector.shape_cast %12 : vector<1x3x16xbf16> to vector<3x16xbf16>
    %c6 = arith.constant 6 : index
    %c0_14 = arith.constant 0 : index
    %c0_15 = arith.constant 0 : index
    %14 = vector.load %arg3[%c6, %c0_14, %c0_15] : memref<9x3x16xbf16, #tpu.memory_space<vmem>>, vector<1x3x16xbf16>
    %15 = vector.shape_cast %14 : vector<1x3x16xbf16> to vector<3x16xbf16>
    %c7 = arith.constant 7 : index
    %c0_16 = arith.constant 0 : index
    %c0_17 = arith.constant 0 : index
    %16 = vector.load %arg3[%c7, %c0_16, %c0_17] : memref<9x3x16xbf16, #tpu.memory_space<vmem>>, vector<1x3x16xbf16>
    %17 = vector.shape_cast %16 : vector<1x3x16xbf16> to vector<3x16xbf16>
    %c8 = arith.constant 8 : index
    %c0_18 = arith.constant 0 : index
    %c0_19 = arith.constant 0 : index
    %18 = vector.load %arg3[%c8, %c0_18, %c0_19] : memref<9x3x16xbf16, #tpu.memory_space<vmem>>, vector<1x3x16xbf16>
    %19 = vector.shape_cast %18 : vector<1x3x16xbf16> to vector<3x16xbf16>
    %c0_i32 = arith.constant 0 : i32
    %c16_i32_20 = arith.constant 16 : i32
    %20 = arith.addi %c0_i32, %c16_i32_20 : i32
    %c1_i32 = arith.constant 1 : i32
    scf.for %arg6 = %c0_i32 to %20 step %c1_i32  : i32 {
      %cst = arith.constant 0.000000e+00 : f32
      %21 = vector.broadcast %cst : f32 to vector<16x16xf32>
      %22 = arith.addi %0, %arg6 : i32
      %c0_i32_22 = arith.constant 0 : i32
      %23 = arith.addi %22, %c0_i32_22 : i32
      %c0_23 = arith.constant 0 : index
      %24 = arith.index_cast %23 : i32 to index
      %c0_24 = arith.constant 0 : index
      %c0_25 = arith.constant 0 : index
      %25 = vector.load %arg2[%c0_23, %24, %c0_24, %c0_25] : memref<4x17x17x3xbf16, #tpu.memory_space<vmem>>, vector<1x1x16x3xbf16>
      %26 = vector.shape_cast %25 : vector<1x1x16x3xbf16> to vector<16x3xbf16>
      %cst_26 = arith.constant dense<0.000000e+00> : vector<16x16xf32>
      %27 = tpu.matmul %26, %3, %cst_26 {dimension_numbers = #tpu.dot_dimension_numbers<[1], [0], [0], [1], [0, 0, 1, 1], [], []>} : vector<16x3xbf16>, vector<3x16xbf16>, vector<16x16xf32> -> vector<16x16xf32>
      %28 = arith.addf %21, %27 : vector<16x16xf32>
      %29 = arith.addi %0, %arg6 : i32
      %c0_i32_27 = arith.constant 0 : i32
      %30 = arith.addi %29, %c0_i32_27 : i32
      %c1_28 = arith.constant 1 : index
      %31 = arith.index_cast %30 : i32 to index
      %c0_29 = arith.constant 0 : index
      %c0_30 = arith.constant 0 : index
      %32 = vector.load %arg2[%c1_28, %31, %c0_29, %c0_30] : memref<4x17x17x3xbf16, #tpu.memory_space<vmem>>, vector<1x1x16x3xbf16>
      %33 = vector.shape_cast %32 : vector<1x1x16x3xbf16> to vector<16x3xbf16>
      %cst_31 = arith.constant dense<0.000000e+00> : vector<16x16xf32>
      %34 = tpu.matmul %33, %5, %cst_31 {dimension_numbers = #tpu.dot_dimension_numbers<[1], [0], [0], [1], [0, 0, 1, 1], [], []>} : vector<16x3xbf16>, vector<3x16xbf16>, vector<16x16xf32> -> vector<16x16xf32>
      %35 = arith.addf %28, %34 : vector<16x16xf32>
      %36 = arith.addi %0, %arg6 : i32
      %c0_i32_32 = arith.constant 0 : i32
      %37 = arith.addi %36, %c0_i32_32 : i32
      %c0_33 = arith.constant 0 : index
      %38 = arith.index_cast %37 : i32 to index
      %c1_34 = arith.constant 1 : index
      %c0_35 = arith.constant 0 : index
      %39 = vector.load %arg2[%c0_33, %38, %c1_34, %c0_35] : memref<4x17x17x3xbf16, #tpu.memory_space<vmem>>, vector<1x1x16x3xbf16>
      %40 = vector.shape_cast %39 : vector<1x1x16x3xbf16> to vector<16x3xbf16>
      %cst_36 = arith.constant dense<0.000000e+00> : vector<16x16xf32>
      %41 = tpu.matmul %40, %7, %cst_36 {dimension_numbers = #tpu.dot_dimension_numbers<[1], [0], [0], [1], [0, 0, 1, 1], [], []>} : vector<16x3xbf16>, vector<3x16xbf16>, vector<16x16xf32> -> vector<16x16xf32>
      %42 = arith.addf %35, %41 : vector<16x16xf32>
      %43 = arith.addi %0, %arg6 : i32
      %c0_i32_37 = arith.constant 0 : i32
      %44 = arith.addi %43, %c0_i32_37 : i32
      %c2_38 = arith.constant 2 : index
      %45 = arith.index_cast %44 : i32 to index
      %c0_39 = arith.constant 0 : index
      %c0_40 = arith.constant 0 : index
      %46 = vector.load %arg2[%c2_38, %45, %c0_39, %c0_40] : memref<4x17x17x3xbf16, #tpu.memory_space<vmem>>, vector<1x1x16x3xbf16>
      %47 = vector.shape_cast %46 : vector<1x1x16x3xbf16> to vector<16x3xbf16>
      %cst_41 = arith.constant dense<0.000000e+00> : vector<16x16xf32>
      %48 = tpu.matmul %47, %9, %cst_41 {dimension_numbers = #tpu.dot_dimension_numbers<[1], [0], [0], [1], [0, 0, 1, 1], [], []>} : vector<16x3xbf16>, vector<3x16xbf16>, vector<16x16xf32> -> vector<16x16xf32>
      %49 = arith.addf %42, %48 : vector<16x16xf32>
      %50 = arith.addi %0, %arg6 : i32
      %c0_i32_42 = arith.constant 0 : i32
      %51 = arith.addi %50, %c0_i32_42 : i32
      %c3_43 = arith.constant 3 : index
      %52 = arith.index_cast %51 : i32 to index
      %c0_44 = arith.constant 0 : index
      %c0_45 = arith.constant 0 : index
      %53 = vector.load %arg2[%c3_43, %52, %c0_44, %c0_45] : memref<4x17x17x3xbf16, #tpu.memory_space<vmem>>, vector<1x1x16x3xbf16>
      %54 = vector.shape_cast %53 : vector<1x1x16x3xbf16> to vector<16x3xbf16>
      %cst_46 = arith.constant dense<0.000000e+00> : vector<16x16xf32>
      %55 = tpu.matmul %54, %11, %cst_46 {dimension_numbers = #tpu.dot_dimension_numbers<[1], [0], [0], [1], [0, 0, 1, 1], [], []>} : vector<16x3xbf16>, vector<3x16xbf16>, vector<16x16xf32> -> vector<16x16xf32>
      %56 = arith.addf %49, %55 : vector<16x16xf32>
      %57 = arith.addi %0, %arg6 : i32
      %c0_i32_47 = arith.constant 0 : i32
      %58 = arith.addi %57, %c0_i32_47 : i32
      %c2_48 = arith.constant 2 : index
      %59 = arith.index_cast %58 : i32 to index
      %c1_49 = arith.constant 1 : index
      %c0_50 = arith.constant 0 : index
      %60 = vector.load %arg2[%c2_48, %59, %c1_49, %c0_50] : memref<4x17x17x3xbf16, #tpu.memory_space<vmem>>, vector<1x1x16x3xbf16>
      %61 = vector.shape_cast %60 : vector<1x1x16x3xbf16> to vector<16x3xbf16>
      %cst_51 = arith.constant dense<0.000000e+00> : vector<16x16xf32>
      %62 = tpu.matmul %61, %13, %cst_51 {dimension_numbers = #tpu.dot_dimension_numbers<[1], [0], [0], [1], [0, 0, 1, 1], [], []>} : vector<16x3xbf16>, vector<3x16xbf16>, vector<16x16xf32> -> vector<16x16xf32>
      %63 = arith.addf %56, %62 : vector<16x16xf32>
      %64 = arith.addi %0, %arg6 : i32
      %c1_i32_52 = arith.constant 1 : i32
      %65 = arith.addi %64, %c1_i32_52 : i32
      %c0_53 = arith.constant 0 : index
      %66 = arith.index_cast %65 : i32 to index
      %c0_54 = arith.constant 0 : index
      %c0_55 = arith.constant 0 : index
      %67 = vector.load %arg2[%c0_53, %66, %c0_54, %c0_55] : memref<4x17x17x3xbf16, #tpu.memory_space<vmem>>, vector<1x1x16x3xbf16>
      %68 = vector.shape_cast %67 : vector<1x1x16x3xbf16> to vector<16x3xbf16>
      %cst_56 = arith.constant dense<0.000000e+00> : vector<16x16xf32>
      %69 = tpu.matmul %68, %15, %cst_56 {dimension_numbers = #tpu.dot_dimension_numbers<[1], [0], [0], [1], [0, 0, 1, 1], [], []>} : vector<16x3xbf16>, vector<3x16xbf16>, vector<16x16xf32> -> vector<16x16xf32>
      %70 = arith.addf %63, %69 : vector<16x16xf32>
      %71 = arith.addi %0, %arg6 : i32
      %c1_i32_57 = arith.constant 1 : i32
      %72 = arith.addi %71, %c1_i32_57 : i32
      %c1_58 = arith.constant 1 : index
      %73 = arith.index_cast %72 : i32 to index
      %c0_59 = arith.constant 0 : index
      %c0_60 = arith.constant 0 : index
      %74 = vector.load %arg2[%c1_58, %73, %c0_59, %c0_60] : memref<4x17x17x3xbf16, #tpu.memory_space<vmem>>, vector<1x1x16x3xbf16>
      %75 = vector.shape_cast %74 : vector<1x1x16x3xbf16> to vector<16x3xbf16>
      %cst_61 = arith.constant dense<0.000000e+00> : vector<16x16xf32>
      %76 = tpu.matmul %75, %17, %cst_61 {dimension_numbers = #tpu.dot_dimension_numbers<[1], [0], [0], [1], [0, 0, 1, 1], [], []>} : vector<16x3xbf16>, vector<3x16xbf16>, vector<16x16xf32> -> vector<16x16xf32>
      %77 = arith.addf %70, %76 : vector<16x16xf32>
      %78 = arith.addi %0, %arg6 : i32
      %c1_i32_62 = arith.constant 1 : i32
      %79 = arith.addi %78, %c1_i32_62 : i32
      %c0_63 = arith.constant 0 : index
      %80 = arith.index_cast %79 : i32 to index
      %c1_64 = arith.constant 1 : index
      %c0_65 = arith.constant 0 : index
      %81 = vector.load %arg2[%c0_63, %80, %c1_64, %c0_65] : memref<4x17x17x3xbf16, #tpu.memory_space<vmem>>, vector<1x1x16x3xbf16>
      %82 = vector.shape_cast %81 : vector<1x1x16x3xbf16> to vector<16x3xbf16>
      %cst_66 = arith.constant dense<0.000000e+00> : vector<16x16xf32>
      %83 = tpu.matmul %82, %19, %cst_66 {dimension_numbers = #tpu.dot_dimension_numbers<[1], [0], [0], [1], [0, 0, 1, 1], [], []>} : vector<16x3xbf16>, vector<3x16xbf16>, vector<16x16xf32> -> vector<16x16xf32>
      %84 = arith.addf %77, %83 : vector<16x16xf32>
      %85 = vector.broadcast %1 : vector<1x16xf32> to vector<16x16xf32>
      %86 = arith.addf %84, %85 : vector<16x16xf32>
      %cst_67 = arith.constant 3.000000e+00 : f32
      %87 = vector.broadcast %cst_67 : f32 to vector<16x16xf32>
      %88 = arith.addf %86, %87 : vector<16x16xf32>
      %cst_68 = arith.constant 0.000000e+00 : f32
      %cst_69 = arith.constant 6.000000e+00 : f32
      %89 = vector.broadcast %cst_68 : f32 to vector<16x16xf32>
      %90 = arith.maximumf %89, %88 : vector<16x16xf32>
      %91 = vector.broadcast %cst_69 : f32 to vector<16x16xf32>
      %92 = arith.minimumf %91, %90 : vector<16x16xf32>
      %93 = arith.mulf %86, %92 : vector<16x16xf32>
      %cst_70 = arith.constant 0.166666672 : f32
      %94 = vector.broadcast %cst_70 : f32 to vector<16x16xf32>
      %95 = arith.mulf %93, %94 : vector<16x16xf32>
      %96 = arith.truncf %95 : vector<16x16xf32> to vector<16x16xbf16>
      %c0_71 = arith.constant 0 : index
      %97 = arith.index_cast %arg6 : i32 to index
      %c0_72 = arith.constant 0 : index
      %c0_73 = arith.constant 0 : index
      %98 = vector.load %arg5[%c0_71, %97, %c0_72, %c0_73] : memref<1x16x16x16xbf16, #tpu.memory_space<vmem>>, vector<1x1x16x16xbf16>
      %99 = vector.shape_cast %98 : vector<1x1x16x16xbf16> to vector<16x16xbf16>
      %100 = vector.shape_cast %96 : vector<16x16xbf16> to vector<1x1x16x16xbf16>
      tpu.vector_store %arg5[%c0_71, %97, %c0_72, %c0_73], %100 {strides = array<i32>} : memref<1x16x16x16xbf16, #tpu.memory_space<vmem>>, vector<1x1x16x16xbf16>,
    }
    %c16_i32_21 = arith.constant 16 : i32
    return
  }
  func.func @transform_0(%arg0: i32, %arg1: i32) -> (i32, i32, i32, i32) {
    %c0_i32 = arith.constant 0 : i32
    %c0_i32_0 = arith.constant 0 : i32
    %c0_i32_1 = arith.constant 0 : i32
    %c0_i32_2 = arith.constant 0 : i32
    return %arg0, %c0_i32, %c0_i32_0, %c0_i32_1 : i32, i32, i32, i32
  }
  func.func @transform_1(%arg0: i32, %arg1: i32) -> (i32, i32, i32) {
    %c0_i32 = arith.constant 0 : i32
    %c0_i32_0 = arith.constant 0 : i32
    %c0_i32_1 = arith.constant 0 : i32
    %c0_i32_2 = arith.constant 0 : i32
    return %c0_i32, %c0_i32_0, %c0_i32_1 : i32, i32, i32
  }
  func.func @transform_2(%arg0: i32, %arg1: i32) -> (i32, i32) {
    %c0_i32 = arith.constant 0 : i32
    %c0_i32_0 = arith.constant 0 : i32
    %c0_i32_1 = arith.constant 0 : i32
    return %c0_i32, %c0_i32_0 : i32, i32
  }
  func.func @transform_3(%arg0: i32, %arg1: i32) -> (i32, i32, i32, i32) {
    %c0_i32 = arith.constant 0 : i32
    %c0_i32_0 = arith.constant 0 : i32
    %c0_i32_1 = arith.constant 0 : i32
    return %arg0, %arg1, %c0_i32, %c0_i32_0 : i32, i32, i32, i32
  }
}

module attributes {stable_mosaic.version = 11 : i64} {
  func.func @_direct_conv_kernel(%arg0: i32, %arg1: i32, %arg2: memref<4x9x9x16xbf16, #tpu.memory_space<vmem>>, %arg3: memref<9x16x24xbf16, #tpu.memory_space<vmem>>, %arg4: memref<1x24xf32, #tpu.memory_space<vmem>>, %arg5: memref<1x8x8x24xbf16, #tpu.memory_space<vmem>>) attributes {dimension_semantics = [#tpu.dimension_semantics<parallel>, #tpu.dimension_semantics<arbitrary>], iteration_bounds = array<i64: 2, 1>, scalar_prefetch = 0 : i64, scratch_operands = 0 : i64, tpu.core_type = #tpu.core_type<tc>, window_params = [{transform_indices = @transform_0, window_bounds = array<i64: 4, 9, 9, 16>}, {pipeline_mode = #tpu.pipeline_mode<synchronous>, transform_indices = @transform_1, window_bounds = array<i64: 9, 16, 24>}, {pipeline_mode = #tpu.pipeline_mode<synchronous>, transform_indices = @transform_2, window_bounds = array<i64: 1, 24>}, {transform_indices = @transform_3, window_bounds = array<i64: 1, 8, 8, 24>}]} {
    %c8_i32 = arith.constant 8 : i32
    %0 = arith.muli %arg1, %c8_i32 : i32
    %c0 = arith.constant 0 : index
    %c0_0 = arith.constant 0 : index
    %1 = vector.load %arg4[%c0, %c0_0] : memref<1x24xf32, #tpu.memory_space<vmem>>, vector<1x24xf32>
    %c0_1 = arith.constant 0 : index
    %c0_2 = arith.constant 0 : index
    %c0_3 = arith.constant 0 : index
    %2 = vector.load %arg3[%c0_1, %c0_2, %c0_3] : memref<9x16x24xbf16, #tpu.memory_space<vmem>>, vector<1x16x24xbf16>
    %3 = vector.shape_cast %2 : vector<1x16x24xbf16> to vector<16x24xbf16>
    %c1 = arith.constant 1 : index
    %c0_4 = arith.constant 0 : index
    %c0_5 = arith.constant 0 : index
    %4 = vector.load %arg3[%c1, %c0_4, %c0_5] : memref<9x16x24xbf16, #tpu.memory_space<vmem>>, vector<1x16x24xbf16>
    %5 = vector.shape_cast %4 : vector<1x16x24xbf16> to vector<16x24xbf16>
    %c2 = arith.constant 2 : index
    %c0_6 = arith.constant 0 : index
    %c0_7 = arith.constant 0 : index
    %6 = vector.load %arg3[%c2, %c0_6, %c0_7] : memref<9x16x24xbf16, #tpu.memory_space<vmem>>, vector<1x16x24xbf16>
    %7 = vector.shape_cast %6 : vector<1x16x24xbf16> to vector<16x24xbf16>
    %c3 = arith.constant 3 : index
    %c0_8 = arith.constant 0 : index
    %c0_9 = arith.constant 0 : index
    %8 = vector.load %arg3[%c3, %c0_8, %c0_9] : memref<9x16x24xbf16, #tpu.memory_space<vmem>>, vector<1x16x24xbf16>
    %9 = vector.shape_cast %8 : vector<1x16x24xbf16> to vector<16x24xbf16>
    %c4 = arith.constant 4 : index
    %c0_10 = arith.constant 0 : index
    %c0_11 = arith.constant 0 : index
    %10 = vector.load %arg3[%c4, %c0_10, %c0_11] : memref<9x16x24xbf16, #tpu.memory_space<vmem>>, vector<1x16x24xbf16>
    %11 = vector.shape_cast %10 : vector<1x16x24xbf16> to vector<16x24xbf16>
    %c5 = arith.constant 5 : index
    %c0_12 = arith.constant 0 : index
    %c0_13 = arith.constant 0 : index
    %12 = vector.load %arg3[%c5, %c0_12, %c0_13] : memref<9x16x24xbf16, #tpu.memory_space<vmem>>, vector<1x16x24xbf16>
    %13 = vector.shape_cast %12 : vector<1x16x24xbf16> to vector<16x24xbf16>
    %c6 = arith.constant 6 : index
    %c0_14 = arith.constant 0 : index
    %c0_15 = arith.constant 0 : index
    %14 = vector.load %arg3[%c6, %c0_14, %c0_15] : memref<9x16x24xbf16, #tpu.memory_space<vmem>>, vector<1x16x24xbf16>
    %15 = vector.shape_cast %14 : vector<1x16x24xbf16> to vector<16x24xbf16>
    %c7 = arith.constant 7 : index
    %c0_16 = arith.constant 0 : index
    %c0_17 = arith.constant 0 : index
    %16 = vector.load %arg3[%c7, %c0_16, %c0_17] : memref<9x16x24xbf16, #tpu.memory_space<vmem>>, vector<1x16x24xbf16>
    %17 = vector.shape_cast %16 : vector<1x16x24xbf16> to vector<16x24xbf16>
    %c8 = arith.constant 8 : index
    %c0_18 = arith.constant 0 : index
    %c0_19 = arith.constant 0 : index
    %18 = vector.load %arg3[%c8, %c0_18, %c0_19] : memref<9x16x24xbf16, #tpu.memory_space<vmem>>, vector<1x16x24xbf16>
    %19 = vector.shape_cast %18 : vector<1x16x24xbf16> to vector<16x24xbf16>
    %c0_i32 = arith.constant 0 : i32
    %c8_i32_20 = arith.constant 8 : i32
    %20 = arith.addi %c0_i32, %c8_i32_20 : i32
    %c1_i32 = arith.constant 1 : i32
    scf.for %arg6 = %c0_i32 to %20 step %c1_i32  : i32 {
      %cst = arith.constant 0.000000e+00 : f32
      %21 = vector.broadcast %cst : f32 to vector<8x24xf32>
      %22 = arith.addi %0, %arg6 : i32
      %c0_i32_22 = arith.constant 0 : i32
      %23 = arith.addi %22, %c0_i32_22 : i32
      %c0_23 = arith.constant 0 : index
      %24 = arith.index_cast %23 : i32 to index
      %c0_24 = arith.constant 0 : index
      %c0_25 = arith.constant 0 : index
      %25 = vector.load %arg2[%c0_23, %24, %c0_24, %c0_25] : memref<4x9x9x16xbf16, #tpu.memory_space<vmem>>, vector<1x1x8x16xbf16>
      %26 = vector.shape_cast %25 : vector<1x1x8x16xbf16> to vector<8x16xbf16>
      %cst_26 = arith.constant dense<0.000000e+00> : vector<8x24xf32>
      %27 = tpu.matmul %26, %3, %cst_26 {dimension_numbers = #tpu.dot_dimension_numbers<[1], [0], [0], [1], [0, 0, 1, 1], [], []>} : vector<8x16xbf16>, vector<16x24xbf16>, vector<8x24xf32> -> vector<8x24xf32>
      %28 = arith.addf %21, %27 : vector<8x24xf32>
      %29 = arith.addi %0, %arg6 : i32
      %c0_i32_27 = arith.constant 0 : i32
      %30 = arith.addi %29, %c0_i32_27 : i32
      %c1_28 = arith.constant 1 : index
      %31 = arith.index_cast %30 : i32 to index
      %c0_29 = arith.constant 0 : index
      %c0_30 = arith.constant 0 : index
      %32 = vector.load %arg2[%c1_28, %31, %c0_29, %c0_30] : memref<4x9x9x16xbf16, #tpu.memory_space<vmem>>, vector<1x1x8x16xbf16>
      %33 = vector.shape_cast %32 : vector<1x1x8x16xbf16> to vector<8x16xbf16>
      %cst_31 = arith.constant dense<0.000000e+00> : vector<8x24xf32>
      %34 = tpu.matmul %33, %5, %cst_31 {dimension_numbers = #tpu.dot_dimension_numbers<[1], [0], [0], [1], [0, 0, 1, 1], [], []>} : vector<8x16xbf16>, vector<16x24xbf16>, vector<8x24xf32> -> vector<8x24xf32>
      %35 = arith.addf %28, %34 : vector<8x24xf32>
      %36 = arith.addi %0, %arg6 : i32
      %c0_i32_32 = arith.constant 0 : i32
      %37 = arith.addi %36, %c0_i32_32 : i32
      %c0_33 = arith.constant 0 : index
      %38 = arith.index_cast %37 : i32 to index
      %c1_34 = arith.constant 1 : index
      %c0_35 = arith.constant 0 : index
      %39 = vector.load %arg2[%c0_33, %38, %c1_34, %c0_35] : memref<4x9x9x16xbf16, #tpu.memory_space<vmem>>, vector<1x1x8x16xbf16>
      %40 = vector.shape_cast %39 : vector<1x1x8x16xbf16> to vector<8x16xbf16>
      %cst_36 = arith.constant dense<0.000000e+00> : vector<8x24xf32>
      %41 = tpu.matmul %40, %7, %cst_36 {dimension_numbers = #tpu.dot_dimension_numbers<[1], [0], [0], [1], [0, 0, 1, 1], [], []>} : vector<8x16xbf16>, vector<16x24xbf16>, vector<8x24xf32> -> vector<8x24xf32>
      %42 = arith.addf %35, %41 : vector<8x24xf32>
      %43 = arith.addi %0, %arg6 : i32
      %c0_i32_37 = arith.constant 0 : i32
      %44 = arith.addi %43, %c0_i32_37 : i32
      %c2_38 = arith.constant 2 : index
      %45 = arith.index_cast %44 : i32 to index
      %c0_39 = arith.constant 0 : index
      %c0_40 = arith.constant 0 : index
      %46 = vector.load %arg2[%c2_38, %45, %c0_39, %c0_40] : memref<4x9x9x16xbf16, #tpu.memory_space<vmem>>, vector<1x1x8x16xbf16>
      %47 = vector.shape_cast %46 : vector<1x1x8x16xbf16> to vector<8x16xbf16>
      %cst_41 = arith.constant dense<0.000000e+00> : vector<8x24xf32>
      %48 = tpu.matmul %47, %9, %cst_41 {dimension_numbers = #tpu.dot_dimension_numbers<[1], [0], [0], [1], [0, 0, 1, 1], [], []>} : vector<8x16xbf16>, vector<16x24xbf16>, vector<8x24xf32> -> vector<8x24xf32>
      %49 = arith.addf %42, %48 : vector<8x24xf32>
      %50 = arith.addi %0, %arg6 : i32
      %c0_i32_42 = arith.constant 0 : i32
      %51 = arith.addi %50, %c0_i32_42 : i32
      %c3_43 = arith.constant 3 : index
      %52 = arith.index_cast %51 : i32 to index
      %c0_44 = arith.constant 0 : index
      %c0_45 = arith.constant 0 : index
      %53 = vector.load %arg2[%c3_43, %52, %c0_44, %c0_45] : memref<4x9x9x16xbf16, #tpu.memory_space<vmem>>, vector<1x1x8x16xbf16>
      %54 = vector.shape_cast %53 : vector<1x1x8x16xbf16> to vector<8x16xbf16>
      %cst_46 = arith.constant dense<0.000000e+00> : vector<8x24xf32>
      %55 = tpu.matmul %54, %11, %cst_46 {dimension_numbers = #tpu.dot_dimension_numbers<[1], [0], [0], [1], [0, 0, 1, 1], [], []>} : vector<8x16xbf16>, vector<16x24xbf16>, vector<8x24xf32> -> vector<8x24xf32>
      %56 = arith.addf %49, %55 : vector<8x24xf32>
      %57 = arith.addi %0, %arg6 : i32
      %c0_i32_47 = arith.constant 0 : i32
      %58 = arith.addi %57, %c0_i32_47 : i32
      %c2_48 = arith.constant 2 : index
      %59 = arith.index_cast %58 : i32 to index
      %c1_49 = arith.constant 1 : index
      %c0_50 = arith.constant 0 : index
      %60 = vector.load %arg2[%c2_48, %59, %c1_49, %c0_50] : memref<4x9x9x16xbf16, #tpu.memory_space<vmem>>, vector<1x1x8x16xbf16>
      %61 = vector.shape_cast %60 : vector<1x1x8x16xbf16> to vector<8x16xbf16>
      %cst_51 = arith.constant dense<0.000000e+00> : vector<8x24xf32>
      %62 = tpu.matmul %61, %13, %cst_51 {dimension_numbers = #tpu.dot_dimension_numbers<[1], [0], [0], [1], [0, 0, 1, 1], [], []>} : vector<8x16xbf16>, vector<16x24xbf16>, vector<8x24xf32> -> vector<8x24xf32>
      %63 = arith.addf %56, %62 : vector<8x24xf32>
      %64 = arith.addi %0, %arg6 : i32
      %c1_i32_52 = arith.constant 1 : i32
      %65 = arith.addi %64, %c1_i32_52 : i32
      %c0_53 = arith.constant 0 : index
      %66 = arith.index_cast %65 : i32 to index
      %c0_54 = arith.constant 0 : index
      %c0_55 = arith.constant 0 : index
      %67 = vector.load %arg2[%c0_53, %66, %c0_54, %c0_55] : memref<4x9x9x16xbf16, #tpu.memory_space<vmem>>, vector<1x1x8x16xbf16>
      %68 = vector.shape_cast %67 : vector<1x1x8x16xbf16> to vector<8x16xbf16>
      %cst_56 = arith.constant dense<0.000000e+00> : vector<8x24xf32>
      %69 = tpu.matmul %68, %15, %cst_56 {dimension_numbers = #tpu.dot_dimension_numbers<[1], [0], [0], [1], [0, 0, 1, 1], [], []>} : vector<8x16xbf16>, vector<16x24xbf16>, vector<8x24xf32> -> vector<8x24xf32>
      %70 = arith.addf %63, %69 : vector<8x24xf32>
      %71 = arith.addi %0, %arg6 : i32
      %c1_i32_57 = arith.constant 1 : i32
      %72 = arith.addi %71, %c1_i32_57 : i32
      %c1_58 = arith.constant 1 : index
      %73 = arith.index_cast %72 : i32 to index
      %c0_59 = arith.constant 0 : index
      %c0_60 = arith.constant 0 : index
      %74 = vector.load %arg2[%c1_58, %73, %c0_59, %c0_60] : memref<4x9x9x16xbf16, #tpu.memory_space<vmem>>, vector<1x1x8x16xbf16>
      %75 = vector.shape_cast %74 : vector<1x1x8x16xbf16> to vector<8x16xbf16>
      %cst_61 = arith.constant dense<0.000000e+00> : vector<8x24xf32>
      %76 = tpu.matmul %75, %17, %cst_61 {dimension_numbers = #tpu.dot_dimension_numbers<[1], [0], [0], [1], [0, 0, 1, 1], [], []>} : vector<8x16xbf16>, vector<16x24xbf16>, vector<8x24xf32> -> vector<8x24xf32>
      %77 = arith.addf %70, %76 : vector<8x24xf32>
      %78 = arith.addi %0, %arg6 : i32
      %c1_i32_62 = arith.constant 1 : i32
      %79 = arith.addi %78, %c1_i32_62 : i32
      %c0_63 = arith.constant 0 : index
      %80 = arith.index_cast %79 : i32 to index
      %c1_64 = arith.constant 1 : index
      %c0_65 = arith.constant 0 : index
      %81 = vector.load %arg2[%c0_63, %80, %c1_64, %c0_65] : memref<4x9x9x16xbf16, #tpu.memory_space<vmem>>, vector<1x1x8x16xbf16>
      %82 = vector.shape_cast %81 : vector<1x1x8x16xbf16> to vector<8x16xbf16>
      %cst_66 = arith.constant dense<0.000000e+00> : vector<8x24xf32>
      %83 = tpu.matmul %82, %19, %cst_66 {dimension_numbers = #tpu.dot_dimension_numbers<[1], [0], [0], [1], [0, 0, 1, 1], [], []>} : vector<8x16xbf16>, vector<16x24xbf16>, vector<8x24xf32> -> vector<8x24xf32>
      %84 = arith.addf %77, %83 : vector<8x24xf32>
      %85 = vector.broadcast %1 : vector<1x24xf32> to vector<8x24xf32>
      %86 = arith.addf %84, %85 : vector<8x24xf32>
      %cst_67 = arith.constant 3.000000e+00 : f32
      %87 = vector.broadcast %cst_67 : f32 to vector<8x24xf32>
      %88 = arith.addf %86, %87 : vector<8x24xf32>
      %cst_68 = arith.constant 0.000000e+00 : f32
      %cst_69 = arith.constant 6.000000e+00 : f32
      %89 = vector.broadcast %cst_68 : f32 to vector<8x24xf32>
      %90 = arith.maximumf %89, %88 : vector<8x24xf32>
      %91 = vector.broadcast %cst_69 : f32 to vector<8x24xf32>
      %92 = arith.minimumf %91, %90 : vector<8x24xf32>
      %93 = arith.mulf %86, %92 : vector<8x24xf32>
      %cst_70 = arith.constant 0.166666672 : f32
      %94 = vector.broadcast %cst_70 : f32 to vector<8x24xf32>
      %95 = arith.mulf %93, %94 : vector<8x24xf32>
      %96 = arith.truncf %95 : vector<8x24xf32> to vector<8x24xbf16>
      %c0_71 = arith.constant 0 : index
      %97 = arith.index_cast %arg6 : i32 to index
      %c0_72 = arith.constant 0 : index
      %c0_73 = arith.constant 0 : index
      %98 = vector.load %arg5[%c0_71, %97, %c0_72, %c0_73] : memref<1x8x8x24xbf16, #tpu.memory_space<vmem>>, vector<1x1x8x24xbf16>
      %99 = vector.shape_cast %98 : vector<1x1x8x24xbf16> to vector<8x24xbf16>
      %100 = vector.shape_cast %96 : vector<8x24xbf16> to vector<1x1x8x24xbf16>
      tpu.vector_store %arg5[%c0_71, %97, %c0_72, %c0_73], %100 {strides = array<i32>} : memref<1x8x8x24xbf16, #tpu.memory_space<vmem>>, vector<1x1x8x24xbf16>,
    }
    %c8_i32_21 = arith.constant 8 : i32
    return
  }
  func.func @transform_0(%arg0: i32, %arg1: i32) -> (i32, i32, i32, i32) {
    %c0_i32 = arith.constant 0 : i32
    %c0_i32_0 = arith.constant 0 : i32
    %c0_i32_1 = arith.constant 0 : i32
    %c0_i32_2 = arith.constant 0 : i32
    return %arg0, %c0_i32, %c0_i32_0, %c0_i32_1 : i32, i32, i32, i32
  }
  func.func @transform_1(%arg0: i32, %arg1: i32) -> (i32, i32, i32) {
    %c0_i32 = arith.constant 0 : i32
    %c0_i32_0 = arith.constant 0 : i32
    %c0_i32_1 = arith.constant 0 : i32
    %c0_i32_2 = arith.constant 0 : i32
    return %c0_i32, %c0_i32_0, %c0_i32_1 : i32, i32, i32
  }
  func.func @transform_2(%arg0: i32, %arg1: i32) -> (i32, i32) {
    %c0_i32 = arith.constant 0 : i32
    %c0_i32_0 = arith.constant 0 : i32
    %c0_i32_1 = arith.constant 0 : i32
    return %c0_i32, %c0_i32_0 : i32, i32
  }
  func.func @transform_3(%arg0: i32, %arg1: i32) -> (i32, i32, i32, i32) {
    %c0_i32 = arith.constant 0 : i32
    %c0_i32_0 = arith.constant 0 : i32
    %c0_i32_1 = arith.constant 0 : i32
    return %arg0, %arg1, %c0_i32, %c0_i32_0 : i32, i32, i32, i32
  }
}

module attributes {stable_mosaic.version = 11 : i64} {
  func.func @_direct_conv_kernel(%arg0: i32, %arg1: i32, %arg2: memref<4x5x5x24xbf16, #tpu.memory_space<vmem>>, %arg3: memref<9x24x40xbf16, #tpu.memory_space<vmem>>, %arg4: memref<1x40xf32, #tpu.memory_space<vmem>>, %arg5: memref<1x4x4x40xbf16, #tpu.memory_space<vmem>>) attributes {dimension_semantics = [#tpu.dimension_semantics<parallel>, #tpu.dimension_semantics<arbitrary>], iteration_bounds = array<i64: 2, 1>, scalar_prefetch = 0 : i64, scratch_operands = 0 : i64, tpu.core_type = #tpu.core_type<tc>, window_params = [{transform_indices = @transform_0, window_bounds = array<i64: 4, 5, 5, 24>}, {pipeline_mode = #tpu.pipeline_mode<synchronous>, transform_indices = @transform_1, window_bounds = array<i64: 9, 24, 40>}, {pipeline_mode = #tpu.pipeline_mode<synchronous>, transform_indices = @transform_2, window_bounds = array<i64: 1, 40>}, {transform_indices = @transform_3, window_bounds = array<i64: 1, 4, 4, 40>}]} {
    %c4_i32 = arith.constant 4 : i32
    %0 = arith.muli %arg1, %c4_i32 : i32
    %c0 = arith.constant 0 : index
    %c0_0 = arith.constant 0 : index
    %1 = vector.load %arg4[%c0, %c0_0] : memref<1x40xf32, #tpu.memory_space<vmem>>, vector<1x40xf32>
    %c0_1 = arith.constant 0 : index
    %c0_2 = arith.constant 0 : index
    %c0_3 = arith.constant 0 : index
    %2 = vector.load %arg3[%c0_1, %c0_2, %c0_3] : memref<9x24x40xbf16, #tpu.memory_space<vmem>>, vector<1x24x40xbf16>
    %3 = vector.shape_cast %2 : vector<1x24x40xbf16> to vector<24x40xbf16>
    %c1 = arith.constant 1 : index
    %c0_4 = arith.constant 0 : index
    %c0_5 = arith.constant 0 : index
    %4 = vector.load %arg3[%c1, %c0_4, %c0_5] : memref<9x24x40xbf16, #tpu.memory_space<vmem>>, vector<1x24x40xbf16>
    %5 = vector.shape_cast %4 : vector<1x24x40xbf16> to vector<24x40xbf16>
    %c2 = arith.constant 2 : index
    %c0_6 = arith.constant 0 : index
    %c0_7 = arith.constant 0 : index
    %6 = vector.load %arg3[%c2, %c0_6, %c0_7] : memref<9x24x40xbf16, #tpu.memory_space<vmem>>, vector<1x24x40xbf16>
    %7 = vector.shape_cast %6 : vector<1x24x40xbf16> to vector<24x40xbf16>
    %c3 = arith.constant 3 : index
    %c0_8 = arith.constant 0 : index
    %c0_9 = arith.constant 0 : index
    %8 = vector.load %arg3[%c3, %c0_8, %c0_9] : memref<9x24x40xbf16, #tpu.memory_space<vmem>>, vector<1x24x40xbf16>
    %9 = vector.shape_cast %8 : vector<1x24x40xbf16> to vector<24x40xbf16>
    %c4 = arith.constant 4 : index
    %c0_10 = arith.constant 0 : index
    %c0_11 = arith.constant 0 : index
    %10 = vector.load %arg3[%c4, %c0_10, %c0_11] : memref<9x24x40xbf16, #tpu.memory_space<vmem>>, vector<1x24x40xbf16>
    %11 = vector.shape_cast %10 : vector<1x24x40xbf16> to vector<24x40xbf16>
    %c5 = arith.constant 5 : index
    %c0_12 = arith.constant 0 : index
    %c0_13 = arith.constant 0 : index
    %12 = vector.load %arg3[%c5, %c0_12, %c0_13] : memref<9x24x40xbf16, #tpu.memory_space<vmem>>, vector<1x24x40xbf16>
    %13 = vector.shape_cast %12 : vector<1x24x40xbf16> to vector<24x40xbf16>
    %c6 = arith.constant 6 : index
    %c0_14 = arith.constant 0 : index
    %c0_15 = arith.constant 0 : index
    %14 = vector.load %arg3[%c6, %c0_14, %c0_15] : memref<9x24x40xbf16, #tpu.memory_space<vmem>>, vector<1x24x40xbf16>
    %15 = vector.shape_cast %14 : vector<1x24x40xbf16> to vector<24x40xbf16>
    %c7 = arith.constant 7 : index
    %c0_16 = arith.constant 0 : index
    %c0_17 = arith.constant 0 : index
    %16 = vector.load %arg3[%c7, %c0_16, %c0_17] : memref<9x24x40xbf16, #tpu.memory_space<vmem>>, vector<1x24x40xbf16>
    %17 = vector.shape_cast %16 : vector<1x24x40xbf16> to vector<24x40xbf16>
    %c8 = arith.constant 8 : index
    %c0_18 = arith.constant 0 : index
    %c0_19 = arith.constant 0 : index
    %18 = vector.load %arg3[%c8, %c0_18, %c0_19] : memref<9x24x40xbf16, #tpu.memory_space<vmem>>, vector<1x24x40xbf16>
    %19 = vector.shape_cast %18 : vector<1x24x40xbf16> to vector<24x40xbf16>
    %c0_i32 = arith.constant 0 : i32
    %c4_i32_20 = arith.constant 4 : i32
    %20 = arith.addi %c0_i32, %c4_i32_20 : i32
    %c1_i32 = arith.constant 1 : i32
    scf.for %arg6 = %c0_i32 to %20 step %c1_i32  : i32 {
      %cst = arith.constant 0.000000e+00 : f32
      %21 = vector.broadcast %cst : f32 to vector<4x40xf32>
      %22 = arith.addi %0, %arg6 : i32
      %c0_i32_22 = arith.constant 0 : i32
      %23 = arith.addi %22, %c0_i32_22 : i32
      %c0_23 = arith.constant 0 : index
      %24 = arith.index_cast %23 : i32 to index
      %c0_24 = arith.constant 0 : index
      %c0_25 = arith.constant 0 : index
      %25 = vector.load %arg2[%c0_23, %24, %c0_24, %c0_25] : memref<4x5x5x24xbf16, #tpu.memory_space<vmem>>, vector<1x1x4x24xbf16>
      %26 = vector.shape_cast %25 : vector<1x1x4x24xbf16> to vector<4x24xbf16>
      %cst_26 = arith.constant dense<0.000000e+00> : vector<4x40xf32>
      %27 = tpu.matmul %26, %3, %cst_26 {dimension_numbers = #tpu.dot_dimension_numbers<[1], [0], [0], [1], [0, 0, 1, 1], [], []>} : vector<4x24xbf16>, vector<24x40xbf16>, vector<4x40xf32> -> vector<4x40xf32>
      %28 = arith.addf %21, %27 : vector<4x40xf32>
      %29 = arith.addi %0, %arg6 : i32
      %c0_i32_27 = arith.constant 0 : i32
      %30 = arith.addi %29, %c0_i32_27 : i32
      %c1_28 = arith.constant 1 : index
      %31 = arith.index_cast %30 : i32 to index
      %c0_29 = arith.constant 0 : index
      %c0_30 = arith.constant 0 : index
      %32 = vector.load %arg2[%c1_28, %31, %c0_29, %c0_30] : memref<4x5x5x24xbf16, #tpu.memory_space<vmem>>, vector<1x1x4x24xbf16>
      %33 = vector.shape_cast %32 : vector<1x1x4x24xbf16> to vector<4x24xbf16>
      %cst_31 = arith.constant dense<0.000000e+00> : vector<4x40xf32>
      %34 = tpu.matmul %33, %5, %cst_31 {dimension_numbers = #tpu.dot_dimension_numbers<[1], [0], [0], [1], [0, 0, 1, 1], [], []>} : vector<4x24xbf16>, vector<24x40xbf16>, vector<4x40xf32> -> vector<4x40xf32>
      %35 = arith.addf %28, %34 : vector<4x40xf32>
      %36 = arith.addi %0, %arg6 : i32
      %c0_i32_32 = arith.constant 0 : i32
      %37 = arith.addi %36, %c0_i32_32 : i32
      %c0_33 = arith.constant 0 : index
      %38 = arith.index_cast %37 : i32 to index
      %c1_34 = arith.constant 1 : index
      %c0_35 = arith.constant 0 : index
      %39 = vector.load %arg2[%c0_33, %38, %c1_34, %c0_35] : memref<4x5x5x24xbf16, #tpu.memory_space<vmem>>, vector<1x1x4x24xbf16>
      %40 = vector.shape_cast %39 : vector<1x1x4x24xbf16> to vector<4x24xbf16>
      %cst_36 = arith.constant dense<0.000000e+00> : vector<4x40xf32>
      %41 = tpu.matmul %40, %7, %cst_36 {dimension_numbers = #tpu.dot_dimension_numbers<[1], [0], [0], [1], [0, 0, 1, 1], [], []>} : vector<4x24xbf16>, vector<24x40xbf16>, vector<4x40xf32> -> vector<4x40xf32>
      %42 = arith.addf %35, %41 : vector<4x40xf32>
      %43 = arith.addi %0, %arg6 : i32
      %c0_i32_37 = arith.constant 0 : i32
      %44 = arith.addi %43, %c0_i32_37 : i32
      %c2_38 = arith.constant 2 : index
      %45 = arith.index_cast %44 : i32 to index
      %c0_39 = arith.constant 0 : index
      %c0_40 = arith.constant 0 : index
      %46 = vector.load %arg2[%c2_38, %45, %c0_39, %c0_40] : memref<4x5x5x24xbf16, #tpu.memory_space<vmem>>, vector<1x1x4x24xbf16>
      %47 = vector.shape_cast %46 : vector<1x1x4x24xbf16> to vector<4x24xbf16>
      %cst_41 = arith.constant dense<0.000000e+00> : vector<4x40xf32>
      %48 = tpu.matmul %47, %9, %cst_41 {dimension_numbers = #tpu.dot_dimension_numbers<[1], [0], [0], [1], [0, 0, 1, 1], [], []>} : vector<4x24xbf16>, vector<24x40xbf16>, vector<4x40xf32> -> vector<4x40xf32>
      %49 = arith.addf %42, %48 : vector<4x40xf32>
      %50 = arith.addi %0, %arg6 : i32
      %c0_i32_42 = arith.constant 0 : i32
      %51 = arith.addi %50, %c0_i32_42 : i32
      %c3_43 = arith.constant 3 : index
      %52 = arith.index_cast %51 : i32 to index
      %c0_44 = arith.constant 0 : index
      %c0_45 = arith.constant 0 : index
      %53 = vector.load %arg2[%c3_43, %52, %c0_44, %c0_45] : memref<4x5x5x24xbf16, #tpu.memory_space<vmem>>, vector<1x1x4x24xbf16>
      %54 = vector.shape_cast %53 : vector<1x1x4x24xbf16> to vector<4x24xbf16>
      %cst_46 = arith.constant dense<0.000000e+00> : vector<4x40xf32>
      %55 = tpu.matmul %54, %11, %cst_46 {dimension_numbers = #tpu.dot_dimension_numbers<[1], [0], [0], [1], [0, 0, 1, 1], [], []>} : vector<4x24xbf16>, vector<24x40xbf16>, vector<4x40xf32> -> vector<4x40xf32>
      %56 = arith.addf %49, %55 : vector<4x40xf32>
      %57 = arith.addi %0, %arg6 : i32
      %c0_i32_47 = arith.constant 0 : i32
      %58 = arith.addi %57, %c0_i32_47 : i32
      %c2_48 = arith.constant 2 : index
      %59 = arith.index_cast %58 : i32 to index
      %c1_49 = arith.constant 1 : index
      %c0_50 = arith.constant 0 : index
      %60 = vector.load %arg2[%c2_48, %59, %c1_49, %c0_50] : memref<4x5x5x24xbf16, #tpu.memory_space<vmem>>, vector<1x1x4x24xbf16>
      %61 = vector.shape_cast %60 : vector<1x1x4x24xbf16> to vector<4x24xbf16>
      %cst_51 = arith.constant dense<0.000000e+00> : vector<4x40xf32>
      %62 = tpu.matmul %61, %13, %cst_51 {dimension_numbers = #tpu.dot_dimension_numbers<[1], [0], [0], [1], [0, 0, 1, 1], [], []>} : vector<4x24xbf16>, vector<24x40xbf16>, vector<4x40xf32> -> vector<4x40xf32>
      %63 = arith.addf %56, %62 : vector<4x40xf32>
      %64 = arith.addi %0, %arg6 : i32
      %c1_i32_52 = arith.constant 1 : i32
      %65 = arith.addi %64, %c1_i32_52 : i32
      %c0_53 = arith.constant 0 : index
      %66 = arith.index_cast %65 : i32 to index
      %c0_54 = arith.constant 0 : index
      %c0_55 = arith.constant 0 : index
      %67 = vector.load %arg2[%c0_53, %66, %c0_54, %c0_55] : memref<4x5x5x24xbf16, #tpu.memory_space<vmem>>, vector<1x1x4x24xbf16>
      %68 = vector.shape_cast %67 : vector<1x1x4x24xbf16> to vector<4x24xbf16>
      %cst_56 = arith.constant dense<0.000000e+00> : vector<4x40xf32>
      %69 = tpu.matmul %68, %15, %cst_56 {dimension_numbers = #tpu.dot_dimension_numbers<[1], [0], [0], [1], [0, 0, 1, 1], [], []>} : vector<4x24xbf16>, vector<24x40xbf16>, vector<4x40xf32> -> vector<4x40xf32>
      %70 = arith.addf %63, %69 : vector<4x40xf32>
      %71 = arith.addi %0, %arg6 : i32
      %c1_i32_57 = arith.constant 1 : i32
      %72 = arith.addi %71, %c1_i32_57 : i32
      %c1_58 = arith.constant 1 : index
      %73 = arith.index_cast %72 : i32 to index
      %c0_59 = arith.constant 0 : index
      %c0_60 = arith.constant 0 : index
      %74 = vector.load %arg2[%c1_58, %73, %c0_59, %c0_60] : memref<4x5x5x24xbf16, #tpu.memory_space<vmem>>, vector<1x1x4x24xbf16>
      %75 = vector.shape_cast %74 : vector<1x1x4x24xbf16> to vector<4x24xbf16>
      %cst_61 = arith.constant dense<0.000000e+00> : vector<4x40xf32>
      %76 = tpu.matmul %75, %17, %cst_61 {dimension_numbers = #tpu.dot_dimension_numbers<[1], [0], [0], [1], [0, 0, 1, 1], [], []>} : vector<4x24xbf16>, vector<24x40xbf16>, vector<4x40xf32> -> vector<4x40xf32>
      %77 = arith.addf %70, %76 : vector<4x40xf32>
      %78 = arith.addi %0, %arg6 : i32
      %c1_i32_62 = arith.constant 1 : i32
      %79 = arith.addi %78, %c1_i32_62 : i32
      %c0_63 = arith.constant 0 : index
      %80 = arith.index_cast %79 : i32 to index
      %c1_64 = arith.constant 1 : index
      %c0_65 = arith.constant 0 : index
      %81 = vector.load %arg2[%c0_63, %80, %c1_64, %c0_65] : memref<4x5x5x24xbf16, #tpu.memory_space<vmem>>, vector<1x1x4x24xbf16>
      %82 = vector.shape_cast %81 : vector<1x1x4x24xbf16> to vector<4x24xbf16>
      %cst_66 = arith.constant dense<0.000000e+00> : vector<4x40xf32>
      %83 = tpu.matmul %82, %19, %cst_66 {dimension_numbers = #tpu.dot_dimension_numbers<[1], [0], [0], [1], [0, 0, 1, 1], [], []>} : vector<4x24xbf16>, vector<24x40xbf16>, vector<4x40xf32> -> vector<4x40xf32>
      %84 = arith.addf %77, %83 : vector<4x40xf32>
      %85 = vector.broadcast %1 : vector<1x40xf32> to vector<4x40xf32>
      %86 = arith.addf %84, %85 : vector<4x40xf32>
      %cst_67 = arith.constant 3.000000e+00 : f32
      %87 = vector.broadcast %cst_67 : f32 to vector<4x40xf32>
      %88 = arith.addf %86, %87 : vector<4x40xf32>
      %cst_68 = arith.constant 0.000000e+00 : f32
      %cst_69 = arith.constant 6.000000e+00 : f32
      %89 = vector.broadcast %cst_68 : f32 to vector<4x40xf32>
      %90 = arith.maximumf %89, %88 : vector<4x40xf32>
      %91 = vector.broadcast %cst_69 : f32 to vector<4x40xf32>
      %92 = arith.minimumf %91, %90 : vector<4x40xf32>
      %93 = arith.mulf %86, %92 : vector<4x40xf32>
      %cst_70 = arith.constant 0.166666672 : f32
      %94 = vector.broadcast %cst_70 : f32 to vector<4x40xf32>
      %95 = arith.mulf %93, %94 : vector<4x40xf32>
      %96 = arith.truncf %95 : vector<4x40xf32> to vector<4x40xbf16>
      %c0_71 = arith.constant 0 : index
      %97 = arith.index_cast %arg6 : i32 to index
      %c0_72 = arith.constant 0 : index
      %c0_73 = arith.constant 0 : index
      %98 = vector.load %arg5[%c0_71, %97, %c0_72, %c0_73] : memref<1x4x4x40xbf16, #tpu.memory_space<vmem>>, vector<1x1x4x40xbf16>
      %99 = vector.shape_cast %98 : vector<1x1x4x40xbf16> to vector<4x40xbf16>
      %100 = vector.shape_cast %96 : vector<4x40xbf16> to vector<1x1x4x40xbf16>
      tpu.vector_store %arg5[%c0_71, %97, %c0_72, %c0_73], %100 {strides = array<i32>} : memref<1x4x4x40xbf16, #tpu.memory_space<vmem>>, vector<1x1x4x40xbf16>,
    }
    %c4_i32_21 = arith.constant 4 : i32
    return
  }
  func.func @transform_0(%arg0: i32, %arg1: i32) -> (i32, i32, i32, i32) {
    %c0_i32 = arith.constant 0 : i32
    %c0_i32_0 = arith.constant 0 : i32
    %c0_i32_1 = arith.constant 0 : i32
    %c0_i32_2 = arith.constant 0 : i32
    return %arg0, %c0_i32, %c0_i32_0, %c0_i32_1 : i32, i32, i32, i32
  }
  func.func @transform_1(%arg0: i32, %arg1: i32) -> (i32, i32, i32) {
    %c0_i32 = arith.constant 0 : i32
    %c0_i32_0 = arith.constant 0 : i32
    %c0_i32_1 = arith.constant 0 : i32
    %c0_i32_2 = arith.constant 0 : i32
    return %c0_i32, %c0_i32_0, %c0_i32_1 : i32, i32, i32
  }
  func.func @transform_2(%arg0: i32, %arg1: i32) -> (i32, i32) {
    %c0_i32 = arith.constant 0 : i32
    %c0_i32_0 = arith.constant 0 : i32
    %c0_i32_1 = arith.constant 0 : i32
    return %c0_i32, %c0_i32_0 : i32, i32
  }
  func.func @transform_3(%arg0: i32, %arg1: i32) -> (i32, i32, i32, i32) {
    %c0_i32 = arith.constant 0 : i32
    %c0_i32_0 = arith.constant 0 : i32
    %c0_i32_1 = arith.constant 0 : i32
    return %arg0, %arg1, %c0_i32, %c0_i32_0 : i32, i32, i32, i32
  }
}

module attributes {stable_mosaic.version = 11 : i64} {
  func.func @_direct_conv_kernel(%arg0: i32, %arg1: i32, %arg2: memref<1x6x6x40xbf16, #tpu.memory_space<vmem>>, %arg3: memref<9x40x40xbf16, #tpu.memory_space<vmem>>, %arg4: memref<1x40xf32, #tpu.memory_space<vmem>>, %arg5: memref<1x4x4x40xbf16, #tpu.memory_space<vmem>>) attributes {dimension_semantics = [#tpu.dimension_semantics<parallel>, #tpu.dimension_semantics<arbitrary>], iteration_bounds = array<i64: 2, 1>, scalar_prefetch = 0 : i64, scratch_operands = 0 : i64, tpu.core_type = #tpu.core_type<tc>, window_params = [{transform_indices = @transform_0, window_bounds = array<i64: 1, 6, 6, 40>}, {pipeline_mode = #tpu.pipeline_mode<synchronous>, transform_indices = @transform_1, window_bounds = array<i64: 9, 40, 40>}, {pipeline_mode = #tpu.pipeline_mode<synchronous>, transform_indices = @transform_2, window_bounds = array<i64: 1, 40>}, {transform_indices = @transform_3, window_bounds = array<i64: 1, 4, 4, 40>}]} {
    %c4_i32 = arith.constant 4 : i32
    %0 = arith.muli %arg1, %c4_i32 : i32
    %c0 = arith.constant 0 : index
    %c0_0 = arith.constant 0 : index
    %1 = vector.load %arg4[%c0, %c0_0] : memref<1x40xf32, #tpu.memory_space<vmem>>, vector<1x40xf32>
    %c0_1 = arith.constant 0 : index
    %c0_2 = arith.constant 0 : index
    %c0_3 = arith.constant 0 : index
    %2 = vector.load %arg3[%c0_1, %c0_2, %c0_3] : memref<9x40x40xbf16, #tpu.memory_space<vmem>>, vector<1x40x40xbf16>
    %3 = vector.shape_cast %2 : vector<1x40x40xbf16> to vector<40x40xbf16>
    %c1 = arith.constant 1 : index
    %c0_4 = arith.constant 0 : index
    %c0_5 = arith.constant 0 : index
    %4 = vector.load %arg3[%c1, %c0_4, %c0_5] : memref<9x40x40xbf16, #tpu.memory_space<vmem>>, vector<1x40x40xbf16>
    %5 = vector.shape_cast %4 : vector<1x40x40xbf16> to vector<40x40xbf16>
    %c2 = arith.constant 2 : index
    %c0_6 = arith.constant 0 : index
    %c0_7 = arith.constant 0 : index
    %6 = vector.load %arg3[%c2, %c0_6, %c0_7] : memref<9x40x40xbf16, #tpu.memory_space<vmem>>, vector<1x40x40xbf16>
    %7 = vector.shape_cast %6 : vector<1x40x40xbf16> to vector<40x40xbf16>
    %c3 = arith.constant 3 : index
    %c0_8 = arith.constant 0 : index
    %c0_9 = arith.constant 0 : index
    %8 = vector.load %arg3[%c3, %c0_8, %c0_9] : memref<9x40x40xbf16, #tpu.memory_space<vmem>>, vector<1x40x40xbf16>
    %9 = vector.shape_cast %8 : vector<1x40x40xbf16> to vector<40x40xbf16>
    %c4 = arith.constant 4 : index
    %c0_10 = arith.constant 0 : index
    %c0_11 = arith.constant 0 : index
    %10 = vector.load %arg3[%c4, %c0_10, %c0_11] : memref<9x40x40xbf16, #tpu.memory_space<vmem>>, vector<1x40x40xbf16>
    %11 = vector.shape_cast %10 : vector<1x40x40xbf16> to vector<40x40xbf16>
    %c5 = arith.constant 5 : index
    %c0_12 = arith.constant 0 : index
    %c0_13 = arith.constant 0 : index
    %12 = vector.load %arg3[%c5, %c0_12, %c0_13] : memref<9x40x40xbf16, #tpu.memory_space<vmem>>, vector<1x40x40xbf16>
    %13 = vector.shape_cast %12 : vector<1x40x40xbf16> to vector<40x40xbf16>
    %c6 = arith.constant 6 : index
    %c0_14 = arith.constant 0 : index
    %c0_15 = arith.constant 0 : index
    %14 = vector.load %arg3[%c6, %c0_14, %c0_15] : memref<9x40x40xbf16, #tpu.memory_space<vmem>>, vector<1x40x40xbf16>
    %15 = vector.shape_cast %14 : vector<1x40x40xbf16> to vector<40x40xbf16>
    %c7 = arith.constant 7 : index
    %c0_16 = arith.constant 0 : index
    %c0_17 = arith.constant 0 : index
    %16 = vector.load %arg3[%c7, %c0_16, %c0_17] : memref<9x40x40xbf16, #tpu.memory_space<vmem>>, vector<1x40x40xbf16>
    %17 = vector.shape_cast %16 : vector<1x40x40xbf16> to vector<40x40xbf16>
    %c8 = arith.constant 8 : index
    %c0_18 = arith.constant 0 : index
    %c0_19 = arith.constant 0 : index
    %18 = vector.load %arg3[%c8, %c0_18, %c0_19] : memref<9x40x40xbf16, #tpu.memory_space<vmem>>, vector<1x40x40xbf16>
    %19 = vector.shape_cast %18 : vector<1x40x40xbf16> to vector<40x40xbf16>
    %c0_i32 = arith.constant 0 : i32
    %c4_i32_20 = arith.constant 4 : i32
    %20 = arith.addi %c0_i32, %c4_i32_20 : i32
    %c1_i32 = arith.constant 1 : i32
    scf.for %arg6 = %c0_i32 to %20 step %c1_i32  : i32 {
      %cst = arith.constant 0.000000e+00 : f32
      %21 = vector.broadcast %cst : f32 to vector<4x40xf32>
      %22 = arith.addi %0, %arg6 : i32
      %c0_i32_22 = arith.constant 0 : i32
      %23 = arith.addi %22, %c0_i32_22 : i32
      %c0_23 = arith.constant 0 : index
      %24 = arith.index_cast %23 : i32 to index
      %c0_24 = arith.constant 0 : index
      %c0_25 = arith.constant 0 : index
      %25 = vector.load %arg2[%c0_23, %24, %c0_24, %c0_25] : memref<1x6x6x40xbf16, #tpu.memory_space<vmem>>, vector<1x1x4x40xbf16>
      %26 = vector.shape_cast %25 : vector<1x1x4x40xbf16> to vector<4x40xbf16>
      %cst_26 = arith.constant dense<0.000000e+00> : vector<4x40xf32>
      %27 = tpu.matmul %26, %3, %cst_26 {dimension_numbers = #tpu.dot_dimension_numbers<[1], [0], [0], [1], [0, 0, 1, 1], [], []>} : vector<4x40xbf16>, vector<40x40xbf16>, vector<4x40xf32> -> vector<4x40xf32>
      %28 = arith.addf %21, %27 : vector<4x40xf32>
      %29 = arith.addi %0, %arg6 : i32
      %c0_i32_27 = arith.constant 0 : i32
      %30 = arith.addi %29, %c0_i32_27 : i32
      %c0_28 = arith.constant 0 : index
      %31 = arith.index_cast %30 : i32 to index
      %c1_29 = arith.constant 1 : index
      %c0_30 = arith.constant 0 : index
      %32 = vector.load %arg2[%c0_28, %31, %c1_29, %c0_30] : memref<1x6x6x40xbf16, #tpu.memory_space<vmem>>, vector<1x1x4x40xbf16>
      %33 = vector.shape_cast %32 : vector<1x1x4x40xbf16> to vector<4x40xbf16>
      %cst_31 = arith.constant dense<0.000000e+00> : vector<4x40xf32>
      %34 = tpu.matmul %33, %5, %cst_31 {dimension_numbers = #tpu.dot_dimension_numbers<[1], [0], [0], [1], [0, 0, 1, 1], [], []>} : vector<4x40xbf16>, vector<40x40xbf16>, vector<4x40xf32> -> vector<4x40xf32>
      %35 = arith.addf %28, %34 : vector<4x40xf32>
      %36 = arith.addi %0, %arg6 : i32
      %c0_i32_32 = arith.constant 0 : i32
      %37 = arith.addi %36, %c0_i32_32 : i32
      %c0_33 = arith.constant 0 : index
      %38 = arith.index_cast %37 : i32 to index
      %c2_34 = arith.constant 2 : index
      %c0_35 = arith.constant 0 : index
      %39 = vector.load %arg2[%c0_33, %38, %c2_34, %c0_35] : memref<1x6x6x40xbf16, #tpu.memory_space<vmem>>, vector<1x1x4x40xbf16>
      %40 = vector.shape_cast %39 : vector<1x1x4x40xbf16> to vector<4x40xbf16>
      %cst_36 = arith.constant dense<0.000000e+00> : vector<4x40xf32>
      %41 = tpu.matmul %40, %7, %cst_36 {dimension_numbers = #tpu.dot_dimension_numbers<[1], [0], [0], [1], [0, 0, 1, 1], [], []>} : vector<4x40xbf16>, vector<40x40xbf16>, vector<4x40xf32> -> vector<4x40xf32>
      %42 = arith.addf %35, %41 : vector<4x40xf32>
      %43 = arith.addi %0, %arg6 : i32
      %c1_i32_37 = arith.constant 1 : i32
      %44 = arith.addi %43, %c1_i32_37 : i32
      %c0_38 = arith.constant 0 : index
      %45 = arith.index_cast %44 : i32 to index
      %c0_39 = arith.constant 0 : index
      %c0_40 = arith.constant 0 : index
      %46 = vector.load %arg2[%c0_38, %45, %c0_39, %c0_40] : memref<1x6x6x40xbf16, #tpu.memory_space<vmem>>, vector<1x1x4x40xbf16>
      %47 = vector.shape_cast %46 : vector<1x1x4x40xbf16> to vector<4x40xbf16>
      %cst_41 = arith.constant dense<0.000000e+00> : vector<4x40xf32>
      %48 = tpu.matmul %47, %9, %cst_41 {dimension_numbers = #tpu.dot_dimension_numbers<[1], [0], [0], [1], [0, 0, 1, 1], [], []>} : vector<4x40xbf16>, vector<40x40xbf16>, vector<4x40xf32> -> vector<4x40xf32>
      %49 = arith.addf %42, %48 : vector<4x40xf32>
      %50 = arith.addi %0, %arg6 : i32
      %c1_i32_42 = arith.constant 1 : i32
      %51 = arith.addi %50, %c1_i32_42 : i32
      %c0_43 = arith.constant 0 : index
      %52 = arith.index_cast %51 : i32 to index
      %c1_44 = arith.constant 1 : index
      %c0_45 = arith.constant 0 : index
      %53 = vector.load %arg2[%c0_43, %52, %c1_44, %c0_45] : memref<1x6x6x40xbf16, #tpu.memory_space<vmem>>, vector<1x1x4x40xbf16>
      %54 = vector.shape_cast %53 : vector<1x1x4x40xbf16> to vector<4x40xbf16>
      %cst_46 = arith.constant dense<0.000000e+00> : vector<4x40xf32>
      %55 = tpu.matmul %54, %11, %cst_46 {dimension_numbers = #tpu.dot_dimension_numbers<[1], [0], [0], [1], [0, 0, 1, 1], [], []>} : vector<4x40xbf16>, vector<40x40xbf16>, vector<4x40xf32> -> vector<4x40xf32>
      %56 = arith.addf %49, %55 : vector<4x40xf32>
      %57 = arith.addi %0, %arg6 : i32
      %c1_i32_47 = arith.constant 1 : i32
      %58 = arith.addi %57, %c1_i32_47 : i32
      %c0_48 = arith.constant 0 : index
      %59 = arith.index_cast %58 : i32 to index
      %c2_49 = arith.constant 2 : index
      %c0_50 = arith.constant 0 : index
      %60 = vector.load %arg2[%c0_48, %59, %c2_49, %c0_50] : memref<1x6x6x40xbf16, #tpu.memory_space<vmem>>, vector<1x1x4x40xbf16>
      %61 = vector.shape_cast %60 : vector<1x1x4x40xbf16> to vector<4x40xbf16>
      %cst_51 = arith.constant dense<0.000000e+00> : vector<4x40xf32>
      %62 = tpu.matmul %61, %13, %cst_51 {dimension_numbers = #tpu.dot_dimension_numbers<[1], [0], [0], [1], [0, 0, 1, 1], [], []>} : vector<4x40xbf16>, vector<40x40xbf16>, vector<4x40xf32> -> vector<4x40xf32>
      %63 = arith.addf %56, %62 : vector<4x40xf32>
      %64 = arith.addi %0, %arg6 : i32
      %c2_i32 = arith.constant 2 : i32
      %65 = arith.addi %64, %c2_i32 : i32
      %c0_52 = arith.constant 0 : index
      %66 = arith.index_cast %65 : i32 to index
      %c0_53 = arith.constant 0 : index
      %c0_54 = arith.constant 0 : index
      %67 = vector.load %arg2[%c0_52, %66, %c0_53, %c0_54] : memref<1x6x6x40xbf16, #tpu.memory_space<vmem>>, vector<1x1x4x40xbf16>
      %68 = vector.shape_cast %67 : vector<1x1x4x40xbf16> to vector<4x40xbf16>
      %cst_55 = arith.constant dense<0.000000e+00> : vector<4x40xf32>
      %69 = tpu.matmul %68, %15, %cst_55 {dimension_numbers = #tpu.dot_dimension_numbers<[1], [0], [0], [1], [0, 0, 1, 1], [], []>} : vector<4x40xbf16>, vector<40x40xbf16>, vector<4x40xf32> -> vector<4x40xf32>
      %70 = arith.addf %63, %69 : vector<4x40xf32>
      %71 = arith.addi %0, %arg6 : i32
      %c2_i32_56 = arith.constant 2 : i32
      %72 = arith.addi %71, %c2_i32_56 : i32
      %c0_57 = arith.constant 0 : index
      %73 = arith.index_cast %72 : i32 to index
      %c1_58 = arith.constant 1 : index
      %c0_59 = arith.constant 0 : index
      %74 = vector.load %arg2[%c0_57, %73, %c1_58, %c0_59] : memref<1x6x6x40xbf16, #tpu.memory_space<vmem>>, vector<1x1x4x40xbf16>
      %75 = vector.shape_cast %74 : vector<1x1x4x40xbf16> to vector<4x40xbf16>
      %cst_60 = arith.constant dense<0.000000e+00> : vector<4x40xf32>
      %76 = tpu.matmul %75, %17, %cst_60 {dimension_numbers = #tpu.dot_dimension_numbers<[1], [0], [0], [1], [0, 0, 1, 1], [], []>} : vector<4x40xbf16>, vector<40x40xbf16>, vector<4x40xf32> -> vector<4x40xf32>
      %77 = arith.addf %70, %76 : vector<4x40xf32>
      %78 = arith.addi %0, %arg6 : i32
      %c2_i32_61 = arith.constant 2 : i32
      %79 = arith.addi %78, %c2_i32_61 : i32
      %c0_62 = arith.constant 0 : index
      %80 = arith.index_cast %79 : i32 to index
      %c2_63 = arith.constant 2 : index
      %c0_64 = arith.constant 0 : index
      %81 = vector.load %arg2[%c0_62, %80, %c2_63, %c0_64] : memref<1x6x6x40xbf16, #tpu.memory_space<vmem>>, vector<1x1x4x40xbf16>
      %82 = vector.shape_cast %81 : vector<1x1x4x40xbf16> to vector<4x40xbf16>
      %cst_65 = arith.constant dense<0.000000e+00> : vector<4x40xf32>
      %83 = tpu.matmul %82, %19, %cst_65 {dimension_numbers = #tpu.dot_dimension_numbers<[1], [0], [0], [1], [0, 0, 1, 1], [], []>} : vector<4x40xbf16>, vector<40x40xbf16>, vector<4x40xf32> -> vector<4x40xf32>
      %84 = arith.addf %77, %83 : vector<4x40xf32>
      %85 = vector.broadcast %1 : vector<1x40xf32> to vector<4x40xf32>
      %86 = arith.addf %84, %85 : vector<4x40xf32>
      %cst_66 = arith.constant 3.000000e+00 : f32
      %87 = vector.broadcast %cst_66 : f32 to vector<4x40xf32>
      %88 = arith.addf %86, %87 : vector<4x40xf32>
      %cst_67 = arith.constant 0.000000e+00 : f32
      %cst_68 = arith.constant 6.000000e+00 : f32
      %89 = vector.broadcast %cst_67 : f32 to vector<4x40xf32>
      %90 = arith.maximumf %89, %88 : vector<4x40xf32>
      %91 = vector.broadcast %cst_68 : f32 to vector<4x40xf32>
      %92 = arith.minimumf %91, %90 : vector<4x40xf32>
      %93 = arith.mulf %86, %92 : vector<4x40xf32>
      %cst_69 = arith.constant 0.166666672 : f32
      %94 = vector.broadcast %cst_69 : f32 to vector<4x40xf32>
      %95 = arith.mulf %93, %94 : vector<4x40xf32>
      %96 = arith.truncf %95 : vector<4x40xf32> to vector<4x40xbf16>
      %c0_70 = arith.constant 0 : index
      %97 = arith.index_cast %arg6 : i32 to index
      %c0_71 = arith.constant 0 : index
      %c0_72 = arith.constant 0 : index
      %98 = vector.load %arg5[%c0_70, %97, %c0_71, %c0_72] : memref<1x4x4x40xbf16, #tpu.memory_space<vmem>>, vector<1x1x4x40xbf16>
      %99 = vector.shape_cast %98 : vector<1x1x4x40xbf16> to vector<4x40xbf16>
      %100 = vector.shape_cast %96 : vector<4x40xbf16> to vector<1x1x4x40xbf16>
      tpu.vector_store %arg5[%c0_70, %97, %c0_71, %c0_72], %100 {strides = array<i32>} : memref<1x4x4x40xbf16, #tpu.memory_space<vmem>>, vector<1x1x4x40xbf16>,
    }
    %c4_i32_21 = arith.constant 4 : i32
    return
  }
  func.func @transform_0(%arg0: i32, %arg1: i32) -> (i32, i32, i32, i32) {
    %c0_i32 = arith.constant 0 : i32
    %c0_i32_0 = arith.constant 0 : i32
    %c0_i32_1 = arith.constant 0 : i32
    %c0_i32_2 = arith.constant 0 : i32
    return %arg0, %c0_i32, %c0_i32_0, %c0_i32_1 : i32, i32, i32, i32
  }
  func.func @transform_1(%arg0: i32, %arg1: i32) -> (i32, i32, i32) {
    %c0_i32 = arith.constant 0 : i32
    %c0_i32_0 = arith.constant 0 : i32
    %c0_i32_1 = arith.constant 0 : i32
    %c0_i32_2 = arith.constant 0 : i32
    return %c0_i32, %c0_i32_0, %c0_i32_1 : i32, i32, i32
  }
  func.func @transform_2(%arg0: i32, %arg1: i32) -> (i32, i32) {
    %c0_i32 = arith.constant 0 : i32
    %c0_i32_0 = arith.constant 0 : i32
    %c0_i32_1 = arith.constant 0 : i32
    return %c0_i32, %c0_i32_0 : i32, i32
  }
  func.func @transform_3(%arg0: i32, %arg1: i32) -> (i32, i32, i32, i32) {
    %c0_i32 = arith.constant 0 : i32
    %c0_i32_0 = arith.constant 0 : i32
    %c0_i32_1 = arith.constant 0 : i32
    return %arg0, %arg1, %c0_i32, %c0_i32_0 : i32, i32, i32, i32
  }
}

module attributes {stable_mosaic.version = 11 : i64} {
  func.func @_matmul_kernel(%arg0: i32, %arg1: memref<32x40xbf16, #tpu.memory_space<vmem>>, %arg2: memref<40x32xbf16, #tpu.memory_space<vmem>>, %arg3: memref<1x32xf32, #tpu.memory_space<vmem>>, %arg4: memref<32x32xbf16, #tpu.memory_space<vmem>>) attributes {dimension_semantics = [#tpu.dimension_semantics<parallel>], iteration_bounds = array<i64: 1>, scalar_prefetch = 0 : i64, scratch_operands = 0 : i64, tpu.core_type = #tpu.core_type<tc>, window_params = [{transform_indices = @transform_0, window_bounds = array<i64: 32, 40>}, {pipeline_mode = #tpu.pipeline_mode<synchronous>, transform_indices = @transform_1, window_bounds = array<i64: 40, 32>}, {pipeline_mode = #tpu.pipeline_mode<synchronous>, transform_indices = @transform_2, window_bounds = array<i64: 1, 32>}, {transform_indices = @transform_3, window_bounds = array<i64: 32, 32>}]} {
    %c0 = arith.constant 0 : index
    %c0_0 = arith.constant 0 : index
    %0 = vector.load %arg1[%c0, %c0_0] : memref<32x40xbf16, #tpu.memory_space<vmem>>, vector<32x40xbf16>
    %c0_1 = arith.constant 0 : index
    %c0_2 = arith.constant 0 : index
    %1 = vector.load %arg2[%c0_1, %c0_2] : memref<40x32xbf16, #tpu.memory_space<vmem>>, vector<40x32xbf16>
    %cst = arith.constant dense<0.000000e+00> : vector<32x32xf32>
    %2 = tpu.matmul %0, %1, %cst {dimension_numbers = #tpu.dot_dimension_numbers<[1], [0], [0], [1], [0, 0, 1, 1], [], []>} : vector<32x40xbf16>, vector<40x32xbf16>, vector<32x32xf32> -> vector<32x32xf32>
    %c0_3 = arith.constant 0 : index
    %c0_4 = arith.constant 0 : index
    %3 = vector.load %arg3[%c0_3, %c0_4] : memref<1x32xf32, #tpu.memory_space<vmem>>, vector<1x32xf32>
    %4 = vector.broadcast %3 : vector<1x32xf32> to vector<32x32xf32>
    %5 = arith.addf %2, %4 : vector<32x32xf32>
    %6 = arith.truncf %5 : vector<32x32xf32> to vector<32x32xbf16>
    %c0_5 = arith.constant 0 : index
    %c0_6 = arith.constant 0 : index
    %7 = vector.load %arg4[%c0_5, %c0_6] : memref<32x32xbf16, #tpu.memory_space<vmem>>, vector<32x32xbf16>
    tpu.vector_store %arg4[%c0_5, %c0_6], %6 {strides = array<i32>} : memref<32x32xbf16, #tpu.memory_space<vmem>>, vector<32x32xbf16>,
    return
  }
  func.func @transform_0(%arg0: i32) -> (i32, i32) {
    %c0_i32 = arith.constant 0 : i32
    %c0_i32_0 = arith.constant 0 : i32
    return %arg0, %c0_i32 : i32, i32
  }
  func.func @transform_1(%arg0: i32) -> (i32, i32) {
    %c0_i32 = arith.constant 0 : i32
    %c0_i32_0 = arith.constant 0 : i32
    %c0_i32_1 = arith.constant 0 : i32
    return %c0_i32, %c0_i32_0 : i32, i32
  }
  func.func @transform_2(%arg0: i32) -> (i32, i32) {
    %c0_i32 = arith.constant 0 : i32
    %c0_i32_0 = arith.constant 0 : i32
    %c0_i32_1 = arith.constant 0 : i32
    return %c0_i32, %c0_i32_0 : i32, i32
  }
  func.func @transform_3(%arg0: i32) -> (i32, i32) {
    %c0_i32 = arith.constant 0 : i32
    %c0_i32_0 = arith.constant 0 : i32
    return %arg0, %c0_i32 : i32, i32
  }
}

module attributes {stable_mosaic.version = 11 : i64} {
  func.func @_matmul_kernel(%arg0: i32, %arg1: memref<32x40xbf16, #tpu.memory_space<vmem>>, %arg2: memref<40x32xbf16, #tpu.memory_space<vmem>>, %arg3: memref<1x32xf32, #tpu.memory_space<vmem>>, %arg4: memref<32x32xbf16, #tpu.memory_space<vmem>>, %arg5: memref<32x32xbf16, #tpu.memory_space<vmem>>) attributes {dimension_semantics = [#tpu.dimension_semantics<parallel>], iteration_bounds = array<i64: 1>, scalar_prefetch = 0 : i64, scratch_operands = 0 : i64, tpu.core_type = #tpu.core_type<tc>, window_params = [{transform_indices = @transform_0, window_bounds = array<i64: 32, 40>}, {pipeline_mode = #tpu.pipeline_mode<synchronous>, transform_indices = @transform_1, window_bounds = array<i64: 40, 32>}, {pipeline_mode = #tpu.pipeline_mode<synchronous>, transform_indices = @transform_2, window_bounds = array<i64: 1, 32>}, {transform_indices = @transform_3, window_bounds = array<i64: 32, 32>}, {transform_indices = @transform_4, window_bounds = array<i64: 32, 32>}]} {
    %c0 = arith.constant 0 : index
    %c0_0 = arith.constant 0 : index
    %0 = vector.load %arg1[%c0, %c0_0] : memref<32x40xbf16, #tpu.memory_space<vmem>>, vector<32x40xbf16>
    %c0_1 = arith.constant 0 : index
    %c0_2 = arith.constant 0 : index
    %1 = vector.load %arg2[%c0_1, %c0_2] : memref<40x32xbf16, #tpu.memory_space<vmem>>, vector<40x32xbf16>
    %cst = arith.constant dense<0.000000e+00> : vector<32x32xf32>
    %2 = tpu.matmul %0, %1, %cst {dimension_numbers = #tpu.dot_dimension_numbers<[1], [0], [0], [1], [0, 0, 1, 1], [], []>} : vector<32x40xbf16>, vector<40x32xbf16>, vector<32x32xf32> -> vector<32x32xf32>
    %c0_3 = arith.constant 0 : index
    %c0_4 = arith.constant 0 : index
    %3 = vector.load %arg3[%c0_3, %c0_4] : memref<1x32xf32, #tpu.memory_space<vmem>>, vector<1x32xf32>
    %4 = vector.broadcast %3 : vector<1x32xf32> to vector<32x32xf32>
    %5 = arith.addf %2, %4 : vector<32x32xf32>
    %c0_5 = arith.constant 0 : index
    %c0_6 = arith.constant 0 : index
    %6 = vector.load %arg4[%c0_5, %c0_6] : memref<32x32xbf16, #tpu.memory_space<vmem>>, vector<32x32xbf16>
    %7 = arith.extf %6 : vector<32x32xbf16> to vector<32x32xf32>
    %8 = arith.addf %5, %7 : vector<32x32xf32>
    %9 = arith.truncf %8 : vector<32x32xf32> to vector<32x32xbf16>
    %c0_7 = arith.constant 0 : index
    %c0_8 = arith.constant 0 : index
    %10 = vector.load %arg5[%c0_7, %c0_8] : memref<32x32xbf16, #tpu.memory_space<vmem>>, vector<32x32xbf16>
    tpu.vector_store %arg5[%c0_7, %c0_8], %9 {strides = array<i32>} : memref<32x32xbf16, #tpu.memory_space<vmem>>, vector<32x32xbf16>,
    return
  }
  func.func @transform_0(%arg0: i32) -> (i32, i32) {
    %c0_i32 = arith.constant 0 : i32
    %c0_i32_0 = arith.constant 0 : i32
    return %arg0, %c0_i32 : i32, i32
  }
  func.func @transform_1(%arg0: i32) -> (i32, i32) {
    %c0_i32 = arith.constant 0 : i32
    %c0_i32_0 = arith.constant 0 : i32
    %c0_i32_1 = arith.constant 0 : i32
    return %c0_i32, %c0_i32_0 : i32, i32
  }
  func.func @transform_2(%arg0: i32) -> (i32, i32) {
    %c0_i32 = arith.constant 0 : i32
    %c0_i32_0 = arith.constant 0 : i32
    %c0_i32_1 = arith.constant 0 : i32
    return %c0_i32, %c0_i32_0 : i32, i32
  }
  func.func @transform_3(%arg0: i32) -> (i32, i32) {
    %c0_i32 = arith.constant 0 : i32
    %c0_i32_0 = arith.constant 0 : i32
    return %arg0, %c0_i32 : i32, i32
  }
  func.func @transform_4(%arg0: i32) -> (i32, i32) {
    %c0_i32 = arith.constant 0 : i32
    %c0_i32_0 = arith.constant 0 : i32
    return %arg0, %c0_i32 : i32, i32
  }
}

module attributes {stable_mosaic.version = 11 : i64} {
  func.func @_matmul_kernel(%arg0: i32, %arg1: memref<128x24xbf16, #tpu.memory_space<vmem>>, %arg2: memref<24x32xbf16, #tpu.memory_space<vmem>>, %arg3: memref<1x32xf32, #tpu.memory_space<vmem>>, %arg4: memref<128x32xbf16, #tpu.memory_space<vmem>>, %arg5: memref<128x32xbf16, #tpu.memory_space<vmem>>) attributes {dimension_semantics = [#tpu.dimension_semantics<parallel>], iteration_bounds = array<i64: 1>, scalar_prefetch = 0 : i64, scratch_operands = 0 : i64, tpu.core_type = #tpu.core_type<tc>, window_params = [{transform_indices = @transform_0, window_bounds = array<i64: 128, 24>}, {pipeline_mode = #tpu.pipeline_mode<synchronous>, transform_indices = @transform_1, window_bounds = array<i64: 24, 32>}, {pipeline_mode = #tpu.pipeline_mode<synchronous>, transform_indices = @transform_2, window_bounds = array<i64: 1, 32>}, {transform_indices = @transform_3, window_bounds = array<i64: 128, 32>}, {transform_indices = @transform_4, window_bounds = array<i64: 128, 32>}]} {
    %c0 = arith.constant 0 : index
    %c0_0 = arith.constant 0 : index
    %0 = vector.load %arg1[%c0, %c0_0] : memref<128x24xbf16, #tpu.memory_space<vmem>>, vector<128x24xbf16>
    %c0_1 = arith.constant 0 : index
    %c0_2 = arith.constant 0 : index
    %1 = vector.load %arg2[%c0_1, %c0_2] : memref<24x32xbf16, #tpu.memory_space<vmem>>, vector<24x32xbf16>
    %cst = arith.constant dense<0.000000e+00> : vector<128x32xf32>
    %2 = tpu.matmul %0, %1, %cst {dimension_numbers = #tpu.dot_dimension_numbers<[1], [0], [0], [1], [0, 0, 1, 1], [], []>} : vector<128x24xbf16>, vector<24x32xbf16>, vector<128x32xf32> -> vector<128x32xf32>
    %c0_3 = arith.constant 0 : index
    %c0_4 = arith.constant 0 : index
    %3 = vector.load %arg3[%c0_3, %c0_4] : memref<1x32xf32, #tpu.memory_space<vmem>>, vector<1x32xf32>
    %4 = vector.broadcast %3 : vector<1x32xf32> to vector<128x32xf32>
    %5 = arith.addf %2, %4 : vector<128x32xf32>
    %c0_5 = arith.constant 0 : index
    %c0_6 = arith.constant 0 : index
    %6 = vector.load %arg4[%c0_5, %c0_6] : memref<128x32xbf16, #tpu.memory_space<vmem>>, vector<128x32xbf16>
    %7 = arith.extf %6 : vector<128x32xbf16> to vector<128x32xf32>
    %8 = arith.addf %5, %7 : vector<128x32xf32>
    %9 = arith.truncf %8 : vector<128x32xf32> to vector<128x32xbf16>
    %c0_7 = arith.constant 0 : index
    %c0_8 = arith.constant 0 : index
    %10 = vector.load %arg5[%c0_7, %c0_8] : memref<128x32xbf16, #tpu.memory_space<vmem>>, vector<128x32xbf16>
    tpu.vector_store %arg5[%c0_7, %c0_8], %9 {strides = array<i32>} : memref<128x32xbf16, #tpu.memory_space<vmem>>, vector<128x32xbf16>,
    return
  }
  func.func @transform_0(%arg0: i32) -> (i32, i32) {
    %c0_i32 = arith.constant 0 : i32
    %c0_i32_0 = arith.constant 0 : i32
    return %arg0, %c0_i32 : i32, i32
  }
  func.func @transform_1(%arg0: i32) -> (i32, i32) {
    %c0_i32 = arith.constant 0 : i32
    %c0_i32_0 = arith.constant 0 : i32
    %c0_i32_1 = arith.constant 0 : i32
    return %c0_i32, %c0_i32_0 : i32, i32
  }
  func.func @transform_2(%arg0: i32) -> (i32, i32) {
    %c0_i32 = arith.constant 0 : i32
    %c0_i32_0 = arith.constant 0 : i32
    %c0_i32_1 = arith.constant 0 : i32
    return %c0_i32, %c0_i32_0 : i32, i32
  }
  func.func @transform_3(%arg0: i32) -> (i32, i32) {
    %c0_i32 = arith.constant 0 : i32
    %c0_i32_0 = arith.constant 0 : i32
    return %arg0, %c0_i32 : i32, i32
  }
  func.func @transform_4(%arg0: i32) -> (i32, i32) {
    %c0_i32 = arith.constant 0 : i32
    %c0_i32_0 = arith.constant 0 : i32
    return %arg0, %c0_i32 : i32, i32
  }
}

module attributes {stable_mosaic.version = 11 : i64} {
  func.func @_direct_conv_kernel(%arg0: i32, %arg1: i32, %arg2: memref<1x10x10x32xbf16, #tpu.memory_space<vmem>>, %arg3: memref<9x32x32xbf16, #tpu.memory_space<vmem>>, %arg4: memref<1x32xf32, #tpu.memory_space<vmem>>, %arg5: memref<1x8x8x32xf32, #tpu.memory_space<vmem>>) attributes {dimension_semantics = [#tpu.dimension_semantics<parallel>, #tpu.dimension_semantics<arbitrary>], iteration_bounds = array<i64: 2, 1>, scalar_prefetch = 0 : i64, scratch_operands = 0 : i64, tpu.core_type = #tpu.core_type<tc>, window_params = [{transform_indices = @transform_0, window_bounds = array<i64: 1, 10, 10, 32>}, {pipeline_mode = #tpu.pipeline_mode<synchronous>, transform_indices = @transform_1, window_bounds = array<i64: 9, 32, 32>}, {pipeline_mode = #tpu.pipeline_mode<synchronous>, transform_indices = @transform_2, window_bounds = array<i64: 1, 32>}, {transform_indices = @transform_3, window_bounds = array<i64: 1, 8, 8, 32>}]} {
    %c8_i32 = arith.constant 8 : i32
    %0 = arith.muli %arg1, %c8_i32 : i32
    %c0 = arith.constant 0 : index
    %c0_0 = arith.constant 0 : index
    %1 = vector.load %arg4[%c0, %c0_0] : memref<1x32xf32, #tpu.memory_space<vmem>>, vector<1x32xf32>
    %c0_1 = arith.constant 0 : index
    %c0_2 = arith.constant 0 : index
    %c0_3 = arith.constant 0 : index
    %2 = vector.load %arg3[%c0_1, %c0_2, %c0_3] : memref<9x32x32xbf16, #tpu.memory_space<vmem>>, vector<1x32x32xbf16>
    %3 = vector.shape_cast %2 : vector<1x32x32xbf16> to vector<32x32xbf16>
    %c1 = arith.constant 1 : index
    %c0_4 = arith.constant 0 : index
    %c0_5 = arith.constant 0 : index
    %4 = vector.load %arg3[%c1, %c0_4, %c0_5] : memref<9x32x32xbf16, #tpu.memory_space<vmem>>, vector<1x32x32xbf16>
    %5 = vector.shape_cast %4 : vector<1x32x32xbf16> to vector<32x32xbf16>
    %c2 = arith.constant 2 : index
    %c0_6 = arith.constant 0 : index
    %c0_7 = arith.constant 0 : index
    %6 = vector.load %arg3[%c2, %c0_6, %c0_7] : memref<9x32x32xbf16, #tpu.memory_space<vmem>>, vector<1x32x32xbf16>
    %7 = vector.shape_cast %6 : vector<1x32x32xbf16> to vector<32x32xbf16>
    %c3 = arith.constant 3 : index
    %c0_8 = arith.constant 0 : index
    %c0_9 = arith.constant 0 : index
    %8 = vector.load %arg3[%c3, %c0_8, %c0_9] : memref<9x32x32xbf16, #tpu.memory_space<vmem>>, vector<1x32x32xbf16>
    %9 = vector.shape_cast %8 : vector<1x32x32xbf16> to vector<32x32xbf16>
    %c4 = arith.constant 4 : index
    %c0_10 = arith.constant 0 : index
    %c0_11 = arith.constant 0 : index
    %10 = vector.load %arg3[%c4, %c0_10, %c0_11] : memref<9x32x32xbf16, #tpu.memory_space<vmem>>, vector<1x32x32xbf16>
    %11 = vector.shape_cast %10 : vector<1x32x32xbf16> to vector<32x32xbf16>
    %c5 = arith.constant 5 : index
    %c0_12 = arith.constant 0 : index
    %c0_13 = arith.constant 0 : index
    %12 = vector.load %arg3[%c5, %c0_12, %c0_13] : memref<9x32x32xbf16, #tpu.memory_space<vmem>>, vector<1x32x32xbf16>
    %13 = vector.shape_cast %12 : vector<1x32x32xbf16> to vector<32x32xbf16>
    %c6 = arith.constant 6 : index
    %c0_14 = arith.constant 0 : index
    %c0_15 = arith.constant 0 : index
    %14 = vector.load %arg3[%c6, %c0_14, %c0_15] : memref<9x32x32xbf16, #tpu.memory_space<vmem>>, vector<1x32x32xbf16>
    %15 = vector.shape_cast %14 : vector<1x32x32xbf16> to vector<32x32xbf16>
    %c7 = arith.constant 7 : index
    %c0_16 = arith.constant 0 : index
    %c0_17 = arith.constant 0 : index
    %16 = vector.load %arg3[%c7, %c0_16, %c0_17] : memref<9x32x32xbf16, #tpu.memory_space<vmem>>, vector<1x32x32xbf16>
    %17 = vector.shape_cast %16 : vector<1x32x32xbf16> to vector<32x32xbf16>
    %c8 = arith.constant 8 : index
    %c0_18 = arith.constant 0 : index
    %c0_19 = arith.constant 0 : index
    %18 = vector.load %arg3[%c8, %c0_18, %c0_19] : memref<9x32x32xbf16, #tpu.memory_space<vmem>>, vector<1x32x32xbf16>
    %19 = vector.shape_cast %18 : vector<1x32x32xbf16> to vector<32x32xbf16>
    %c0_i32 = arith.constant 0 : i32
    %c8_i32_20 = arith.constant 8 : i32
    %20 = arith.addi %c0_i32, %c8_i32_20 : i32
    %c1_i32 = arith.constant 1 : i32
    scf.for %arg6 = %c0_i32 to %20 step %c1_i32  : i32 {
      %cst = arith.constant 0.000000e+00 : f32
      %21 = vector.broadcast %cst : f32 to vector<8x32xf32>
      %22 = arith.addi %0, %arg6 : i32
      %c0_i32_22 = arith.constant 0 : i32
      %23 = arith.addi %22, %c0_i32_22 : i32
      %c0_23 = arith.constant 0 : index
      %24 = arith.index_cast %23 : i32 to index
      %c0_24 = arith.constant 0 : index
      %c0_25 = arith.constant 0 : index
      %25 = vector.load %arg2[%c0_23, %24, %c0_24, %c0_25] : memref<1x10x10x32xbf16, #tpu.memory_space<vmem>>, vector<1x1x8x32xbf16>
      %26 = vector.shape_cast %25 : vector<1x1x8x32xbf16> to vector<8x32xbf16>
      %cst_26 = arith.constant dense<0.000000e+00> : vector<8x32xf32>
      %27 = tpu.matmul %26, %3, %cst_26 {dimension_numbers = #tpu.dot_dimension_numbers<[1], [0], [0], [1], [0, 0, 1, 1], [], []>} : vector<8x32xbf16>, vector<32x32xbf16>, vector<8x32xf32> -> vector<8x32xf32>
      %28 = arith.addf %21, %27 : vector<8x32xf32>
      %29 = arith.addi %0, %arg6 : i32
      %c0_i32_27 = arith.constant 0 : i32
      %30 = arith.addi %29, %c0_i32_27 : i32
      %c0_28 = arith.constant 0 : index
      %31 = arith.index_cast %30 : i32 to index
      %c1_29 = arith.constant 1 : index
      %c0_30 = arith.constant 0 : index
      %32 = vector.load %arg2[%c0_28, %31, %c1_29, %c0_30] : memref<1x10x10x32xbf16, #tpu.memory_space<vmem>>, vector<1x1x8x32xbf16>
      %33 = vector.shape_cast %32 : vector<1x1x8x32xbf16> to vector<8x32xbf16>
      %cst_31 = arith.constant dense<0.000000e+00> : vector<8x32xf32>
      %34 = tpu.matmul %33, %5, %cst_31 {dimension_numbers = #tpu.dot_dimension_numbers<[1], [0], [0], [1], [0, 0, 1, 1], [], []>} : vector<8x32xbf16>, vector<32x32xbf16>, vector<8x32xf32> -> vector<8x32xf32>
      %35 = arith.addf %28, %34 : vector<8x32xf32>
      %36 = arith.addi %0, %arg6 : i32
      %c0_i32_32 = arith.constant 0 : i32
      %37 = arith.addi %36, %c0_i32_32 : i32
      %c0_33 = arith.constant 0 : index
      %38 = arith.index_cast %37 : i32 to index
      %c2_34 = arith.constant 2 : index
      %c0_35 = arith.constant 0 : index
      %39 = vector.load %arg2[%c0_33, %38, %c2_34, %c0_35] : memref<1x10x10x32xbf16, #tpu.memory_space<vmem>>, vector<1x1x8x32xbf16>
      %40 = vector.shape_cast %39 : vector<1x1x8x32xbf16> to vector<8x32xbf16>
      %cst_36 = arith.constant dense<0.000000e+00> : vector<8x32xf32>
      %41 = tpu.matmul %40, %7, %cst_36 {dimension_numbers = #tpu.dot_dimension_numbers<[1], [0], [0], [1], [0, 0, 1, 1], [], []>} : vector<8x32xbf16>, vector<32x32xbf16>, vector<8x32xf32> -> vector<8x32xf32>
      %42 = arith.addf %35, %41 : vector<8x32xf32>
      %43 = arith.addi %0, %arg6 : i32
      %c1_i32_37 = arith.constant 1 : i32
      %44 = arith.addi %43, %c1_i32_37 : i32
      %c0_38 = arith.constant 0 : index
      %45 = arith.index_cast %44 : i32 to index
      %c0_39 = arith.constant 0 : index
      %c0_40 = arith.constant 0 : index
      %46 = vector.load %arg2[%c0_38, %45, %c0_39, %c0_40] : memref<1x10x10x32xbf16, #tpu.memory_space<vmem>>, vector<1x1x8x32xbf16>
      %47 = vector.shape_cast %46 : vector<1x1x8x32xbf16> to vector<8x32xbf16>
      %cst_41 = arith.constant dense<0.000000e+00> : vector<8x32xf32>
      %48 = tpu.matmul %47, %9, %cst_41 {dimension_numbers = #tpu.dot_dimension_numbers<[1], [0], [0], [1], [0, 0, 1, 1], [], []>} : vector<8x32xbf16>, vector<32x32xbf16>, vector<8x32xf32> -> vector<8x32xf32>
      %49 = arith.addf %42, %48 : vector<8x32xf32>
      %50 = arith.addi %0, %arg6 : i32
      %c1_i32_42 = arith.constant 1 : i32
      %51 = arith.addi %50, %c1_i32_42 : i32
      %c0_43 = arith.constant 0 : index
      %52 = arith.index_cast %51 : i32 to index
      %c1_44 = arith.constant 1 : index
      %c0_45 = arith.constant 0 : index
      %53 = vector.load %arg2[%c0_43, %52, %c1_44, %c0_45] : memref<1x10x10x32xbf16, #tpu.memory_space<vmem>>, vector<1x1x8x32xbf16>
      %54 = vector.shape_cast %53 : vector<1x1x8x32xbf16> to vector<8x32xbf16>
      %cst_46 = arith.constant dense<0.000000e+00> : vector<8x32xf32>
      %55 = tpu.matmul %54, %11, %cst_46 {dimension_numbers = #tpu.dot_dimension_numbers<[1], [0], [0], [1], [0, 0, 1, 1], [], []>} : vector<8x32xbf16>, vector<32x32xbf16>, vector<8x32xf32> -> vector<8x32xf32>
      %56 = arith.addf %49, %55 : vector<8x32xf32>
      %57 = arith.addi %0, %arg6 : i32
      %c1_i32_47 = arith.constant 1 : i32
      %58 = arith.addi %57, %c1_i32_47 : i32
      %c0_48 = arith.constant 0 : index
      %59 = arith.index_cast %58 : i32 to index
      %c2_49 = arith.constant 2 : index
      %c0_50 = arith.constant 0 : index
      %60 = vector.load %arg2[%c0_48, %59, %c2_49, %c0_50] : memref<1x10x10x32xbf16, #tpu.memory_space<vmem>>, vector<1x1x8x32xbf16>
      %61 = vector.shape_cast %60 : vector<1x1x8x32xbf16> to vector<8x32xbf16>
      %cst_51 = arith.constant dense<0.000000e+00> : vector<8x32xf32>
      %62 = tpu.matmul %61, %13, %cst_51 {dimension_numbers = #tpu.dot_dimension_numbers<[1], [0], [0], [1], [0, 0, 1, 1], [], []>} : vector<8x32xbf16>, vector<32x32xbf16>, vector<8x32xf32> -> vector<8x32xf32>
      %63 = arith.addf %56, %62 : vector<8x32xf32>
      %64 = arith.addi %0, %arg6 : i32
      %c2_i32 = arith.constant 2 : i32
      %65 = arith.addi %64, %c2_i32 : i32
      %c0_52 = arith.constant 0 : index
      %66 = arith.index_cast %65 : i32 to index
      %c0_53 = arith.constant 0 : index
      %c0_54 = arith.constant 0 : index
      %67 = vector.load %arg2[%c0_52, %66, %c0_53, %c0_54] : memref<1x10x10x32xbf16, #tpu.memory_space<vmem>>, vector<1x1x8x32xbf16>
      %68 = vector.shape_cast %67 : vector<1x1x8x32xbf16> to vector<8x32xbf16>
      %cst_55 = arith.constant dense<0.000000e+00> : vector<8x32xf32>
      %69 = tpu.matmul %68, %15, %cst_55 {dimension_numbers = #tpu.dot_dimension_numbers<[1], [0], [0], [1], [0, 0, 1, 1], [], []>} : vector<8x32xbf16>, vector<32x32xbf16>, vector<8x32xf32> -> vector<8x32xf32>
      %70 = arith.addf %63, %69 : vector<8x32xf32>
      %71 = arith.addi %0, %arg6 : i32
      %c2_i32_56 = arith.constant 2 : i32
      %72 = arith.addi %71, %c2_i32_56 : i32
      %c0_57 = arith.constant 0 : index
      %73 = arith.index_cast %72 : i32 to index
      %c1_58 = arith.constant 1 : index
      %c0_59 = arith.constant 0 : index
      %74 = vector.load %arg2[%c0_57, %73, %c1_58, %c0_59] : memref<1x10x10x32xbf16, #tpu.memory_space<vmem>>, vector<1x1x8x32xbf16>
      %75 = vector.shape_cast %74 : vector<1x1x8x32xbf16> to vector<8x32xbf16>
      %cst_60 = arith.constant dense<0.000000e+00> : vector<8x32xf32>
      %76 = tpu.matmul %75, %17, %cst_60 {dimension_numbers = #tpu.dot_dimension_numbers<[1], [0], [0], [1], [0, 0, 1, 1], [], []>} : vector<8x32xbf16>, vector<32x32xbf16>, vector<8x32xf32> -> vector<8x32xf32>
      %77 = arith.addf %70, %76 : vector<8x32xf32>
      %78 = arith.addi %0, %arg6 : i32
      %c2_i32_61 = arith.constant 2 : i32
      %79 = arith.addi %78, %c2_i32_61 : i32
      %c0_62 = arith.constant 0 : index
      %80 = arith.index_cast %79 : i32 to index
      %c2_63 = arith.constant 2 : index
      %c0_64 = arith.constant 0 : index
      %81 = vector.load %arg2[%c0_62, %80, %c2_63, %c0_64] : memref<1x10x10x32xbf16, #tpu.memory_space<vmem>>, vector<1x1x8x32xbf16>
      %82 = vector.shape_cast %81 : vector<1x1x8x32xbf16> to vector<8x32xbf16>
      %cst_65 = arith.constant dense<0.000000e+00> : vector<8x32xf32>
      %83 = tpu.matmul %82, %19, %cst_65 {dimension_numbers = #tpu.dot_dimension_numbers<[1], [0], [0], [1], [0, 0, 1, 1], [], []>} : vector<8x32xbf16>, vector<32x32xbf16>, vector<8x32xf32> -> vector<8x32xf32>
      %84 = arith.addf %77, %83 : vector<8x32xf32>
      %85 = vector.broadcast %1 : vector<1x32xf32> to vector<8x32xf32>
      %86 = arith.addf %84, %85 : vector<8x32xf32>
      %c0_66 = arith.constant 0 : index
      %87 = arith.index_cast %arg6 : i32 to index
      %c0_67 = arith.constant 0 : index
      %c0_68 = arith.constant 0 : index
      %88 = vector.load %arg5[%c0_66, %87, %c0_67, %c0_68] : memref<1x8x8x32xf32, #tpu.memory_space<vmem>>, vector<1x1x8x32xf32>
      %89 = vector.shape_cast %88 : vector<1x1x8x32xf32> to vector<8x32xf32>
      %90 = vector.shape_cast %86 : vector<8x32xf32> to vector<1x1x8x32xf32>
      tpu.vector_store %arg5[%c0_66, %87, %c0_67, %c0_68], %90 {strides = array<i32>} : memref<1x8x8x32xf32, #tpu.memory_space<vmem>>, vector<1x1x8x32xf32>,
    }
    %c8_i32_21 = arith.constant 8 : i32
    return
  }
  func.func @transform_0(%arg0: i32, %arg1: i32) -> (i32, i32, i32, i32) {
    %c0_i32 = arith.constant 0 : i32
    %c0_i32_0 = arith.constant 0 : i32
    %c0_i32_1 = arith.constant 0 : i32
    %c0_i32_2 = arith.constant 0 : i32
    return %arg0, %c0_i32, %c0_i32_0, %c0_i32_1 : i32, i32, i32, i32
  }
  func.func @transform_1(%arg0: i32, %arg1: i32) -> (i32, i32, i32) {
    %c0_i32 = arith.constant 0 : i32
    %c0_i32_0 = arith.constant 0 : i32
    %c0_i32_1 = arith.constant 0 : i32
    %c0_i32_2 = arith.constant 0 : i32
    return %c0_i32, %c0_i32_0, %c0_i32_1 : i32, i32, i32
  }
  func.func @transform_2(%arg0: i32, %arg1: i32) -> (i32, i32) {
    %c0_i32 = arith.constant 0 : i32
    %c0_i32_0 = arith.constant 0 : i32
    %c0_i32_1 = arith.constant 0 : i32
    return %c0_i32, %c0_i32_0 : i32, i32
  }
  func.func @transform_3(%arg0: i32, %arg1: i32) -> (i32, i32, i32, i32) {
    %c0_i32 = arith.constant 0 : i32
    %c0_i32_0 = arith.constant 0 : i32
    %c0_i32_1 = arith.constant 0 : i32
    return %arg0, %arg1, %c0_i32, %c0_i32_0 : i32, i32, i32, i32
  }
}

module attributes {stable_mosaic.version = 11 : i64} {
  func.func @_direct_conv_kernel(%arg0: i32, %arg1: i32, %arg2: memref<1x6x6x32xbf16, #tpu.memory_space<vmem>>, %arg3: memref<9x32x32xbf16, #tpu.memory_space<vmem>>, %arg4: memref<1x32xf32, #tpu.memory_space<vmem>>, %arg5: memref<1x4x4x32xf32, #tpu.memory_space<vmem>>) attributes {dimension_semantics = [#tpu.dimension_semantics<parallel>, #tpu.dimension_semantics<arbitrary>], iteration_bounds = array<i64: 2, 1>, scalar_prefetch = 0 : i64, scratch_operands = 0 : i64, tpu.core_type = #tpu.core_type<tc>, window_params = [{transform_indices = @transform_0, window_bounds = array<i64: 1, 6, 6, 32>}, {pipeline_mode = #tpu.pipeline_mode<synchronous>, transform_indices = @transform_1, window_bounds = array<i64: 9, 32, 32>}, {pipeline_mode = #tpu.pipeline_mode<synchronous>, transform_indices = @transform_2, window_bounds = array<i64: 1, 32>}, {transform_indices = @transform_3, window_bounds = array<i64: 1, 4, 4, 32>}]} {
    %c4_i32 = arith.constant 4 : i32
    %0 = arith.muli %arg1, %c4_i32 : i32
    %c0 = arith.constant 0 : index
    %c0_0 = arith.constant 0 : index
    %1 = vector.load %arg4[%c0, %c0_0] : memref<1x32xf32, #tpu.memory_space<vmem>>, vector<1x32xf32>
    %c0_1 = arith.constant 0 : index
    %c0_2 = arith.constant 0 : index
    %c0_3 = arith.constant 0 : index
    %2 = vector.load %arg3[%c0_1, %c0_2, %c0_3] : memref<9x32x32xbf16, #tpu.memory_space<vmem>>, vector<1x32x32xbf16>
    %3 = vector.shape_cast %2 : vector<1x32x32xbf16> to vector<32x32xbf16>
    %c1 = arith.constant 1 : index
    %c0_4 = arith.constant 0 : index
    %c0_5 = arith.constant 0 : index
    %4 = vector.load %arg3[%c1, %c0_4, %c0_5] : memref<9x32x32xbf16, #tpu.memory_space<vmem>>, vector<1x32x32xbf16>
    %5 = vector.shape_cast %4 : vector<1x32x32xbf16> to vector<32x32xbf16>
    %c2 = arith.constant 2 : index
    %c0_6 = arith.constant 0 : index
    %c0_7 = arith.constant 0 : index
    %6 = vector.load %arg3[%c2, %c0_6, %c0_7] : memref<9x32x32xbf16, #tpu.memory_space<vmem>>, vector<1x32x32xbf16>
    %7 = vector.shape_cast %6 : vector<1x32x32xbf16> to vector<32x32xbf16>
    %c3 = arith.constant 3 : index
    %c0_8 = arith.constant 0 : index
    %c0_9 = arith.constant 0 : index
    %8 = vector.load %arg3[%c3, %c0_8, %c0_9] : memref<9x32x32xbf16, #tpu.memory_space<vmem>>, vector<1x32x32xbf16>
    %9 = vector.shape_cast %8 : vector<1x32x32xbf16> to vector<32x32xbf16>
    %c4 = arith.constant 4 : index
    %c0_10 = arith.constant 0 : index
    %c0_11 = arith.constant 0 : index
    %10 = vector.load %arg3[%c4, %c0_10, %c0_11] : memref<9x32x32xbf16, #tpu.memory_space<vmem>>, vector<1x32x32xbf16>
    %11 = vector.shape_cast %10 : vector<1x32x32xbf16> to vector<32x32xbf16>
    %c5 = arith.constant 5 : index
    %c0_12 = arith.constant 0 : index
    %c0_13 = arith.constant 0 : index
    %12 = vector.load %arg3[%c5, %c0_12, %c0_13] : memref<9x32x32xbf16, #tpu.memory_space<vmem>>, vector<1x32x32xbf16>
    %13 = vector.shape_cast %12 : vector<1x32x32xbf16> to vector<32x32xbf16>
    %c6 = arith.constant 6 : index
    %c0_14 = arith.constant 0 : index
    %c0_15 = arith.constant 0 : index
    %14 = vector.load %arg3[%c6, %c0_14, %c0_15] : memref<9x32x32xbf16, #tpu.memory_space<vmem>>, vector<1x32x32xbf16>
    %15 = vector.shape_cast %14 : vector<1x32x32xbf16> to vector<32x32xbf16>
    %c7 = arith.constant 7 : index
    %c0_16 = arith.constant 0 : index
    %c0_17 = arith.constant 0 : index
    %16 = vector.load %arg3[%c7, %c0_16, %c0_17] : memref<9x32x32xbf16, #tpu.memory_space<vmem>>, vector<1x32x32xbf16>
    %17 = vector.shape_cast %16 : vector<1x32x32xbf16> to vector<32x32xbf16>
    %c8 = arith.constant 8 : index
    %c0_18 = arith.constant 0 : index
    %c0_19 = arith.constant 0 : index
    %18 = vector.load %arg3[%c8, %c0_18, %c0_19] : memref<9x32x32xbf16, #tpu.memory_space<vmem>>, vector<1x32x32xbf16>
    %19 = vector.shape_cast %18 : vector<1x32x32xbf16> to vector<32x32xbf16>
    %c0_i32 = arith.constant 0 : i32
    %c4_i32_20 = arith.constant 4 : i32
    %20 = arith.addi %c0_i32, %c4_i32_20 : i32
    %c1_i32 = arith.constant 1 : i32
    scf.for %arg6 = %c0_i32 to %20 step %c1_i32  : i32 {
      %cst = arith.constant 0.000000e+00 : f32
      %21 = vector.broadcast %cst : f32 to vector<4x32xf32>
      %22 = arith.addi %0, %arg6 : i32
      %c0_i32_22 = arith.constant 0 : i32
      %23 = arith.addi %22, %c0_i32_22 : i32
      %c0_23 = arith.constant 0 : index
      %24 = arith.index_cast %23 : i32 to index
      %c0_24 = arith.constant 0 : index
      %c0_25 = arith.constant 0 : index
      %25 = vector.load %arg2[%c0_23, %24, %c0_24, %c0_25] : memref<1x6x6x32xbf16, #tpu.memory_space<vmem>>, vector<1x1x4x32xbf16>
      %26 = vector.shape_cast %25 : vector<1x1x4x32xbf16> to vector<4x32xbf16>
      %cst_26 = arith.constant dense<0.000000e+00> : vector<4x32xf32>
      %27 = tpu.matmul %26, %3, %cst_26 {dimension_numbers = #tpu.dot_dimension_numbers<[1], [0], [0], [1], [0, 0, 1, 1], [], []>} : vector<4x32xbf16>, vector<32x32xbf16>, vector<4x32xf32> -> vector<4x32xf32>
      %28 = arith.addf %21, %27 : vector<4x32xf32>
      %29 = arith.addi %0, %arg6 : i32
      %c0_i32_27 = arith.constant 0 : i32
      %30 = arith.addi %29, %c0_i32_27 : i32
      %c0_28 = arith.constant 0 : index
      %31 = arith.index_cast %30 : i32 to index
      %c1_29 = arith.constant 1 : index
      %c0_30 = arith.constant 0 : index
      %32 = vector.load %arg2[%c0_28, %31, %c1_29, %c0_30] : memref<1x6x6x32xbf16, #tpu.memory_space<vmem>>, vector<1x1x4x32xbf16>
      %33 = vector.shape_cast %32 : vector<1x1x4x32xbf16> to vector<4x32xbf16>
      %cst_31 = arith.constant dense<0.000000e+00> : vector<4x32xf32>
      %34 = tpu.matmul %33, %5, %cst_31 {dimension_numbers = #tpu.dot_dimension_numbers<[1], [0], [0], [1], [0, 0, 1, 1], [], []>} : vector<4x32xbf16>, vector<32x32xbf16>, vector<4x32xf32> -> vector<4x32xf32>
      %35 = arith.addf %28, %34 : vector<4x32xf32>
      %36 = arith.addi %0, %arg6 : i32
      %c0_i32_32 = arith.constant 0 : i32
      %37 = arith.addi %36, %c0_i32_32 : i32
      %c0_33 = arith.constant 0 : index
      %38 = arith.index_cast %37 : i32 to index
      %c2_34 = arith.constant 2 : index
      %c0_35 = arith.constant 0 : index
      %39 = vector.load %arg2[%c0_33, %38, %c2_34, %c0_35] : memref<1x6x6x32xbf16, #tpu.memory_space<vmem>>, vector<1x1x4x32xbf16>
      %40 = vector.shape_cast %39 : vector<1x1x4x32xbf16> to vector<4x32xbf16>
      %cst_36 = arith.constant dense<0.000000e+00> : vector<4x32xf32>
      %41 = tpu.matmul %40, %7, %cst_36 {dimension_numbers = #tpu.dot_dimension_numbers<[1], [0], [0], [1], [0, 0, 1, 1], [], []>} : vector<4x32xbf16>, vector<32x32xbf16>, vector<4x32xf32> -> vector<4x32xf32>
      %42 = arith.addf %35, %41 : vector<4x32xf32>
      %43 = arith.addi %0, %arg6 : i32
      %c1_i32_37 = arith.constant 1 : i32
      %44 = arith.addi %43, %c1_i32_37 : i32
      %c0_38 = arith.constant 0 : index
      %45 = arith.index_cast %44 : i32 to index
      %c0_39 = arith.constant 0 : index
      %c0_40 = arith.constant 0 : index
      %46 = vector.load %arg2[%c0_38, %45, %c0_39, %c0_40] : memref<1x6x6x32xbf16, #tpu.memory_space<vmem>>, vector<1x1x4x32xbf16>
      %47 = vector.shape_cast %46 : vector<1x1x4x32xbf16> to vector<4x32xbf16>
      %cst_41 = arith.constant dense<0.000000e+00> : vector<4x32xf32>
      %48 = tpu.matmul %47, %9, %cst_41 {dimension_numbers = #tpu.dot_dimension_numbers<[1], [0], [0], [1], [0, 0, 1, 1], [], []>} : vector<4x32xbf16>, vector<32x32xbf16>, vector<4x32xf32> -> vector<4x32xf32>
      %49 = arith.addf %42, %48 : vector<4x32xf32>
      %50 = arith.addi %0, %arg6 : i32
      %c1_i32_42 = arith.constant 1 : i32
      %51 = arith.addi %50, %c1_i32_42 : i32
      %c0_43 = arith.constant 0 : index
      %52 = arith.index_cast %51 : i32 to index
      %c1_44 = arith.constant 1 : index
      %c0_45 = arith.constant 0 : index
      %53 = vector.load %arg2[%c0_43, %52, %c1_44, %c0_45] : memref<1x6x6x32xbf16, #tpu.memory_space<vmem>>, vector<1x1x4x32xbf16>
      %54 = vector.shape_cast %53 : vector<1x1x4x32xbf16> to vector<4x32xbf16>
      %cst_46 = arith.constant dense<0.000000e+00> : vector<4x32xf32>
      %55 = tpu.matmul %54, %11, %cst_46 {dimension_numbers = #tpu.dot_dimension_numbers<[1], [0], [0], [1], [0, 0, 1, 1], [], []>} : vector<4x32xbf16>, vector<32x32xbf16>, vector<4x32xf32> -> vector<4x32xf32>
      %56 = arith.addf %49, %55 : vector<4x32xf32>
      %57 = arith.addi %0, %arg6 : i32
      %c1_i32_47 = arith.constant 1 : i32
      %58 = arith.addi %57, %c1_i32_47 : i32
      %c0_48 = arith.constant 0 : index
      %59 = arith.index_cast %58 : i32 to index
      %c2_49 = arith.constant 2 : index
      %c0_50 = arith.constant 0 : index
      %60 = vector.load %arg2[%c0_48, %59, %c2_49, %c0_50] : memref<1x6x6x32xbf16, #tpu.memory_space<vmem>>, vector<1x1x4x32xbf16>
      %61 = vector.shape_cast %60 : vector<1x1x4x32xbf16> to vector<4x32xbf16>
      %cst_51 = arith.constant dense<0.000000e+00> : vector<4x32xf32>
      %62 = tpu.matmul %61, %13, %cst_51 {dimension_numbers = #tpu.dot_dimension_numbers<[1], [0], [0], [1], [0, 0, 1, 1], [], []>} : vector<4x32xbf16>, vector<32x32xbf16>, vector<4x32xf32> -> vector<4x32xf32>
      %63 = arith.addf %56, %62 : vector<4x32xf32>
      %64 = arith.addi %0, %arg6 : i32
      %c2_i32 = arith.constant 2 : i32
      %65 = arith.addi %64, %c2_i32 : i32
      %c0_52 = arith.constant 0 : index
      %66 = arith.index_cast %65 : i32 to index
      %c0_53 = arith.constant 0 : index
      %c0_54 = arith.constant 0 : index
      %67 = vector.load %arg2[%c0_52, %66, %c0_53, %c0_54] : memref<1x6x6x32xbf16, #tpu.memory_space<vmem>>, vector<1x1x4x32xbf16>
      %68 = vector.shape_cast %67 : vector<1x1x4x32xbf16> to vector<4x32xbf16>
      %cst_55 = arith.constant dense<0.000000e+00> : vector<4x32xf32>
      %69 = tpu.matmul %68, %15, %cst_55 {dimension_numbers = #tpu.dot_dimension_numbers<[1], [0], [0], [1], [0, 0, 1, 1], [], []>} : vector<4x32xbf16>, vector<32x32xbf16>, vector<4x32xf32> -> vector<4x32xf32>
      %70 = arith.addf %63, %69 : vector<4x32xf32>
      %71 = arith.addi %0, %arg6 : i32
      %c2_i32_56 = arith.constant 2 : i32
      %72 = arith.addi %71, %c2_i32_56 : i32
      %c0_57 = arith.constant 0 : index
      %73 = arith.index_cast %72 : i32 to index
      %c1_58 = arith.constant 1 : index
      %c0_59 = arith.constant 0 : index
      %74 = vector.load %arg2[%c0_57, %73, %c1_58, %c0_59] : memref<1x6x6x32xbf16, #tpu.memory_space<vmem>>, vector<1x1x4x32xbf16>
      %75 = vector.shape_cast %74 : vector<1x1x4x32xbf16> to vector<4x32xbf16>
      %cst_60 = arith.constant dense<0.000000e+00> : vector<4x32xf32>
      %76 = tpu.matmul %75, %17, %cst_60 {dimension_numbers = #tpu.dot_dimension_numbers<[1], [0], [0], [1], [0, 0, 1, 1], [], []>} : vector<4x32xbf16>, vector<32x32xbf16>, vector<4x32xf32> -> vector<4x32xf32>
      %77 = arith.addf %70, %76 : vector<4x32xf32>
      %78 = arith.addi %0, %arg6 : i32
      %c2_i32_61 = arith.constant 2 : i32
      %79 = arith.addi %78, %c2_i32_61 : i32
      %c0_62 = arith.constant 0 : index
      %80 = arith.index_cast %79 : i32 to index
      %c2_63 = arith.constant 2 : index
      %c0_64 = arith.constant 0 : index
      %81 = vector.load %arg2[%c0_62, %80, %c2_63, %c0_64] : memref<1x6x6x32xbf16, #tpu.memory_space<vmem>>, vector<1x1x4x32xbf16>
      %82 = vector.shape_cast %81 : vector<1x1x4x32xbf16> to vector<4x32xbf16>
      %cst_65 = arith.constant dense<0.000000e+00> : vector<4x32xf32>
      %83 = tpu.matmul %82, %19, %cst_65 {dimension_numbers = #tpu.dot_dimension_numbers<[1], [0], [0], [1], [0, 0, 1, 1], [], []>} : vector<4x32xbf16>, vector<32x32xbf16>, vector<4x32xf32> -> vector<4x32xf32>
      %84 = arith.addf %77, %83 : vector<4x32xf32>
      %85 = vector.broadcast %1 : vector<1x32xf32> to vector<4x32xf32>
      %86 = arith.addf %84, %85 : vector<4x32xf32>
      %c0_66 = arith.constant 0 : index
      %87 = arith.index_cast %arg6 : i32 to index
      %c0_67 = arith.constant 0 : index
      %c0_68 = arith.constant 0 : index
      %88 = vector.load %arg5[%c0_66, %87, %c0_67, %c0_68] : memref<1x4x4x32xf32, #tpu.memory_space<vmem>>, vector<1x1x4x32xf32>
      %89 = vector.shape_cast %88 : vector<1x1x4x32xf32> to vector<4x32xf32>
      %90 = vector.shape_cast %86 : vector<4x32xf32> to vector<1x1x4x32xf32>
      tpu.vector_store %arg5[%c0_66, %87, %c0_67, %c0_68], %90 {strides = array<i32>} : memref<1x4x4x32xf32, #tpu.memory_space<vmem>>, vector<1x1x4x32xf32>,
    }
    %c4_i32_21 = arith.constant 4 : i32
    return
  }
  func.func @transform_0(%arg0: i32, %arg1: i32) -> (i32, i32, i32, i32) {
    %c0_i32 = arith.constant 0 : i32
    %c0_i32_0 = arith.constant 0 : i32
    %c0_i32_1 = arith.constant 0 : i32
    %c0_i32_2 = arith.constant 0 : i32
    return %arg0, %c0_i32, %c0_i32_0, %c0_i32_1 : i32, i32, i32, i32
  }
  func.func @transform_1(%arg0: i32, %arg1: i32) -> (i32, i32, i32) {
    %c0_i32 = arith.constant 0 : i32
    %c0_i32_0 = arith.constant 0 : i32
    %c0_i32_1 = arith.constant 0 : i32
    %c0_i32_2 = arith.constant 0 : i32
    return %c0_i32, %c0_i32_0, %c0_i32_1 : i32, i32, i32
  }
  func.func @transform_2(%arg0: i32, %arg1: i32) -> (i32, i32) {
    %c0_i32 = arith.constant 0 : i32
    %c0_i32_0 = arith.constant 0 : i32
    %c0_i32_1 = arith.constant 0 : i32
    return %c0_i32, %c0_i32_0 : i32, i32
  }
  func.func @transform_3(%arg0: i32, %arg1: i32) -> (i32, i32, i32, i32) {
    %c0_i32 = arith.constant 0 : i32
    %c0_i32_0 = arith.constant 0 : i32
    %c0_i32_1 = arith.constant 0 : i32
    return %arg0, %arg1, %c0_i32, %c0_i32_0 : i32, i32, i32, i32
  }
}

</mosaic_0001>

<bundles_post_ra>
// kernel: _lambda_.9
= control target key start
LH: loop header
LB: loop body
LE: loop exit
PB: predicated region body
PF: predicated region fallthrough
CT: control target
= control target key end

     0   :  { %s894_s12 = smov 0   ;;  %s896_s13 = smov 0   ;;  %s1029_s0 = inlined_call_operand.vmem [shape: bf16[8,17,17,3], index: 0, kind: input, shape index: {}]   ;;  %s1030_s1 = inlined_call_operand.vmem [shape: bf16[9,3,16], index: 1, kind: input, shape index: {}]   ;;  %s1031_s2 = inlined_call_operand.vmem [shape: f32[1,16], index: 2, kind: input, shape index: {}]   ;;  %s1032_s3 = inlined_call_operand.vmem [shape: bf16[2,16,16,16], index: 3, kind: output, shape index: {}]  }
   0x1   :  { %s898_s14 = smov 0  }
   0x2 LB: > { %s25_s15 = sadd.s32 1, %s863_s13  ;;  %p712_p0 = scmp.ge.s32.totalorder %s867_s14, 1  ;;  %s867_s14 = sphi %s898_s14, %s13_s14   ;;  %s863_s13 = sphi %s896_s13, %s1034_s13   ;;  %s859_s12 = sphi %s894_s12, %s1033_s12  }
   0x3   : > { %p27_p1 = scmp.ge.s32.totalorder %s25_s15, 2  ;;  %p153_p2 = scmp.lt.s32.totalorder %s867_s14, 3 }
   0x5   : > { %s1036_s15 = smov (%p27_p1, %s25_s15), 0  ;;  %p154_p3 = pnand %p712_p0, %p153_p2 }
   0x6   : > { %s713_s16 = sshll.u32 (!%p154_p3), %s859_s12, 2  ;;  %p191_p4 = scmp.lt.s32.totalorder (!%p154_p3), %s859_s12, 1 }
   0x7   : > { %157 = sbr.rel (%p154_p3) target bundleno = 209 (0xd1), region = 32  ;;  %p184_p5 = scmp.lt.s32.totalorder (!%p154_p3), %s713_s16, 7 }
   0x8   : > { %s972_s22 = smov (!%p154_p3), 0  }
   0xc   : > { %v915_v0 = vld [vmem:[%s1031_s2] sm:$0x1]  ;;  %v925_v2 = vld [vmem:[%s1030_s1 + $0x2] sm:$0x3]  ;;  %v930_v3 = vld [vmem:[%s1030_s1 + $0x4] sm:$0x3] }
   0xd   : > { %v920_v1 = vld [vmem:[%s1030_s1] sm:$0x3]  ;;  %s1038_s12 = smov (!%p191_p4, %s859_s12), 1  ;;  %v935_v4 = vld [vmem:[%s1030_s1 + $0x6] sm:$0x3]  ;;  %s1040_s16 = smov (!%p184_p5, %s713_s16), 7 }
   0xe   : > { %v940_v5 = vld [vmem:[%s1030_s1 + $0x8] sm:$0x3]  ;;  %v945_v6 = vld [vmem:[%s1030_s1 + $0xa] sm:$0x3]  ;;  %v950_v7 = vld [vmem:[%s1030_s1 + $0xc] sm:$0x3] }
   0xf   : > { %s795_s6 = sshll.u32 %s1038_s12, 7  ;;  %v955_v8 = vld [vmem:[%s1030_s1 + $0xe] sm:$0x3]  ;;  %v960_v9 = vld [vmem:[%s1030_s1 + $0x10] sm:$0x3]  ;;  %s807_s11 = smul.u32 204, %s1040_s16 }
  0x10   : > { %s965_s19 = scalar_lea.vmem %s1032_s3, %s795_s6 }
  0x11   : > { %s970_s12 = scalar_lea.vmem %s1029_s0, %s807_s11 }
  0x12 LB: >> { %vm247_vm0 = vcmask 1040384   ;;  %vm248_vm1 = vcmask 1041408   ;;  %v873_v10 = vmov 65535   ;;  %s796_s16 = smul.u32 12, %s871_s22  ;;  %vm243_vm2 = vcmask 23552   ;;  %s806_s24 = sshll.u32 %s871_s22, 3  ;;  %s871_s22 = sphi %s972_s22, %s226_s22  }
  0x13   : >> { %v249_v11 = vsel %vm247_vm0, 4294967295, %v873_v10  ;;  %vm304_vm3 = vsmask.f32 7424  ;;  %s577_s25 = scalar_lea.vmem %s965_s19, %s806_s24  ;;  %vm578_vm4 = vcmask 125952   ;;  %s226_s22 = sadd.s32 1, %s871_s22  }
  0x14   : >> { %v250_v12 = vsel %vm248_vm1, %v249_v11, 0  ;;  %s983_s23 = scalar_lea.vmem %s970_s12, %s796_s16  ;;  %p223_p6 = scmp.ge.s32.totalorder %s226_s22, 16  }
  0x15   : >> { %v252_v13 = vand.u32 %v925_v2, %v250_v12  ;;  %v277_v14 = vand.u32 %v250_v12, %v920_v1  ;;  %v353_v15 = vand.u32 %v935_v4, %v250_v12  ;;  %v385_v16 = vand.u32 %v940_v5, %v250_v12  ;;  %v798_v19 = vld [vmem:[%s983_s23 + $0xcc] sm:$0xff]  ;;  %v797_v20 = vld [vmem:[%s983_s23] sm:$0xff]  ;;  %v800_v21 = vld [vmem:[%s983_s23 + $0x198] sm:$0xff] }
  0x16   : >> { %v321_v17 = vand.u32 %v930_v3, %v250_v12  ;;  %v495_v18 = vand.u32 %v955_v8, %v250_v12  ;;  %v463_v22 = vand.u32 %v950_v7, %v250_v12  ;;  %v799_v23 = vld [vmem:[%s983_s23] sm:$0xff]  ;;  %v295_v24 = vld [vmem:[%s983_s23 + $0x8] sm:$0x1]  ;;  %v430_v25 = vand.u32 %v945_v6, %v250_v12  ;;  %v802_v28 = vld [vmem:[%s983_s23 + $0x198] sm:$0xff] }
  0x17   : >> { %261 = vmatpush.bf16.msra.mxu0 %v252_v13  ;;  %286 = vmatpush.bf16.msra.mxu1 %v277_v14  ;;  %v540_v26 = vand.u32 %v960_v9, %v250_v12  ;;  %v301_v27 = vunpack.c.l.b16 %v295_v24  ;;  %v762_v29 = vld [vmem:[%s983_s23 + $0x1a0] sm:$0x1]  ;;  %v306_v30 = vshrl.u32 %v799_v23, 16  ;;  %v308_v31 = vshll.u32 %v799_v23, 16  ;;  %v785_v46 = vld [vmem:[%s983_s23 + $0x14] sm:$0x1] }
  0x18   : >> { %362 = vmatpush.bf16.msra.mxu3 %v353_v15  ;;  %330 = vmatpush.bf16.msra.mxu2 %v321_v17  ;;  %v411_v32 = vunpack.c.l.b16 %v762_v29  ;;  %v417_v34 = vshll.u32 %v802_v28, 16  ;;  %v415_v40 = vshrl.u32 %v802_v28, 16  ;;  %v801_v47 = vld [vmem:[%s983_s23 + $0x264] sm:$0xff]  ;;  %v804_v48 = vld [vmem:[%s983_s23 + $0xd8] sm:$0xff]  ;;  %v805_v50 = vld [vmem:[%s983_s23 + $0xc] sm:$0xff]  ;;  %v521_v51 = vunpack.c.l.b16 %v785_v46 }
  0x19   : >> { %v303_v33 = vpack.c.b16 %v301_v27, %v301_v27  ;;  %v310_v35 = vrot.slane %v308_v31, 1  ;;  %v527_v53 = vshll.u32 %v805_v50, 16  ;;  %v803_v54 = vld [vmem:[%s983_s23 + $0xc] sm:$0xff]  ;;  %v525_v55 = vshrl.u32 %v805_v50, 16 }
  0x1a   : >> { %733 = vmatmul.msk.bf16.vlgmr.msra.gmra.mxu0 %vm243_vm2, %v798_v19  ;;  %738 = vmatmul.msk.bf16.vlgmr.msra.gmra.mxu1 %vm243_vm2, %v797_v20  ;;  %v413_v36 = vpack.c.b16 %v411_v32, %v411_v32  ;;  %v419_v41 = vrot.slane %v417_v34, 1  ;;  %v523_v52 = vpack.c.b16 %v521_v51, %v521_v51  ;;  %v559_v32 = vperm.slane %v915_v0, 0 }
  0x1b   : >> { %394 = vmatpush.bf16.msrb.mxu0 %v385_v16  ;;  %751 = vmatmul.msk.bf16.vlgmr.msra.gmra.mxu3 %vm243_vm2, %v800_v21  ;;  %v313_v37 = vshll.u32 %v303_v33, 16  ;;  %v311_v38 = vor.u32 %v310_v35, %v306_v30  ;;  %v529_v56 = vrot.slane %v527_v53, 1 }
  0x1c   : >> { %504 = vmatpush.bf16.msrb.mxu3 %v495_v18  ;;  %472 = vmatpush.bf16.msrb.mxu2 %v463_v22  ;;  %v422_v42 = vshll.u32 %v413_v36, 16  ;;  %v420_v44 = vor.u32 %v419_v41, %v415_v40  ;;  %v532_v57 = vshll.u32 %v523_v52, 16 }
  0x1d   : >> { %439 = vmatpush.bf16.msrb.mxu1 %v430_v25  ;;  %v315_v39 = vrot.slane %v313_v37, 1  ;;  %v530_v58 = vor.u32 %v529_v56, %v525_v55 }
  0x1e   : >> { %v424_v45 = vrot.slane %v422_v42, 1  ;;  %v534_v59 = vrot.slane %v532_v57, 1 }
  0x1f   : >> { %549 = vmatpush.bf16.msra.mxu0 %v540_v26  ;;  %v316_v43 = vsel %vm304_vm3, %v311_v38, %v315_v39 }
  0x20   : >> { %743 = vmatmul.msk.bf16.vlgmr.msra.gmra.mxu2 %vm243_vm2, %v316_v43  ;;  %v425_v49 = vsel %vm304_vm3, %v420_v44, %v424_v45  ;;  %v535_v60 = vsel %vm304_vm3, %v530_v58, %v534_v59 }
  0x2a   : >> { %759 = vmatmul.msk.bf16.vlgmr.msrb.gmra.mxu0 %vm243_vm2, %v801_v47  ;;  %767 = vmatmul.msk.bf16.vlgmr.msrb.gmra.mxu1 %vm243_vm2, %v425_v49 }
  0x2b   : >> { %782 = vmatmul.msk.bf16.vlgmr.msrb.gmra.mxu3 %vm243_vm2, %v804_v48 }
  0x30   : >> { %774 = vmatmul.msk.bf16.vlgmr.msrb.gmra.mxu2 %vm243_vm2, %v803_v54 }
  0x3a   : >> { %790 = vmatmul.msk.bf16.vlgmr.msra.gmra.mxu0 %vm243_vm2, %v535_v60 }
  0x97   : >> { %v263_v61 = vpop.f32.mrf.mxu0  ;;  %v288_v62 = vpop.f32.mrf.mxu1 }
  0x98   : >> { %v289_v12 = vadd.f32 %v288_v62, %v263_v61 }
  0x9e   : >> { %v364_v10 = vpop.f32.mrf.mxu3 }
  0x9f   : >> { %v265_v63 = vpop.f32.mrf.mxu0  ;;  %v290_v13 = vpop.f32.mrf.mxu1 }
  0xa0   : >> { %v291_v19 = vadd.f32 %v290_v13, %v265_v63 }
  0xa3   : >> { %v332_v11 = vpop.f32.mrf.mxu2 }
  0xa4   : >> { %v337_v15 = vadd.f32 %v332_v11, %v289_v12 }
  0xa6   : >> { %v366_v16 = vpop.f32.mrf.mxu3  ;;  %v369_v17 = vadd.f32 %v364_v10, %v337_v15 }
  0xa7   : >> { %v396_v14 = vpop.f32.mrf.mxu0  ;;  %v441_v20 = vpop.f32.mrf.mxu1 }
  0xa8   : >> { %v401_v22 = vadd.f32 %v396_v14, %v369_v17 }
  0xaa   : >> { %v446_v24 = vadd.f32 %v441_v20, %v401_v22 }
  0xab   : >> { %v334_v18 = vpop.f32.mrf.mxu2 }
  0xac   : >> { %v338_v23 = vadd.f32 %v334_v18, %v291_v19 }
  0xae   : >> { %v370_v25 = vadd.f32 %v366_v16, %v338_v23  ;;  %v506_v26 = vpop.f32.mrf.mxu3 }
  0xaf   : >> { %v398_v21 = vpop.f32.mrf.mxu0  ;;  %v443_v33 = vpop.f32.mrf.mxu1 }
  0xb0   : >> { %v402_v30 = vadd.f32 %v398_v21, %v370_v25 }
  0xb2   : >> { %v447_v35 = vadd.f32 %v443_v33, %v402_v30 }
  0xb3   : >> { %v474_v27 = vpop.f32.mrf.mxu2 }
  0xb4   : >> { %v479_v28 = vadd.f32 %v474_v27, %v446_v24 }
  0xb6   : >> { %v511_v31 = vadd.f32 %v506_v26, %v479_v28  ;;  %v508_v40 = vpop.f32.mrf.mxu3 }
  0xb7   : >> { %v551_v29 = vpop.f32.mrf.mxu0 }
  0xb8   : >> { %v556_v34 = vadd.f32 %v551_v29, %v511_v31 }
  0xba   : >> { %v561_v36 = vadd.f32 %v559_v32, %v556_v34 }
  0xbb   : >> { %v476_v37 = vpop.f32.mrf.mxu2 }
  0xbc   : >> { %v563_v38 = vadd.f32 3.0, %v561_v36  ;;  %v480_v39 = vadd.f32 %v476_v37, %v447_v35 }
  0xbe   : >> { %v565_v42 = vmax.f32 %v563_v38, 0.0  ;;  %v512_v43 = vadd.f32 %v508_v40, %v480_v39 }
  0xbf   : >> { %v553_v41 = vpop.f32.mrf.mxu0 }
  0xc0   : >> { %v567_v44 = vmin.f32 %v565_v42, 6.0  ;;  %v557_v45 = vadd.f32 %v553_v41, %v512_v43 }
  0xc2   : >> { %v569_v46 = vmul.f32 %v567_v44, %v561_v36  ;;  %v562_v47 = vadd.f32 %v559_v32, %v557_v45 }
  0xc4   : >> { %v571_v48 = vmul.f32 0.16666667, %v569_v46  ;;  %v564_v49 = vadd.f32 3.0, %v562_v47 }
  0xc6   : >> { %v573_v50 = vpack.c.bf16 %v571_v48, %v571_v48  ;;  %v566_v51 = vmax.f32 %v564_v49, 0.0 }
  0xc8   : >> { %579 = vst.msk [vmem:[%s577_s25] sm:$0xf] %vm578_vm4, %v573_v50  ;;  %v568_v52 = vmin.f32 %v566_v51, 6.0 }
  0xca   : >> { %v570_v53 = vmul.f32 %v568_v52, %v562_v47 }
  0xcc   : >> { %v572_v54 = vmul.f32 0.16666667, %v570_v53  ;;  %225 = sbr.rel (!%p223_p6) target bundleno = 18 (0x12), region = 84 }
  0xce   : >> { %v574_v55 = vpack.c.bf16 %v572_v54, %v572_v54 }
  0xd0   : >> { %580 = vst.msk [vmem:[%s577_s25 + $0x4] sm:$0xf] %vm578_vm4, %v574_v55 }
  0xd1 PF: > { %s13_s14 = sadd.s32 1, %s867_s14   ;;  %s1033_s12 = smov %s863_s13 }
  0xd2   : > { %p10_p7 = scmp.ge.s32.totalorder %s13_s14, 4   ;;  %s1034_s13 = smov %s1036_s15 }
  0xd4   :  { %12 = sbr.rel (!%p10_p7) target bundleno = 2 (0x2), region = 95 }

// kernel: _lambda_.10
= control target key start
LH: loop header
LB: loop body
LE: loop exit
PB: predicated region body
PF: predicated region fallthrough
CT: control target
= control target key end

     0   :  { %s851_s12 = smov 0   ;;  %s853_s13 = smov 0   ;;  %s1037_s0 = inlined_call_operand.vmem [shape: bf16[8,9,9,16], index: 0, kind: input, shape index: {}]   ;;  %s1038_s1 = inlined_call_operand.vmem [shape: bf16[9,16,24], index: 1, kind: input, shape index: {}]   ;;  %s1039_s2 = inlined_call_operand.vmem [shape: f32[1,24], index: 2, kind: input, shape index: {}]   ;;  %s1040_s3 = inlined_call_operand.vmem [shape: bf16[2,8,8,24], index: 3, kind: output, shape index: {}]  }
   0x1   :  { %s855_s14 = smov 0  }
   0x2 LB: > { %s25_s15 = sadd.s32 1, %s821_s13  ;;  %p647_p0 = scmp.ge.s32.totalorder %s825_s14, 1  ;;  %s825_s14 = sphi %s855_s14, %s13_s14   ;;  %s821_s13 = sphi %s853_s13, %s1042_s13   ;;  %s817_s12 = sphi %s851_s12, %s1041_s12  }
   0x3   : > { %p27_p1 = scmp.ge.s32.totalorder %s25_s15, 2  ;;  %p153_p2 = scmp.lt.s32.totalorder %s825_s14, 3 }
   0x5   : > { %s1044_s15 = smov (%p27_p1, %s25_s15), 0  ;;  %p154_p3 = pnand %p647_p0, %p153_p2 }
   0x6   : > { %s648_s16 = sshll.u32 (!%p154_p3), %s817_s12, 2  ;;  %p190_p4 = scmp.lt.s32.totalorder (!%p154_p3), %s817_s12, 1 }
   0x7   : > { %157 = sbr.rel (%p154_p3) target bundleno = 201 (0xc9), region = 32  ;;  %p183_p5 = scmp.lt.s32.totalorder (!%p154_p3), %s648_s16, 7 }
   0xc   : > { %v872_v0 = vld [vmem:[%s1039_s2] sm:$0x1]  ;;  %v882_v2 = vld [vmem:[%s1038_s1] sm:$0xf0]  ;;  %v887_v3 = vld [vmem:[%s1038_s1 + $0x8] sm:$0xf] }
   0xd   : > { %v877_v1 = vld [vmem:[%s1038_s1] sm:$0xf]  ;;  %s1046_s12 = smov (!%p190_p4, %s817_s12), 1  ;;  %v892_v4 = vld [vmem:[%s1038_s1 + $0x8] sm:$0xf0]  ;;  %s1048_s16 = smov (!%p183_p5, %s648_s16), 7 }
   0xe   : > { %v897_v5 = vld [vmem:[%s1038_s1 + $0x10] sm:$0xf]  ;;  %v902_v6 = vld [vmem:[%s1038_s1 + $0x10] sm:$0xf0]  ;;  %v907_v7 = vld [vmem:[%s1038_s1 + $0x18] sm:$0xf] }
   0xf   : > { %s748_s6 = sshll.u32 %s1046_s12, 5  ;;  %v912_v8 = vld [vmem:[%s1038_s1 + $0x18] sm:$0xf0]  ;;  %v917_v9 = vld [vmem:[%s1038_s1 + $0x20] sm:$0xf]  ;;  %s766_s11 = smul.u32 72, %s1048_s16 }
  0x10   : > { %s922_s19 = scalar_lea.vmem %s1040_s3, %s748_s6  ;;  %v927_v10 = vld [vmem:[%s1038_s1 + $0x20] sm:$0xf0]  ;;  %v932_v11 = vld [vmem:[%s1038_s1 + $0x28] sm:$0xf]  ;;  %v937_v12 = vld [vmem:[%s1038_s1 + $0x28] sm:$0xf0] }
  0x11   : > { %v942_v13 = vld [vmem:[%s1038_s1 + $0x30] sm:$0xf]  ;;  %v947_v14 = vld [vmem:[%s1038_s1 + $0x30] sm:$0xf0]  ;;  %s952_s30 = scalar_lea.vmem %s1037_s0, %s766_s11  ;;  %v957_v15 = vld [vmem:[%s1038_s1 + $0x38] sm:$0xf] }
  0x12   : > { %v962_v16 = vld [vmem:[%s1038_s1 + $0x38] sm:$0xf0]  ;;  %v967_v17 = vld [vmem:[%s1038_s1 + $0x40] sm:$0xf]  ;;  %v972_v18 = vld [vmem:[%s1038_s1 + $0x40] sm:$0xf0] }
  0x13   : > { %s974_s11 = smov 0  }
  0x14 LB: >> { %v676_v19 = vor.u32 %v892_v4, %v887_v3  ;;  %v681_v20 = vor.u32 %v882_v2, %v877_v1  ;;  %v698_v21 = vor.u32 %v912_v8, %v907_v7  ;;  %v706_v22 = vor.u32 %v927_v10, %v917_v9  ;;  %s758_s18 = sshll.u32 %s829_s11, 3  ;;  %s745_s21 = sshll.u32 %s829_s11, 2  ;;  %s829_s11 = sphi %s974_s11, %s233_s11  }
  0x15   : >> { %v690_v23 = vor.u32 %v902_v6, %v897_v5  ;;  %v732_v24 = vor.u32 %v962_v16, %v957_v15  ;;  %vm249_vm0 = vcmask 130048   ;;  %v724_v25 = vor.u32 %v947_v14, %v942_v13  ;;  %s995_s20 = scalar_lea.vmem %s952_s30, %s758_s18  ;;  %s519_s12 = scalar_lea.vmem %s922_s19, %s745_s21 }
  0x16   : >> { %260 = vmatpush.bf16.msra.mxu0 %v676_v19  ;;  %282 = vmatpush.bf16.msra.mxu1 %v681_v20  ;;  %v717_v26 = vor.u32 %v937_v12, %v932_v11  ;;  %v743_v27 = vor.u32 %v972_v18, %v967_v17  ;;  %v672_v28 = vld [vmem:[%s995_s20 + $0x48] sm:$0xf]  ;;  %v238_v29 = vld [vmem:[%s995_s20] sm:$0xf]  ;;  %v694_v30 = vld [vmem:[%s995_s20 + $0x90] sm:$0xf] }
  0x17   : >> { %345 = vmatpush.bf16.msra.mxu3 %v698_v21  ;;  %318 = vmatpush.bf16.msra.mxu2 %v690_v23  ;;  %v685_v31 = vld [vmem:[%s995_s20] sm:$0xf]  ;;  %v760_v32 = vld [vmem:[%s995_s20] sm:$0x10]  ;;  %v712_v34 = vld [vmem:[%s995_s20 + $0x90] sm:$0xf] }
  0x18   : >> { %v686_v33 = vor.u32 %v760_v32, %v685_v31  ;;  %v763_v35 = vld [vmem:[%s995_s20 + $0x90] sm:$0x10]  ;;  %v702_v45 = vld [vmem:[%s995_s20 + $0xd8] sm:$0xf]  ;;  %v738_v46 = vld [vmem:[%s995_s20 + $0x8] sm:$0xf] }
  0x19   : >> { %677 = vmatmul.msk.bf16.vlgmr.msra.gmra.mxu0 %vm249_vm0, %v672_v28  ;;  %682 = vmatmul.msk.bf16.vlgmr.msra.gmra.mxu1 %vm249_vm0, %v238_v29  ;;  %v713_v36 = vor.u32 %v763_v35, %v712_v34  ;;  %v765_v47 = vld [vmem:[%s995_s20 + $0x8] sm:$0x10]  ;;  %v728_v48 = vld [vmem:[%s995_s20 + $0x50] sm:$0xf]  ;;  %v720_v51 = vld [vmem:[%s995_s20 + $0x8] sm:$0xf] }
  0x1a   : >> { %372 = vmatpush.bf16.msrb.mxu0 %v706_v22  ;;  %699 = vmatmul.msk.bf16.vlgmr.msra.gmra.mxu3 %vm249_vm0, %v694_v30  ;;  %v296_v37 = vshrl.u32 %v686_v33, 16  ;;  %v298_v38 = vshll.u32 %v686_v33, 16  ;;  %v739_v49 = vor.u32 %v765_v47, %v738_v46  ;;  %v509_v33 = vperm.slane %v872_v0, 0  ;;  %s233_s11 = sadd.s32 1, %s829_s11  }
  0x1b   : >> { %464 = vmatpush.bf16.msrb.mxu3 %v732_v24  ;;  %437 = vmatpush.bf16.msrb.mxu2 %v724_v25  ;;  %v389_v39 = vshll.u32 %v713_v36, 16  ;;  %v387_v42 = vshrl.u32 %v713_v36, 16  ;;  %vm520_vm1 = vcmask 191488   ;;  %p230_p6 = scmp.ge.s32.totalorder %s233_s11, 8  }
  0x1c   : >> { %409 = vmatpush.bf16.msrb.mxu1 %v717_v26  ;;  %v300_v40 = vrot.slane %v298_v38, 1  ;;  %v481_v50 = vshll.u32 %v739_v49, 16  ;;  %v479_v52 = vshrl.u32 %v739_v49, 16 }
  0x1d   : >> { %v391_v43 = vrot.slane %v389_v39, 1 }
  0x1e   : >> { %501 = vmatpush.bf16.msra.mxu0 %v743_v27  ;;  %v301_v41 = vor.u32 %v300_v40, %v296_v37  ;;  %v483_v53 = vrot.slane %v481_v50, 1 }
  0x1f   : >> { %v392_v44 = vor.u32 %v391_v43, %v387_v42 }
  0x20   : >> { %691 = vmatmul.msk.bf16.vlgmr.msra.gmra.mxu2 %vm249_vm0, %v301_v41  ;;  %v484_v54 = vor.u32 %v483_v53, %v479_v52 }
  0x29   : >> { %707 = vmatmul.msk.bf16.vlgmr.msrb.gmra.mxu0 %vm249_vm0, %v702_v45  ;;  %718 = vmatmul.msk.bf16.vlgmr.msrb.gmra.mxu1 %vm249_vm0, %v392_v44 }
  0x2a   : >> { %733 = vmatmul.msk.bf16.vlgmr.msrb.gmra.mxu3 %vm249_vm0, %v728_v48 }
  0x30   : >> { %725 = vmatmul.msk.bf16.vlgmr.msrb.gmra.mxu2 %vm249_vm0, %v720_v51 }
  0x39   : >> { %744 = vmatmul.msk.bf16.vlgmr.msra.gmra.mxu0 %vm249_vm0, %v484_v54 }
  0x96   : >> { %v262_v55 = vpop.f32.mrf.mxu0  ;;  %v284_v56 = vpop.f32.mrf.mxu1 }
  0x97   : >> { %v285_v62 = vadd.f32 %v284_v56, %v262_v55 }
  0x9d   : >> { %v347_v57 = vpop.f32.mrf.mxu3 }
  0x9e   : >> { %v264_v58 = vpop.f32.mrf.mxu0  ;;  %v286_v59 = vpop.f32.mrf.mxu1 }
  0xa3   : >> { %v320_v60 = vpop.f32.mrf.mxu2 }
  0xa4   : >> { %v324_v20 = vadd.f32 %v320_v60, %v285_v62 }
  0xa5   : >> { %v349_v61 = vpop.f32.mrf.mxu3 }
  0xa6   : >> { %v374_v63 = vpop.f32.mrf.mxu0  ;;  %v411_v19 = vpop.f32.mrf.mxu1  ;;  %v351_v21 = vadd.f32 %v347_v57, %v324_v20 }
  0xa8   : >> { %v378_v26 = vadd.f32 %v374_v63, %v351_v21 }
  0xaa   : >> { %v415_v27 = vadd.f32 %v411_v19, %v378_v26 }
  0xab   : >> { %v322_v22 = vpop.f32.mrf.mxu2 }
  0xad   : >> { %v466_v23 = vpop.f32.mrf.mxu3 }
  0xae   : >> { %v376_v24 = vpop.f32.mrf.mxu0  ;;  %v413_v25 = vpop.f32.mrf.mxu1 }
  0xb3   : >> { %v439_v28 = vpop.f32.mrf.mxu2 }
  0xb4   : >> { %v443_v30 = vadd.f32 %v439_v28, %v415_v27 }
  0xb5   : >> { %v468_v29 = vpop.f32.mrf.mxu3 }
  0xb6   : >> { %v503_v31 = vpop.f32.mrf.mxu0  ;;  %v470_v32 = vadd.f32 %v466_v23, %v443_v30 }
  0xb8   : >> { %v507_v34 = vadd.f32 %v503_v31, %v470_v32 }
  0xba   : >> { %v511_v35 = vadd.f32 %v509_v33, %v507_v34 }
  0xbb   : >> { %v441_v36 = vpop.f32.mrf.mxu2 }
  0xbc   : >> { %v512_v37 = vadd.f32 3.0, %v511_v35 }
  0xbe   : >> { %v505_v38 = vpop.f32.mrf.mxu0  ;;  %v513_v39 = vmax.f32 %v512_v37, 0.0 }
  0xc0   : >> { %v514_v40 = vmin.f32 %v513_v39, 6.0 }
  0xc2   : >> { %v515_v41 = vmul.f32 %v514_v40, %v511_v35 }
  0xc4   : >> { %v516_v42 = vmul.f32 0.16666667, %v515_v41  ;;  %232 = sbr.rel (!%p230_p6) target bundleno = 20 (0x14), region = 84 }
  0xc6   : >> { %v517_v43 = vpack.c.bf16 %v516_v42, %v516_v42 }
  0xc8   : >> { %521 = vst.msk [vmem:[%s519_s12] sm:$0xf] %vm520_vm1, %v517_v43 }
  0xc9 PF: > { %s13_s14 = sadd.s32 1, %s825_s14   ;;  %s1041_s12 = smov %s821_s13 }
  0xca   : > { %p10_p7 = scmp.ge.s32.totalorder %s13_s14, 4   ;;  %s1042_s13 = smov %s1044_s15 }
  0xcc   :  { %12 = sbr.rel (!%p10_p7) target bundleno = 2 (0x2), region = 95 }

// kernel: _lambda_.13
= control target key start
LH: loop header
LB: loop body
LE: loop exit
PB: predicated region body
PF: predicated region fallthrough
CT: control target
= control target key end

     0   :  { %vm60_vm0 = vcmask 1043456   ;;  %vm53_vm1 = vcmask 326656   ;;  %vm87_vm2 = vcmask 257024   ;;  %s172_s1 = inlined_call_operand.vmem [shape: bf16[40,32], index: 1, kind: input, shape index: {}]   ;;  %s173_s2 = inlined_call_operand.vmem [shape: f32[1,32], index: 2, kind: input, shape index: {}]   ;;  %s174_s0 = inlined_call_operand.vmem [shape: bf16[32,40], index: 0, kind: input, shape index: {}]   ;;  %s175_s3 = inlined_call_operand.vmem [shape: bf16[32,32], index: 3, kind: output, shape index: {}]  }
   0x1   :  { %v23_v0 = vld [vmem:[%s172_s1 + $0x10] sm:$0xf]  ;;  %v117_v4 = vld [vmem:[%s172_s1 + $0x8] sm:$0xff]  ;;  %v116_v5 = vld [vmem:[%s172_s1] sm:$0xff] }
   0x2   :  { %v47_v1 = vunpack.c.l.b16 %v23_v0  ;;  %v114_v6 = vld [vmem:[%s174_s0] sm:$0xff]  ;;  %v115_v7 = vld [vmem:[%s174_s0 + $0x8] sm:$0xff] }
   0x3   :  { %v121_v8 = vld [vmem:[%s173_s2] ss:$0 sm:$0xff] }
   0x4   :  { %v50_v2 = vpack.c.b16 %v47_v1, %v47_v1 }
   0x6   :  { %v62_v3 = vsel %vm60_vm0, %v50_v2, 0 }
   0x7   :  { %69 = vmatpush.bf16.msra.mxu0 %v62_v3  ;;  %118 = vmatpush.bf16.msra.mxu1 %v62_v3 }
   0xb   :  { %70 = vmatpush.bf16.msra.mxu0 %v117_v4  ;;  %119 = vmatpush.bf16.msra.mxu1 %v117_v4 }
   0xf   :  { %71 = vmatpush.bf16.msra.mxu0 %v116_v5  ;;  %120 = vmatpush.bf16.msra.mxu1 %v116_v5 }
  0x12   :  { %112 = vmatmul.msk.bf16.vlgmr.msra.gmra.mxu0 %vm53_vm1, %v114_v6  ;;  %113 = vmatmul.msk.bf16.vlgmr.msra.gmra.mxu1 %vm53_vm1, %v115_v7 }
  0x8f   :  { %v73_v9 = vpop.f32.mrf.mxu0  ;;  %v78_v10 = vpop.f32.mrf.mxu1 }
  0x90   :  { %v74_v11 = vadd.f32 %v121_v8, %v73_v9  ;;  %v79_v12 = vadd.f32 %v121_v8, %v78_v10 }
  0x92   :  { %v83_v13 = vpack.c.bf16 %v74_v11, %v74_v11  ;;  %v85_v14 = vpack.c.bf16 %v79_v12, %v79_v12 }
  0x94   :  { %88 = vst.msk [vmem:[%s175_s3] sm:$0xf] %vm87_vm2, %v83_v13 }
  0x95   :  { %90 = vst.msk [vmem:[%s175_s3 + $0x8] sm:$0xf] %vm87_vm2, %v85_v14 }
  0x97   :  { %v75_v15 = vpop.f32.mrf.mxu0  ;;  %v80_v16 = vpop.f32.mrf.mxu1 }
  0x98   :  { %v76_v17 = vadd.f32 %v121_v8, %v75_v15  ;;  %v81_v18 = vadd.f32 %v121_v8, %v80_v16 }
  0x9a   :  { %v84_v19 = vpack.c.bf16 %v76_v17, %v76_v17  ;;  %v86_v20 = vpack.c.bf16 %v81_v18, %v81_v18 }
  0x9c   :  { %89 = vst.msk [vmem:[%s175_s3 + $0x4] sm:$0xf] %vm87_vm2, %v84_v19 }
  0x9d   :  { %91 = vst.msk [vmem:[%s175_s3 + $0xc] sm:$0xf] %vm87_vm2, %v86_v20 }

// kernel: _lambda_.11
= control target key start
LH: loop header
LB: loop body
LE: loop exit
PB: predicated region body
PF: predicated region fallthrough
CT: control target
= control target key end

     0   :  { %s881_s12 = smov 0   ;;  %s883_s13 = smov 0   ;;  %s1127_s0 = inlined_call_operand.vmem [shape: bf16[8,5,5,24], index: 0, kind: input, shape index: {}]   ;;  %s1128_s1 = inlined_call_operand.vmem [shape: bf16[9,24,40], index: 1, kind: input, shape index: {}]   ;;  %s1129_s2 = inlined_call_operand.vmem [shape: f32[1,40], index: 2, kind: input, shape index: {}]   ;;  %s1130_s3 = inlined_call_operand.vmem [shape: bf16[2,4,4,40], index: 3, kind: output, shape index: {}]  }
   0x1   :  { %s885_s14 = smov 0  }
   0x2 LB: > { %s25_s15 = sadd.s32 1, %s851_s13  ;;  %p696_p0 = scmp.ge.s32.totalorder %s855_s14, 1  ;;  %s855_s14 = sphi %s885_s14, %s13_s14   ;;  %s851_s13 = sphi %s883_s13, %s1132_s13   ;;  %s847_s12 = sphi %s881_s12, %s1131_s12  }
   0x3   : > { %p27_p1 = scmp.ge.s32.totalorder %s25_s15, 2  ;;  %p153_p2 = scmp.lt.s32.totalorder %s855_s14, 3 }
   0x5   : > { %s1134_s15 = smov (%p27_p1, %s25_s15), 0  ;;  %p154_p3 = pnand %p696_p0, %p153_p2 }
   0x6   : > { %s697_s16 = sshll.u32 (!%p154_p3), %s847_s12, 2  ;;  %p190_p4 = scmp.lt.s32.totalorder (!%p154_p3), %s847_s12, 1 }
   0x7   : > { %157 = sbr.rel (%p154_p3) target bundleno = 209 (0xd1), region = 32  ;;  %p183_p5 = scmp.lt.s32.totalorder (!%p154_p3), %s697_s16, 7 }
   0x8   : > { %s1049_s8 = smov (!%p154_p3), 0  }
   0xc   : > { %v902_v0 = vld [vmem:[%s1129_s2] sm:$0x1]  ;;  %v912_v2 = vld [vmem:[%s1128_s1] sm:$0xf0]  ;;  %v917_v3 = vld [vmem:[%s1128_s1 + $0x8] sm:$0xf] }
   0xd   : > { %v907_v1 = vld [vmem:[%s1128_s1] sm:$0xf]  ;;  %s1136_s12 = smov (!%p190_p4, %s847_s12), 1  ;;  %v922_v4 = vld [vmem:[%s1128_s1 + $0xc] sm:$0xf]  ;;  %s1138_s16 = smov (!%p183_p5, %s697_s16), 7 }
   0xe   : > { %v927_v5 = vld [vmem:[%s1128_s1 + $0xc] sm:$0xf0]  ;;  %v932_v6 = vld [vmem:[%s1128_s1 + $0x14] sm:$0xf]  ;;  %v937_v7 = vld [vmem:[%s1128_s1 + $0x18] sm:$0xf] }
   0xf   : > { %s786_s6 = sshll.u32 %s1136_s12, 3  ;;  %v942_v8 = vld [vmem:[%s1128_s1 + $0x18] sm:$0xf0]  ;;  %v947_v9 = vld [vmem:[%s1128_s1 + $0x20] sm:$0xf]  ;;  %s796_s11 = smul.u32 20, %s1138_s16 }
  0x10   : > { %s952_s19 = scalar_lea.vmem %s1130_s3, %s786_s6  ;;  %v957_v10 = vld [vmem:[%s1128_s1 + $0x24] sm:$0xf]  ;;  %v962_v11 = vld [vmem:[%s1128_s1 + $0x24] sm:$0xf0]  ;;  %v967_v12 = vld [vmem:[%s1128_s1 + $0x2c] sm:$0xf] }
  0x11   : > { %v972_v13 = vld [vmem:[%s1128_s1 + $0x30] sm:$0xf]  ;;  %v977_v14 = vld [vmem:[%s1128_s1 + $0x30] sm:$0xf0]  ;;  %s982_s30 = scalar_lea.vmem %s1127_s0, %s796_s11  ;;  %v987_v15 = vld [vmem:[%s1128_s1 + $0x38] sm:$0xf] }
  0x12   : > { %v992_v16 = vld [vmem:[%s1128_s1 + $0x3c] sm:$0xf]  ;;  %v997_v17 = vld [vmem:[%s1128_s1 + $0x3c] sm:$0xf0]  ;;  %v1002_v18 = vld [vmem:[%s1128_s1 + $0x44] sm:$0xf] }
  0x13   : > { %v1007_v19 = vld [vmem:[%s1128_s1 + $0x48] sm:$0xf]  ;;  %v1012_v20 = vld [vmem:[%s1128_s1 + $0x48] sm:$0xf0]  ;;  %v1017_v21 = vld [vmem:[%s1128_s1 + $0x50] sm:$0xf] }
  0x14   : > { %v1022_v22 = vld [vmem:[%s1128_s1 + $0x54] sm:$0xf]  ;;  %v1027_v23 = vld [vmem:[%s1128_s1 + $0x54] sm:$0xf0]  ;;  %v1032_v24 = vld [vmem:[%s1128_s1 + $0x5c] sm:$0xf] }
  0x15   : > { %v1037_v25 = vld [vmem:[%s1128_s1 + $0x60] sm:$0xf]  ;;  %v1042_v26 = vld [vmem:[%s1128_s1 + $0x60] sm:$0xf0]  ;;  %v1047_v27 = vld [vmem:[%s1128_s1 + $0x68] sm:$0xf] }
  0x16 LB: >> { %v256_v28 = vunpack.c.l.b16 %v932_v6  ;;  %v286_v29 = vunpack.c.l.b16 %v917_v3  ;;  %v358_v30 = vunpack.c.l.b16 %v967_v12  ;;  %vm264_vm0 = vcmask 1043456   ;;  %s725_s9 = sshll.u32 %s859_s8, 2  ;;  %s783_s17 = sshll.u32 %s859_s8, 1  ;;  %s859_s8 = sphi %s1049_s8, %s242_s8  }
  0x17   : >> { %v325_v31 = vunpack.c.l.b16 %v947_v9  ;;  %v731_v36 = vor.u32 %v927_v5, %v922_v4  ;;  %s1062_s10 = scalar_lea.vmem %s982_s30, %s725_s9  ;;  %v391_v37 = vunpack.c.l.b16 %v987_v15  ;;  %v464_v38 = vunpack.c.l.b16 %v1017_v21  ;;  %s572_s11 = scalar_lea.vmem %s952_s19, %s783_s17 }
  0x18   : >> { %v258_v32 = vpack.c.b16 %v256_v28, %v256_v28  ;;  %v288_v33 = vpack.c.b16 %v286_v29, %v286_v29  ;;  %v360_v34 = vpack.c.b16 %v358_v30, %v358_v30  ;;  %v736_v42 = vor.u32 %v912_v2, %v907_v1  ;;  %v309_v49 = vld [vmem:[%s1062_s10] sm:$0x7]  ;;  %v757_v54 = vld [vmem:[%s1062_s10 + $0x28] sm:$0x7]  ;;  %v727_v59 = vld [vmem:[%s1062_s10 + $0x14] sm:$0x3] }
  0x19   : >> { %v327_v35 = vpack.c.b16 %v325_v31, %v325_v31  ;;  %v393_v44 = vpack.c.b16 %v391_v37, %v391_v37  ;;  %v466_v45 = vpack.c.b16 %v464_v38, %v464_v38  ;;  %v497_v46 = vunpack.c.l.b16 %v1032_v24  ;;  %v246_v60 = vld [vmem:[%s1062_s10] sm:$0x3]  ;;  %v744_v62 = vld [vmem:[%s1062_s10 + $0x28] sm:$0x3]  ;;  %s242_s8 = sadd.s32 1, %s859_s8  }
  0x1a   : >> { %v266_v39 = vsel %vm264_vm0, %v258_v32, 0  ;;  %v294_v40 = vsel %vm264_vm0, %v288_v33, 0  ;;  %v366_v41 = vsel %vm264_vm0, %v360_v34, 0  ;;  %v748_v47 = vor.u32 %v962_v11, %v957_v10  ;;  %p239_p6 = scmp.ge.s32.totalorder %s242_s8, 4  }
  0x1b   : >> { %274 = vmatpush.bf16.msra.mxu0 %v266_v39  ;;  %302 = vmatpush.bf16.msra.mxu1 %v294_v40  ;;  %v333_v43 = vsel %vm264_vm0, %v327_v35, 0  ;;  %v741_v48 = vor.u32 %v942_v8, %v937_v7  ;;  %v431_v50 = vunpack.c.l.b16 %v1002_v18  ;;  %v399_v51 = vsel %vm264_vm0, %v393_v44, 0  ;;  %v777_v44 = vld [vmem:[%s1062_s10 + $0x4] sm:$0x7] }
  0x1c   : >> { %374 = vmatpush.bf16.msra.mxu3 %v366_v41  ;;  %341 = vmatpush.bf16.msra.mxu2 %v333_v43  ;;  %v311_v52 = vunpack.c.l.b16 %v309_v49  ;;  %v499_v53 = vpack.c.b16 %v497_v46, %v497_v46  ;;  %v472_v55 = vsel %vm264_vm0, %v466_v45, 0  ;;  %v537_v57 = vunpack.c.l.b16 %v1047_v27 }
  0x1d   : >> { %v433_v56 = vpack.c.b16 %v431_v50, %v431_v50  ;;  %v417_v58 = vunpack.c.l.b16 %v757_v54  ;;  %vm260_vm1 = vcmask 195584   ;;  %v755_v63 = vor.u32 %v977_v14, %v972_v13  ;;  %v764_v50 = vld [vmem:[%s1062_s10 + $0x4] sm:$0x3] }
  0x1e   : >> { %v312_v61 = vpack.c.b16 %v311_v52, %v311_v52  ;;  %v539_v29 = vpack.c.b16 %v537_v57, %v537_v57  ;;  %v505_v32 = vsel %vm264_vm0, %v499_v53, 0  ;;  %v768_v33 = vor.u32 %v1012_v20, %v1007_v19 }
  0x1f   : >> { %275 = vmatpush.bf16.msra.mxu0 %v731_v36  ;;  %303 = vmatpush.bf16.msra.mxu1 %v736_v42  ;;  %v439_v28 = vsel %vm264_vm0, %v433_v56, 0  ;;  %v418_v34 = vpack.c.b16 %v417_v58, %v417_v58  ;;  %v761_v36 = vor.u32 %v997_v17, %v992_v16  ;;  %v775_v38 = vor.u32 %v1027_v23, %v1022_v22 }
  0x20   : >> { %375 = vmatpush.bf16.msra.mxu3 %v748_v47  ;;  %342 = vmatpush.bf16.msra.mxu2 %v741_v48  ;;  %v314_v30 = vshrl.u32 %v312_v61, 16  ;;  %v316_v31 = vshll.u32 %v312_v61, 16  ;;  %v545_v37 = vsel %vm264_vm0, %v539_v29, 0  ;;  %v781_v41 = vor.u32 %v1042_v26, %v1037_v25  ;;  %v751_v47 = vld [vmem:[%s1062_s10 + $0x3c] sm:$0x3] }
  0x21   : >> { %v422_v40 = vshll.u32 %v418_v34, 16  ;;  %v420_v42 = vshrl.u32 %v418_v34, 16  ;;  %v523_v46 = vunpack.c.l.b16 %v777_v44  ;;  %v771_v48 = vld [vmem:[%s1062_s10 + $0x18] sm:$0x3]  ;;  %vm573_vm2 = vcmask 320512  }
  0x22   : >> { %732 = vmatmul.msk.bf16.vlgmr.msra.gmra.mxu0 %vm260_vm1, %v727_v59  ;;  %737 = vmatmul.msk.bf16.vlgmr.msra.gmra.mxu1 %vm260_vm1, %v246_v60  ;;  %v318_v35 = vrot.slane %v316_v31, 1 }
  0x23   : >> { %407 = vmatpush.bf16.msrb.mxu0 %v399_v51  ;;  %749 = vmatmul.msk.bf16.vlgmr.msra.gmra.mxu3 %vm260_vm1, %v744_v62  ;;  %v424_v43 = vrot.slane %v422_v40, 1  ;;  %v524_v49 = vpack.c.b16 %v523_v46, %v523_v46 }
  0x24   : >> { %480 = vmatpush.bf16.msrb.mxu2 %v472_v55  ;;  %447 = vmatpush.bf16.msrb.mxu1 %v439_v28  ;;  %v319_v39 = vor.u32 %v318_v35, %v314_v30 }
  0x25   : >> { %513 = vmatpush.bf16.msrb.mxu3 %v505_v32  ;;  %v425_v45 = vor.u32 %v424_v43, %v420_v42  ;;  %v528_v51 = vshll.u32 %v524_v49, 16  ;;  %v526_v52 = vshrl.u32 %v524_v49, 16 }
  0x26   : >> { %742 = vmatmul.msk.bf16.vlgmr.msra.gmra.mxu2 %vm260_vm1, %v319_v39 }
  0x27   : >> { %408 = vmatpush.bf16.msrb.mxu0 %v755_v63  ;;  %v530_v53 = vrot.slane %v528_v51, 1 }
  0x28   : >> { %481 = vmatpush.bf16.msrb.mxu2 %v768_v33  ;;  %448 = vmatpush.bf16.msrb.mxu1 %v761_v36 }
  0x29   : >> { %514 = vmatpush.bf16.msrb.mxu3 %v775_v38  ;;  %v531_v54 = vor.u32 %v530_v53, %v526_v52 }
  0x2b   : >> { %553 = vmatpush.bf16.msra.mxu0 %v545_v37 }
  0x2f   : >> { %554 = vmatpush.bf16.msra.mxu0 %v781_v41  ;;  %v562_v41 = vperm.slane %v902_v0, 0 }
  0x32   : >> { %756 = vmatmul.msk.bf16.vlgmr.msrb.gmra.mxu0 %vm260_vm1, %v751_v47  ;;  %762 = vmatmul.msk.bf16.vlgmr.msrb.gmra.mxu1 %vm260_vm1, %v425_v45 }
  0x33   : >> { %776 = vmatmul.msk.bf16.vlgmr.msrb.gmra.mxu3 %vm260_vm1, %v771_v48 }
  0x36   : >> { %769 = vmatmul.msk.bf16.vlgmr.msrb.gmra.mxu2 %vm260_vm1, %v764_v50 }
  0x42   : >> { %782 = vmatmul.msk.bf16.vlgmr.msra.gmra.mxu0 %vm260_vm1, %v531_v54 }
  0x9f   : >> { %v277_v55 = vpop.f32.mrf.mxu0  ;;  %v305_v56 = vpop.f32.mrf.mxu1 }
  0xa0   : >> { %v306_v61 = vadd.f32 %v305_v56, %v277_v55 }
  0xa6   : >> { %v377_v57 = vpop.f32.mrf.mxu3 }
  0xa7   : >> { %v279_v58 = vpop.f32.mrf.mxu0  ;;  %v307_v59 = vpop.f32.mrf.mxu1 }
  0xa9   : >> { %v344_v60 = vpop.f32.mrf.mxu2 }
  0xaa   : >> { %v348_v63 = vadd.f32 %v344_v60, %v306_v61 }
  0xac   : >> { %v381_v31 = vadd.f32 %v377_v57, %v348_v63 }
  0xae   : >> { %v379_v62 = vpop.f32.mrf.mxu3 }
  0xaf   : >> { %v410_v28 = vpop.f32.mrf.mxu0  ;;  %v450_v29 = vpop.f32.mrf.mxu1 }
  0xb0   : >> { %v414_v32 = vadd.f32 %v410_v28, %v381_v31 }
  0xb1   : >> { %v346_v30 = vpop.f32.mrf.mxu2 }
  0xb2   : >> { %v454_v36 = vadd.f32 %v450_v29, %v414_v32 }
  0xb6   : >> { %v516_v33 = vpop.f32.mrf.mxu3 }
  0xb7   : >> { %v412_v34 = vpop.f32.mrf.mxu0  ;;  %v452_v35 = vpop.f32.mrf.mxu1 }
  0xb9   : >> { %v483_v37 = vpop.f32.mrf.mxu2 }
  0xba   : >> { %v487_v38 = vadd.f32 %v483_v37, %v454_v36 }
  0xbc   : >> { %v520_v40 = vadd.f32 %v516_v33, %v487_v38 }
  0xbe   : >> { %v518_v39 = vpop.f32.mrf.mxu3 }
  0xbf   : >> { %v556_v42 = vpop.f32.mrf.mxu0 }
  0xc0   : >> { %v560_v43 = vadd.f32 %v556_v42, %v520_v40 }
  0xc1   : >> { %v485_v45 = vpop.f32.mrf.mxu2 }
  0xc2   : >> { %v564_v44 = vadd.f32 %v562_v41, %v560_v43 }
  0xc4   : >> { %v565_v46 = vadd.f32 3.0, %v564_v44 }
  0xc6   : >> { %v566_v47 = vmax.f32 %v565_v46, 0.0 }
  0xc7   : >> { %v558_v48 = vpop.f32.mrf.mxu0 }
  0xc8   : >> { %v567_v49 = vmin.f32 %v566_v47, 6.0 }
  0xca   : >> { %v568_v50 = vmul.f32 %v567_v49, %v564_v44 }
  0xcc   : >> { %v569_v51 = vmul.f32 0.16666667, %v568_v50  ;;  %241 = sbr.rel (!%p239_p6) target bundleno = 22 (0x16), region = 84 }
  0xce   : >> { %v570_v52 = vpack.c.bf16 %v569_v51, %v569_v51 }
  0xd0   : >> { %574 = vst.msk [vmem:[%s572_s11] sm:$0x3] %vm573_vm2, %v570_v52 }
  0xd1 PF: > { %s13_s14 = sadd.s32 1, %s855_s14   ;;  %s1131_s12 = smov %s851_s13 }
  0xd2   : > { %p10_p7 = scmp.ge.s32.totalorder %s13_s14, 4   ;;  %s1132_s13 = smov %s1134_s15 }
  0xd4   :  { %12 = sbr.rel (!%p10_p7) target bundleno = 2 (0x2), region = 95 }

// kernel: _lambda_.12
= control target key start
LH: loop header
LB: loop body
LE: loop exit
PB: predicated region body
PF: predicated region fallthrough
CT: control target
= control target key end

     0   :  { %s992_s12 = smov 0   ;;  %s994_s13 = smov 0   ;;  %s1346_s0 = inlined_call_operand.vmem [shape: bf16[2,6,6,40], index: 0, kind: input, shape index: {}]   ;;  %s1347_s1 = inlined_call_operand.vmem [shape: bf16[9,40,40], index: 1, kind: input, shape index: {}]   ;;  %s1348_s2 = inlined_call_operand.vmem [shape: f32[1,40], index: 2, kind: input, shape index: {}]   ;;  %s1349_s3 = inlined_call_operand.vmem [shape: bf16[2,4,4,40], index: 3, kind: output, shape index: {}]  }
   0x1   :  { %s996_s14 = smov 0  }
   0x2 LB: > { %s25_s15 = sadd.s32 1, %s962_s13  ;;  %p751_p0 = scmp.ge.s32.totalorder %s966_s14, 1  ;;  %s966_s14 = sphi %s996_s14, %s13_s14   ;;  %s962_s13 = sphi %s994_s13, %s1363_s13   ;;  %s958_s12 = sphi %s992_s12, %s1362_s12  }
   0x3   : > { %p27_p1 = scmp.ge.s32.totalorder %s25_s15, 2  ;;  %p151_p2 = scmp.lt.s32.totalorder %s966_s14, 3 }
   0x5   : > { %s1365_s15 = smov (%p27_p1, %s25_s15), 0  ;;  %p152_p3 = pnand %p751_p0, %p151_p2 }
   0x6   : > { %p179_p4 = scmp.lt.s32.totalorder (!%p152_p3), %s958_s12, 1  ;;  %s1250_s25 = smov (!%p152_p3), 0  }
   0x7   : > { %155 = sbr.rel (%p152_p3) target bundleno = 221 (0xdd), region = 32 }
   0xc   : > { %v1013_v0 = vld [vmem:[%s1348_s2] sm:$0x1]  ;;  %v1023_v2 = vld [vmem:[%s1347_s1] sm:$0xf0]  ;;  %v1028_v3 = vld [vmem:[%s1347_s1 + $0x8] sm:$0xf] }
   0xd   : > { %v1018_v1 = vld [vmem:[%s1347_s1] sm:$0xf]  ;;  %1351 = vst [vmem:[#allocation3_spill] sm:$0xff] %v1023_v2  ;;  %v1033_v4 = vld [vmem:[%s1347_s1 + $0x8] sm:$0xf0]  ;;  %s1367_s12 = smov (!%p179_p4, %s958_s12), 1 }
   0xe   : > { %1350 = vst [vmem:[#allocation2_spill] sm:$0xff] %v1018_v1  ;;  %v1038_v5 = vld [vmem:[%s1347_s1 + $0x10] sm:$0xf]  ;;  %v1043_v6 = vld [vmem:[%s1347_s1 + $0x14] sm:$0xf]  ;;  %s907_s9 = smul.u32 24, %s1367_s12 }
   0xf   : > { %1352 = vst [vmem:[#allocation4_spill] sm:$0xff] %v1028_v3  ;;  %v1048_v7 = vld [vmem:[%s1347_s1 + $0x14] sm:$0xf0]  ;;  %v1053_v8 = vld [vmem:[%s1347_s1 + $0x1c] sm:$0xf]  ;;  %s888_s10 = sshll.u32 %s1367_s12, 3 }
  0x10   : > { %1353 = vst [vmem:[#allocation5_spill] sm:$0xff] %v1033_v4  ;;  %v1058_v9 = vld [vmem:[%s1347_s1 + $0x1c] sm:$0xf0]  ;;  %v1063_v10 = vld [vmem:[%s1347_s1 + $0x24] sm:$0xf]  ;;  %s1073_s21 = scalar_lea.vmem %s1349_s3, %s888_s10  ;;  %s1093_s29 = scalar_lea.vmem %s1346_s0, %s907_s9 }
  0x11   : > { %1354 = vst [vmem:[#allocation6_spill] sm:$0xff] %v1038_v5  ;;  %v1068_v11 = vld [vmem:[%s1347_s1 + $0x28] sm:$0xf]  ;;  %v1078_v12 = vld [vmem:[%s1347_s1 + $0x28] sm:$0xf0] }
  0x12   : > { %1355 = vst [vmem:[#allocation7_spill] sm:$0xff] %v1043_v6  ;;  %v1083_v13 = vld [vmem:[%s1347_s1 + $0x30] sm:$0xf]  ;;  %v1088_v14 = vld [vmem:[%s1347_s1 + $0x30] sm:$0xf0] }
  0x13   : > { %v1098_v15 = vld [vmem:[%s1347_s1 + $0x38] sm:$0xf]  ;;  %v1103_v16 = vld [vmem:[%s1347_s1 + $0x3c] sm:$0xf]  ;;  %v1108_v17 = vld [vmem:[%s1347_s1 + $0x3c] sm:$0xf0] }
  0x14   : > { %v1113_v18 = vld [vmem:[%s1347_s1 + $0x44] sm:$0xf]  ;;  %v1118_v19 = vld [vmem:[%s1347_s1 + $0x44] sm:$0xf0]  ;;  %v1123_v20 = vld [vmem:[%s1347_s1 + $0x4c] sm:$0xf] }
  0x15   : > { %v1128_v21 = vld [vmem:[%s1347_s1 + $0x50] sm:$0xf]  ;;  %v1133_v22 = vld [vmem:[%s1347_s1 + $0x50] sm:$0xf0]  ;;  %v1138_v23 = vld [vmem:[%s1347_s1 + $0x58] sm:$0xf] }
  0x16   : > { %v1143_v24 = vld [vmem:[%s1347_s1 + $0x58] sm:$0xf0]  ;;  %v1148_v25 = vld [vmem:[%s1347_s1 + $0x60] sm:$0xf]  ;;  %v1153_v26 = vld [vmem:[%s1347_s1 + $0x64] sm:$0xf] }
  0x17   : > { %v1158_v27 = vld [vmem:[%s1347_s1 + $0x64] sm:$0xf0]  ;;  %v1163_v28 = vld [vmem:[%s1347_s1 + $0x6c] sm:$0xf]  ;;  %v1168_v29 = vld [vmem:[%s1347_s1 + $0x6c] sm:$0xf0] }
  0x18   : > { %v1173_v30 = vld [vmem:[%s1347_s1 + $0x74] sm:$0xf]  ;;  %v1178_v31 = vld [vmem:[%s1347_s1 + $0x78] sm:$0xf]  ;;  %v1183_v32 = vld [vmem:[%s1347_s1 + $0x78] sm:$0xf0] }
  0x19   : > { %v1188_v33 = vld [vmem:[%s1347_s1 + $0x80] sm:$0xf]  ;;  %v1193_v34 = vld [vmem:[%s1347_s1 + $0x80] sm:$0xf0]  ;;  %v1198_v35 = vld [vmem:[%s1347_s1 + $0x88] sm:$0xf] }
  0x1a   : > { %v1203_v36 = vld [vmem:[%s1347_s1 + $0x8c] sm:$0xf]  ;;  %v1208_v37 = vld [vmem:[%s1347_s1 + $0x8c] sm:$0xf0]  ;;  %v1213_v38 = vld [vmem:[%s1347_s1 + $0x94] sm:$0xf] }
  0x1b   : > { %v1218_v39 = vld [vmem:[%s1347_s1 + $0x94] sm:$0xf0]  ;;  %v1223_v40 = vld [vmem:[%s1347_s1 + $0x9c] sm:$0xf]  ;;  %v1228_v41 = vld [vmem:[%s1347_s1 + $0xa0] sm:$0xf] }
  0x1c   : > { %v1233_v42 = vld [vmem:[%s1347_s1 + $0xa0] sm:$0xf0]  ;;  %v1238_v43 = vld [vmem:[%s1347_s1 + $0xa8] sm:$0xf]  ;;  %v1243_v44 = vld [vmem:[%s1347_s1 + $0xa8] sm:$0xf0] }
  0x1d   : > { %v1248_v45 = vld [vmem:[%s1347_s1 + $0xb0] sm:$0xf] }
  0x1e LB: >> { %v280_v46 = vunpack.c.l.b16 %v1063_v10  ;;  %v1356_v5 = vld [vmem:[#allocation6_spill] sm:$0xff]  ;;  %v355_v48 = vunpack.c.l.b16 %v1098_v15  ;;  %vm290_vm0 = vcmask 1043456   ;;  %v394_v49 = vunpack.c.l.b16 %v1123_v20  ;;  %s795_s26 = sshll.u32 %s970_s25, 2  ;;  %v1357_v3 = vld [vmem:[#allocation4_spill] sm:$0xff]  ;;  %v1358_v4 = vld [vmem:[#allocation5_spill] sm:$0xff]  ;;  %s885_s28 = sshll.u32 %s970_s25, 1  ;;  %s970_s25 = sphi %s1250_s25, %s255_s25  }
  0x1f   : >> { %v316_v47 = vunpack.c.l.b16 %v1356_v5  ;;  %s1261_s27 = scalar_lea.vmem %s1093_s29, %s795_s26  ;;  %v803_v57 = vor.u32 %v1058_v9, %v1053_v8  ;;  %v812_v60 = vor.u32 %v1358_v4, %v1357_v3  ;;  %v440_v63 = vunpack.c.l.b16 %v1148_v25  ;;  %v1359_v6 = vld [vmem:[#allocation7_spill] sm:$0xff]  ;;  %v1360_v1 = vld [vmem:[#allocation2_spill] sm:$0xff]  ;;  %s642_s30 = scalar_lea.vmem %s1073_s21, %s885_s28 }
  0x20   : >> { %v283_v50 = vpack.c.b16 %v280_v46, %v280_v46  ;;  %v358_v52 = vpack.c.b16 %v355_v48, %v355_v48  ;;  %v397_v53 = vpack.c.b16 %v394_v49, %v394_v49  ;;  %v260_v58 = vld [vmem:[%s1261_s27] sm:$0x7]  ;;  %v821_v46 = vor.u32 %v1088_v14, %v1083_v13  ;;  %v1361_v2 = vld [vmem:[#allocation3_spill] sm:$0xff]  ;;  %v834_v3 = vld [vmem:[%s1261_s27 + $0x4] sm:$0x7]  ;;  %s255_s25 = sadd.s32 1, %s970_s25  }
  0x21   : >> { %v319_v51 = vpack.c.b16 %v316_v47, %v316_v47  ;;  %v262_v61 = vunpack.c.l.b16 %v260_v58  ;;  %v341_v62 = vld [vmem:[%s1261_s27] sm:$0x6]  ;;  %v832_v47 = vor.u32 %v1118_v19, %v1113_v18  ;;  %v519_v49 = vunpack.c.l.b16 %v1198_v35  ;;  %p252_p5 = scmp.ge.s32.totalorder %s255_s25, 4  }
  0x22   : >> { %v292_v54 = vsel %vm290_vm0, %v283_v50, 0  ;;  %v365_v56 = vsel %vm290_vm0, %v358_v52, 0  ;;  %v404_v59 = vsel %vm290_vm0, %v397_v53, 0  ;;  %v343_v48 = vunpack.c.l.b16 %v341_v62 }
  0x23   : >> { %v326_v55 = vsel %vm290_vm0, %v319_v51, 0  ;;  %299 = vmatpush.bf16.msra.mxu0 %v292_v54  ;;  %372 = vmatpush.bf16.msra.mxu2 %v365_v56  ;;  %v263_v50 = vpack.c.b16 %v262_v61, %v262_v61  ;;  %v565_v51 = vunpack.c.l.b16 %v1223_v40  ;;  %v480_v52 = vunpack.c.l.b16 %v1173_v30 }
  0x24   : >> { %333 = vmatpush.bf16.msra.mxu1 %v326_v55  ;;  %411 = vmatpush.bf16.msra.mxu3 %v404_v59  ;;  %v799_v53 = vor.u32 %v1048_v7, %v1359_v6  ;;  %v443_v54 = vpack.c.b16 %v440_v63, %v440_v63  ;;  %v522_v55 = vpack.c.b16 %v519_v49, %v519_v49  ;;  %v865_v63 = vld [vmem:[%s1261_s27 + $0x8] sm:$0x7]  ;;  %vm286_vm1 = vcmask 326656  }
  0x25   : >> { %v808_v56 = vor.u32 %v1361_v2, %v1360_v1  ;;  %v265_v58 = vshrl.u32 %v263_v50, 16  ;;  %v267_v59 = vshll.u32 %v263_v50, 16  ;;  %v344_v62 = vpack.c.b16 %v343_v48, %v343_v48 }
  0x26   : >> { %v817_v61 = vor.u32 %v1078_v12, %v1068_v11  ;;  %v828_v4 = vor.u32 %v1108_v17, %v1103_v16  ;;  %v450_v1 = vsel %vm290_vm0, %v443_v54, 0  ;;  %v529_v48 = vsel %vm290_vm0, %v522_v55, 0  ;;  %v844_v55 = vld [vmem:[%s1261_s27 + $0x4] sm:$0x6] }
  0x27   : >> { %300 = vmatpush.bf16.msra.mxu0 %v803_v57  ;;  %373 = vmatpush.bf16.msra.mxu2 %v821_v46  ;;  %v269_v49 = vrot.slane %v267_v59, 1  ;;  %v568_v57 = vpack.c.b16 %v565_v51, %v565_v51  ;;  %v422_v50 = vunpack.c.l.b16 %v834_v3  ;;  %v345_v2 = vrot.slane %v344_v62, 1  ;;  %v824_v59 = vld [vmem:[%s1261_s27 + $0x4] sm:$0x3] }
  0x28   : >> { %334 = vmatpush.bf16.msra.mxu1 %v812_v60  ;;  %412 = vmatpush.bf16.msra.mxu3 %v832_v47  ;;  %v483_v60 = vpack.c.b16 %v480_v52, %v480_v52  ;;  %v259_v47 = vld [vmem:[%s1261_s27] sm:$0x3]  ;;  %v547_v5 = vunpack.c.l.b16 %v865_v63  ;;  %v605_v6 = vunpack.c.l.b16 %v1248_v45  ;;  %v842_v52 = vor.u32 %v1143_v24, %v1138_v23 }
  0x29   : >> { %v270_v46 = vor.u32 %v269_v49, %v265_v58  ;;  %v575_v51 = vsel %vm290_vm0, %v568_v57, 0  ;;  %v423_v54 = vpack.c.b16 %v422_v50, %v422_v50  ;;  %v852_v58 = vor.u32 %v1168_v29, %v1163_v28 }
  0x2a   : >> { %v490_v3 = vsel %vm290_vm0, %v483_v60, 0  ;;  %v838_v62 = vor.u32 %v1133_v22, %v1128_v21  ;;  %v869_v49 = vor.u32 %v1208_v37, %v1203_v36  ;;  %v848_v57 = vor.u32 %v1158_v27, %v1153_v26 }
  0x2b   : >> { %301 = vmatpush.bf16.msra.mxu0 %v799_v53  ;;  %374 = vmatpush.bf16.msra.mxu2 %v817_v61  ;;  %v863_v53 = vor.u32 %v1193_v34, %v1188_v33  ;;  %v427_v61 = vshll.u32 %v423_v54, 16  ;;  %v425_v60 = vshrl.u32 %v423_v54, 16  ;;  %v875_v54 = vld [vmem:[%s1261_s27 + $0x8] sm:$0x6]  ;;  %vm643_vm2 = vcmask 320512  }
  0x2c   : >> { %335 = vmatpush.bf16.msra.mxu1 %v808_v56  ;;  %413 = vmatpush.bf16.msra.mxu3 %v828_v4  ;;  %v608_v4 = vpack.c.b16 %v605_v6, %v605_v6  ;;  %v873_v56 = vor.u32 %v1218_v39, %v1213_v38 }
  0x2e   : >> { %804 = vmatmul.msk.bf16.vlgmr.msra.gmra.mxu0 %vm286_vm1, %v270_v46  ;;  %822 = vmatmul.msk.bf16.vlgmr.msra.gmra.mxu2 %vm286_vm1, %v345_v2  ;;  %v859_v2 = vor.u32 %v1183_v32, %v1178_v31  ;;  %v615_v63 = vsel %vm290_vm0, %v608_v4, 0  ;;  %v883_v46 = vor.u32 %v1243_v44, %v1238_v43  ;;  %v879_v4 = vor.u32 %v1233_v42, %v1228_v41 }
  0x2f   : >> { %457 = vmatpush.bf16.msrb.mxu0 %v450_v1  ;;  %536 = vmatpush.bf16.msrb.mxu2 %v529_v48  ;;  %v548_v1 = vpack.c.b16 %v547_v5, %v547_v5  ;;  %v468_v5 = vunpack.c.l.b16 %v844_v55  ;;  %v429_v48 = vrot.slane %v427_v61, 1 }
  0x30   : >> { %813 = vmatmul.msk.bf16.vlgmr.msra.gmra.mxu1 %vm286_vm1, %v259_v47  ;;  %833 = vmatmul.msk.bf16.vlgmr.msra.gmra.mxu3 %vm286_vm1, %v824_v59 }
  0x31   : >> { %582 = vmatpush.bf16.msrb.mxu3 %v575_v51  ;;  %497 = vmatpush.bf16.msrb.mxu1 %v490_v3  ;;  %v552_v6 = vshll.u32 %v548_v1, 16  ;;  %v469_v50 = vpack.c.b16 %v468_v5, %v468_v5  ;;  %v550_v47 = vshrl.u32 %v548_v1, 16  ;;  %v430_v51 = vor.u32 %v429_v48, %v425_v60 }
  0x32   : >> { %v593_v1 = vunpack.c.l.b16 %v875_v54 }
  0x33   : >> { %458 = vmatpush.bf16.msrb.mxu0 %v842_v52  ;;  %537 = vmatpush.bf16.msrb.mxu2 %v863_v53  ;;  %v554_v59 = vrot.slane %v552_v6, 1  ;;  %v470_v52 = vrot.slane %v469_v50, 1  ;;  %v855_v53 = vld [vmem:[%s1261_s27 + $0x8] sm:$0x3] }
  0x34   : >> { %v594_v55 = vpack.c.b16 %v593_v1, %v593_v1 }
  0x35   : >> { %583 = vmatpush.bf16.msrb.mxu3 %v873_v56  ;;  %498 = vmatpush.bf16.msrb.mxu1 %v852_v58  ;;  %v555_v3 = vor.u32 %v554_v59, %v550_v47 }
  0x36   : >> { %v595_v56 = vrot.slane %v594_v55, 1 }
  0x37   : >> { %459 = vmatpush.bf16.msrb.mxu0 %v838_v62  ;;  %538 = vmatpush.bf16.msrb.mxu2 %v859_v2 }
  0x39   : >> { %584 = vmatpush.bf16.msrb.mxu3 %v869_v49  ;;  %499 = vmatpush.bf16.msrb.mxu1 %v848_v57 }
  0x3b   : >> { %622 = vmatpush.bf16.msra.mxu0 %v615_v63 }
  0x3e   : >> { %843 = vmatmul.msk.bf16.vlgmr.msrb.gmra.mxu0 %vm286_vm1, %v430_v51  ;;  %864 = vmatmul.msk.bf16.vlgmr.msrb.gmra.mxu2 %vm286_vm1, %v855_v53 }
  0x3f   : >> { %623 = vmatpush.bf16.msra.mxu0 %v883_v46 }
  0x40   : >> { %853 = vmatmul.msk.bf16.vlgmr.msrb.gmra.mxu1 %vm286_vm1, %v470_v52  ;;  %874 = vmatmul.msk.bf16.vlgmr.msrb.gmra.mxu3 %vm286_vm1, %v555_v3 }
  0x43   : >> { %624 = vmatpush.bf16.msra.mxu0 %v879_v4 }
  0x4e   : >> { %884 = vmatmul.msk.bf16.vlgmr.msra.gmra.mxu0 %vm286_vm1, %v595_v56  ;;  %v632_v56 = vperm.slane %v1013_v0, 0 }
  0xab   : >> { %v303_v58 = vpop.f32.mrf.mxu0 }
  0xad   : >> { %v337_v62 = vpop.f32.mrf.mxu1 }
  0xae   : >> { %v338_v63 = vadd.f32 %v337_v62, %v303_v58 }
  0xb1   : >> { %v376_v2 = vpop.f32.mrf.mxu2 }
  0xb2   : >> { %v380_v49 = vadd.f32 %v376_v2, %v338_v63 }
  0xb3   : >> { %v415_v61 = vpop.f32.mrf.mxu3  ;;  %v305_v5 = vpop.f32.mrf.mxu0 }
  0xb4   : >> { %v419_v46 = vadd.f32 %v415_v61, %v380_v49 }
  0xb5   : >> { %v339_v6 = vpop.f32.mrf.mxu1 }
  0xb9   : >> { %v378_v57 = vpop.f32.mrf.mxu2 }
  0xbb   : >> { %v417_v60 = vpop.f32.mrf.mxu3  ;;  %v461_v48 = vpop.f32.mrf.mxu0 }
  0xbc   : >> { %v465_v47 = vadd.f32 %v461_v48, %v419_v46 }
  0xbd   : >> { %v501_v50 = vpop.f32.mrf.mxu1 }
  0xbe   : >> { %v505_v53 = vadd.f32 %v501_v50, %v465_v47 }
  0xc1   : >> { %v540_v59 = vpop.f32.mrf.mxu2 }
  0xc2   : >> { %v544_v4 = vadd.f32 %v540_v59, %v505_v53 }
  0xc3   : >> { %v586_v51 = vpop.f32.mrf.mxu3  ;;  %v463_v52 = vpop.f32.mrf.mxu0 }
  0xc4   : >> { %v590_v54 = vadd.f32 %v586_v51, %v544_v4 }
  0xc5   : >> { %v503_v3 = vpop.f32.mrf.mxu1 }
  0xc9   : >> { %v542_v1 = vpop.f32.mrf.mxu2 }
  0xcb   : >> { %v588_v55 = vpop.f32.mrf.mxu3  ;;  %v626_v58 = vpop.f32.mrf.mxu0 }
  0xcc   : >> { %v630_v62 = vadd.f32 %v626_v58, %v590_v54 }
  0xce   : >> { %v634_v2 = vadd.f32 %v632_v56, %v630_v62 }
  0xd0   : >> { %v635_v5 = vadd.f32 3.0, %v634_v2 }
  0xd2   : >> { %v636_v6 = vmax.f32 %v635_v5, 0.0 }
  0xd3   : >> { %v628_v61 = vpop.f32.mrf.mxu0 }
  0xd4   : >> { %v637_v63 = vmin.f32 %v636_v6, 6.0 }
  0xd6   : >> { %v638_v49 = vmul.f32 %v637_v63, %v634_v2 }
  0xd8   : >> { %v639_v57 = vmul.f32 0.16666667, %v638_v49  ;;  %254 = sbr.rel (!%p252_p5) target bundleno = 30 (0x1e), region = 81 }
  0xda   : >> { %v640_v60 = vpack.c.bf16 %v639_v57, %v639_v57 }
  0xdc   : >> { %644 = vst.msk [vmem:[%s642_s30] sm:$0x3] %vm643_vm2, %v640_v60 }
  0xdd PF: > { %s13_s14 = sadd.s32 1, %s966_s14   ;;  %s1362_s12 = smov %s962_s13 }
  0xde   : > { %p10_p6 = scmp.ge.s32.totalorder %s13_s14, 4   ;;  %s1363_s13 = smov %s1365_s15 }
  0xe0   :  { %12 = sbr.rel (!%p10_p6) target bundleno = 2 (0x2), region = 92 }

// kernel: _lambda_.14
= control target key start
LH: loop header
LB: loop body
LE: loop exit
PB: predicated region body
PF: predicated region fallthrough
CT: control target
= control target key end

     0   :  { %vm63_vm0 = vcmask 1043456   ;;  %vm56_vm1 = vcmask 326656   ;;  %vm102_vm2 = vcmask 257024   ;;  %s211_s1 = inlined_call_operand.vmem [shape: bf16[40,32], index: 1, kind: input, shape index: {}]   ;;  %s212_s2 = inlined_call_operand.vmem [shape: f32[1,32], index: 2, kind: input, shape index: {}]   ;;  %s213_s0 = inlined_call_operand.vmem [shape: bf16[32,40], index: 0, kind: input, shape index: {}]   ;;  %s214_s3 = inlined_call_operand.vmem [shape: bf16[32,32], index: 3, kind: input, shape index: {}]   ;;  %s215_s4 = inlined_call_operand.vmem [shape: bf16[32,32], index: 4, kind: output, shape index: {}]  }
   0x1   :  { %v26_v0 = vld [vmem:[%s211_s1 + $0x10] sm:$0xf]  ;;  %v132_v4 = vld [vmem:[%s211_s1 + $0x8] sm:$0xff]  ;;  %v131_v5 = vld [vmem:[%s211_s1] sm:$0xff] }
   0x2   :  { %v50_v1 = vunpack.c.l.b16 %v26_v0  ;;  %v129_v6 = vld [vmem:[%s213_s0] sm:$0xff]  ;;  %v130_v7 = vld [vmem:[%s213_s0 + $0x8] sm:$0xff] }
   0x3   :  { %v134_v8 = vld [vmem:[%s214_s3] sm:$0xff]   ;;  %v141_v9 = vld [vmem:[%s214_s3 + $0x8] sm:$0xff]  }
   0x4   :  { %v53_v2 = vpack.c.b16 %v50_v1, %v50_v1  ;;  %v145_v10 = vld [vmem:[%s212_s2] ss:$0 sm:$0xff]  ;;  %v135_v11 = vunpack.c.l.bf16 %v134_v8  ;;  %v139_v12 = vunpack.c.l.bf16 %v141_v9  ;;  %v136_v21 = vunpack.c.h.bf16 %v134_v8 }
   0x5   :  { %v140_v22 = vunpack.c.h.bf16 %v141_v9 }
   0x6   :  { %v65_v3 = vsel %vm63_vm0, %v53_v2, 0 }
   0x7   :  { %72 = vmatpush.bf16.msra.mxu0 %v65_v3  ;;  %142 = vmatpush.bf16.msra.mxu1 %v65_v3 }
   0xb   :  { %73 = vmatpush.bf16.msra.mxu0 %v132_v4  ;;  %143 = vmatpush.bf16.msra.mxu1 %v132_v4 }
   0xf   :  { %74 = vmatpush.bf16.msra.mxu0 %v131_v5  ;;  %144 = vmatpush.bf16.msra.mxu1 %v131_v5 }
  0x12   :  { %127 = vmatmul.msk.bf16.vlgmr.msra.gmra.mxu0 %vm56_vm1, %v129_v6  ;;  %128 = vmatmul.msk.bf16.vlgmr.msra.gmra.mxu1 %vm56_vm1, %v130_v7 }
  0x8f   :  { %v76_v13 = vpop.f32.mrf.mxu0  ;;  %v81_v14 = vpop.f32.mrf.mxu1 }
  0x90   :  { %v77_v15 = vadd.f32 %v145_v10, %v76_v13  ;;  %v82_v16 = vadd.f32 %v145_v10, %v81_v14 }
  0x92   :  { %v94_v17 = vadd.f32 %v135_v11, %v77_v15  ;;  %v96_v18 = vadd.f32 %v139_v12, %v82_v16 }
  0x94   :  { %v98_v19 = vpack.c.bf16 %v94_v17, %v94_v17  ;;  %v100_v20 = vpack.c.bf16 %v96_v18, %v96_v18 }
  0x96   :  { %103 = vst.msk [vmem:[%s215_s4] sm:$0xf] %vm102_vm2, %v98_v19 }
  0x97   :  { %105 = vst.msk [vmem:[%s215_s4 + $0x8] sm:$0xf] %vm102_vm2, %v100_v20  ;;  %v78_v23 = vpop.f32.mrf.mxu0  ;;  %v83_v24 = vpop.f32.mrf.mxu1 }
  0x98   :  { %v79_v25 = vadd.f32 %v145_v10, %v78_v23  ;;  %v84_v26 = vadd.f32 %v145_v10, %v83_v24 }
  0x9a   :  { %v95_v27 = vadd.f32 %v136_v21, %v79_v25  ;;  %v97_v28 = vadd.f32 %v140_v22, %v84_v26 }
  0x9c   :  { %v99_v29 = vpack.c.bf16 %v95_v27, %v95_v27  ;;  %v101_v30 = vpack.c.bf16 %v97_v28, %v97_v28 }
  0x9e   :  { %104 = vst.msk [vmem:[%s215_s4 + $0x4] sm:$0xf] %vm102_vm2, %v99_v29 }
  0x9f   :  { %106 = vst.msk [vmem:[%s215_s4 + $0xc] sm:$0xf] %vm102_vm2, %v101_v30 }

// kernel: _lambda_.16
= control target key start
LH: loop header
LB: loop body
LE: loop exit
PB: predicated region body
PF: predicated region fallthrough
CT: control target
= control target key end

     0   :  { %vm115_vm0 = vcmask 1043456   ;;  %vm90_vm1 = vcmask 195584   ;;  %vm232_vm2 = vcmask 257024   ;;  %s524_s1 = inlined_call_operand.vmem [shape: bf16[24,32], index: 1, kind: input, shape index: {}]   ;;  %s525_s2 = inlined_call_operand.vmem [shape: f32[1,32], index: 2, kind: input, shape index: {}]   ;;  %s526_s0 = inlined_call_operand.vmem [shape: bf16[128,24], index: 0, kind: input, shape index: {}]   ;;  %s527_s3 = inlined_call_operand.vmem [shape: bf16[128,32], index: 3, kind: input, shape index: {}]   ;;  %s528_s4 = inlined_call_operand.vmem [shape: bf16[128,32], index: 4, kind: output, shape index: {}]  }
   0x1   :  { %v36_v0 = vld [vmem:[%s524_s1 + $0x8] sm:$0xf]  ;;  %v305_v4 = vld [vmem:[%s524_s1] sm:$0xff]  ;;  %v299_v6 = vld [vmem:[%s526_s0 + $0x10] sm:$0xff] }
   0x2   :  { %v86_v1 = vunpack.c.l.b16 %v36_v0  ;;  %v297_v5 = vld [vmem:[%s526_s0] sm:$0xff]  ;;  %v303_v8 = vld [vmem:[%s526_s0 + $0x30] sm:$0xff]  ;;  %v298_v9 = vld [vmem:[%s526_s0 + $0x8] sm:$0xff] }
   0x3   :  { %v301_v7 = vld [vmem:[%s526_s0 + $0x20] sm:$0xff]  ;;  %v300_v10 = vld [vmem:[%s526_s0 + $0x18] sm:$0xff]  ;;  %v302_v11 = vld [vmem:[%s526_s0 + $0x28] sm:$0xff] }
   0x4   :  { %v88_v2 = vpack.c.b16 %v86_v1, %v86_v1  ;;  %v304_v12 = vld [vmem:[%s526_s0 + $0x38] sm:$0xff]  ;;  %v307_v13 = vld [vmem:[%s527_s3] sm:$0xff]   ;;  %v339_v14 = vld [vmem:[%s527_s3 + $0x10] sm:$0xff]  }
   0x5   :  { %v424_v15 = vld [vmem:[%s525_s2] ss:$0 sm:$0xff]  ;;  %v308_v16 = vunpack.c.l.bf16 %v307_v13  ;;  %v316_v17 = vunpack.c.l.bf16 %v339_v14  ;;  %v343_v25 = vld [vmem:[%s527_s3 + $0x30] sm:$0xff]   ;;  %v309_v32 = vunpack.c.h.bf16 %v307_v13  ;;  %v317_v33 = vunpack.c.h.bf16 %v339_v14  ;;  %v338_v46 = vld [vmem:[%s527_s3 + $0x8] sm:$0xff]  }
   0x6   :  { %v117_v3 = vsel %vm115_vm0, %v88_v2, 0  ;;  %v341_v24 = vld [vmem:[%s527_s3 + $0x20] sm:$0xff]   ;;  %v332_v29 = vunpack.c.l.bf16 %v343_v25  ;;  %v340_v47 = vld [vmem:[%s527_s3 + $0x18] sm:$0xff]   ;;  %v333_v51 = vunpack.c.h.bf16 %v343_v25  ;;  %v312_v54 = vunpack.c.l.bf16 %v338_v46  ;;  %v342_v2 = vld [vmem:[%s527_s3 + $0x28] sm:$0xff]  }
   0x7   :  { %125 = vmatpush.bf16.msra.mxu0 %v117_v3  ;;  %345 = vmatpush.bf16.msra.mxu1 %v117_v3  ;;  %v324_v28 = vunpack.c.l.bf16 %v341_v24  ;;  %v325_v50 = vunpack.c.h.bf16 %v341_v24  ;;  %v320_v55 = vunpack.c.l.bf16 %v340_v47  ;;  %v321_v13 = vunpack.c.h.bf16 %v340_v47 }
   0x8   :  { %346 = vmatpush.bf16.msra.mxu2 %v117_v3  ;;  %347 = vmatpush.bf16.msra.mxu3 %v117_v3  ;;  %v344_v3 = vld [vmem:[%s527_s3 + $0x38] sm:$0xff]  }
   0xb   :  { %126 = vmatpush.bf16.msra.mxu0 %v305_v4  ;;  %348 = vmatpush.bf16.msra.mxu1 %v305_v4 }
   0xc   :  { %349 = vmatpush.bf16.msra.mxu2 %v305_v4  ;;  %350 = vmatpush.bf16.msra.mxu3 %v305_v4 }
   0xe   :  { %289 = vmatmul.msk.bf16.vlgmr.msra.gmra.mxu0 %vm90_vm1, %v297_v5  ;;  %291 = vmatmul.msk.bf16.vlgmr.msra.gmra.mxu1 %vm90_vm1, %v299_v6 }
   0xf   :  { %293 = vmatmul.msk.bf16.vlgmr.msra.gmra.mxu2 %vm90_vm1, %v301_v7  ;;  %295 = vmatmul.msk.bf16.vlgmr.msra.gmra.mxu3 %vm90_vm1, %v303_v8  ;;  %v328_v8 = vunpack.c.l.bf16 %v342_v2 }
  0x1e   :  { %290 = vmatmul.msk.bf16.gmra.mxu0 %vm90_vm1, %v298_v9  ;;  %292 = vmatmul.msk.bf16.gmra.mxu1 %vm90_vm1, %v300_v10  ;;  %v336_v9 = vunpack.c.l.bf16 %v344_v3 }
  0x1f   :  { %294 = vmatmul.msk.bf16.gmra.mxu2 %vm90_vm1, %v302_v11  ;;  %296 = vmatmul.msk.bf16.gmra.mxu3 %vm90_vm1, %v304_v12  ;;  %v313_v12 = vunpack.c.h.bf16 %v338_v46 }
  0x8b   :  { %v128_v18 = vpop.f32.mrf.mxu0  ;;  %v138_v19 = vpop.f32.mrf.mxu1 }
  0x8c   :  { %v129_v20 = vadd.f32 %v424_v15, %v128_v18  ;;  %v139_v21 = vadd.f32 %v424_v15, %v138_v19 }
  0x8e   :  { %v200_v22 = vadd.f32 %v308_v16, %v129_v20  ;;  %v204_v23 = vadd.f32 %v316_v17, %v139_v21 }
  0x90   :  { %v216_v26 = vpack.c.bf16 %v200_v22, %v200_v22  ;;  %v220_v27 = vpack.c.bf16 %v204_v23, %v204_v23 }
  0x92   :  { %233 = vst.msk [vmem:[%s528_s4] sm:$0xf] %vm232_vm2, %v216_v26  ;;  %v148_v30 = vpop.f32.mrf.mxu2  ;;  %v158_v31 = vpop.f32.mrf.mxu3 }
  0x93   :  { %237 = vst.msk [vmem:[%s528_s4 + $0x10] sm:$0xf] %vm232_vm2, %v220_v27  ;;  %v149_v34 = vadd.f32 %v424_v15, %v148_v30  ;;  %v159_v35 = vadd.f32 %v424_v15, %v158_v31  ;;  %v130_v36 = vpop.f32.mrf.mxu0  ;;  %v140_v37 = vpop.f32.mrf.mxu1  ;;  %v337_v30 = vunpack.c.h.bf16 %v344_v3 }
  0x94   :  { %v131_v38 = vadd.f32 %v424_v15, %v130_v36  ;;  %v141_v39 = vadd.f32 %v424_v15, %v140_v37 }
  0x95   :  { %v208_v40 = vadd.f32 %v324_v28, %v149_v34  ;;  %v212_v41 = vadd.f32 %v332_v29, %v159_v35  ;;  %v329_v29 = vunpack.c.h.bf16 %v342_v2 }
  0x96   :  { %v201_v42 = vadd.f32 %v309_v32, %v131_v38  ;;  %v205_v43 = vadd.f32 %v317_v33, %v141_v39 }
  0x97   :  { %v224_v44 = vpack.c.bf16 %v208_v40, %v208_v40  ;;  %v228_v45 = vpack.c.bf16 %v212_v41, %v212_v41 }
  0x98   :  { %v217_v48 = vpack.c.bf16 %v201_v42, %v201_v42  ;;  %v221_v49 = vpack.c.bf16 %v205_v43, %v205_v43 }
  0x99   :  { %241 = vst.msk [vmem:[%s528_s4 + $0x20] sm:$0xf] %vm232_vm2, %v224_v44 }
  0x9a   :  { %245 = vst.msk [vmem:[%s528_s4 + $0x30] sm:$0xf] %vm232_vm2, %v228_v45  ;;  %v150_v52 = vpop.f32.mrf.mxu2  ;;  %v160_v53 = vpop.f32.mrf.mxu3 }
  0x9b   :  { %234 = vst.msk [vmem:[%s528_s4 + $0x4] sm:$0xf] %vm232_vm2, %v217_v48  ;;  %v151_v56 = vadd.f32 %v424_v15, %v150_v52  ;;  %v161_v57 = vadd.f32 %v424_v15, %v160_v53  ;;  %v133_v58 = vpop.f32.mrf.mxu0  ;;  %v143_v59 = vpop.f32.mrf.mxu1 }
  0x9c   :  { %238 = vst.msk [vmem:[%s528_s4 + $0x14] sm:$0xf] %vm232_vm2, %v221_v49  ;;  %v134_v60 = vadd.f32 %v424_v15, %v133_v58  ;;  %v144_v61 = vadd.f32 %v424_v15, %v143_v59 }
  0x9d   :  { %v209_v62 = vadd.f32 %v325_v50, %v151_v56  ;;  %v213_v63 = vadd.f32 %v333_v51, %v161_v57 }
  0x9e   :  { %v202_v0 = vadd.f32 %v312_v54, %v134_v60  ;;  %v206_v1 = vadd.f32 %v320_v55, %v144_v61 }
  0x9f   :  { %v225_v4 = vpack.c.bf16 %v209_v62, %v209_v62  ;;  %v229_v5 = vpack.c.bf16 %v213_v63, %v213_v63 }
  0xa0   :  { %v218_v6 = vpack.c.bf16 %v202_v0, %v202_v0  ;;  %v222_v7 = vpack.c.bf16 %v206_v1, %v206_v1 }
  0xa1   :  { %242 = vst.msk [vmem:[%s528_s4 + $0x24] sm:$0xf] %vm232_vm2, %v225_v4 }
  0xa2   :  { %246 = vst.msk [vmem:[%s528_s4 + $0x34] sm:$0xf] %vm232_vm2, %v229_v5  ;;  %v153_v10 = vpop.f32.mrf.mxu2  ;;  %v163_v11 = vpop.f32.mrf.mxu3 }
  0xa3   :  { %235 = vst.msk [vmem:[%s528_s4 + $0x8] sm:$0xf] %vm232_vm2, %v218_v6  ;;  %v154_v14 = vadd.f32 %v424_v15, %v153_v10  ;;  %v164_v16 = vadd.f32 %v424_v15, %v163_v11  ;;  %v135_v17 = vpop.f32.mrf.mxu0  ;;  %v145_v18 = vpop.f32.mrf.mxu1 }
  0xa4   :  { %239 = vst.msk [vmem:[%s528_s4 + $0x18] sm:$0xf] %vm232_vm2, %v222_v7  ;;  %v136_v19 = vadd.f32 %v424_v15, %v135_v17  ;;  %v146_v20 = vadd.f32 %v424_v15, %v145_v18 }
  0xa5   :  { %v210_v21 = vadd.f32 %v328_v8, %v154_v14  ;;  %v214_v22 = vadd.f32 %v336_v9, %v164_v16 }
  0xa6   :  { %v203_v23 = vadd.f32 %v313_v12, %v136_v19  ;;  %v207_v24 = vadd.f32 %v321_v13, %v146_v20 }
  0xa7   :  { %v226_v25 = vpack.c.bf16 %v210_v21, %v210_v21  ;;  %v230_v26 = vpack.c.bf16 %v214_v22, %v214_v22 }
  0xa8   :  { %v219_v27 = vpack.c.bf16 %v203_v23, %v203_v23  ;;  %v223_v28 = vpack.c.bf16 %v207_v24, %v207_v24 }
  0xa9   :  { %243 = vst.msk [vmem:[%s528_s4 + $0x28] sm:$0xf] %vm232_vm2, %v226_v25 }
  0xaa   :  { %247 = vst.msk [vmem:[%s528_s4 + $0x38] sm:$0xf] %vm232_vm2, %v230_v26  ;;  %v155_v31 = vpop.f32.mrf.mxu2  ;;  %v165_v32 = vpop.f32.mrf.mxu3 }
  0xab   :  { %236 = vst.msk [vmem:[%s528_s4 + $0xc] sm:$0xf] %vm232_vm2, %v219_v27  ;;  %v156_v33 = vadd.f32 %v424_v15, %v155_v31  ;;  %v166_v34 = vadd.f32 %v424_v15, %v165_v32 }
  0xac   :  { %240 = vst.msk [vmem:[%s528_s4 + $0x1c] sm:$0xf] %vm232_vm2, %v223_v28 }
  0xad   :  { %v211_v35 = vadd.f32 %v329_v29, %v156_v33  ;;  %v215_v36 = vadd.f32 %v337_v30, %v166_v34 }
  0xaf   :  { %v227_v37 = vpack.c.bf16 %v211_v35, %v211_v35  ;;  %v231_v38 = vpack.c.bf16 %v215_v36, %v215_v36 }
  0xb1   :  { %244 = vst.msk [vmem:[%s528_s4 + $0x2c] sm:$0xf] %vm232_vm2, %v227_v37 }
  0xb2   :  { %248 = vst.msk [vmem:[%s528_s4 + $0x3c] sm:$0xf] %vm232_vm2, %v231_v38 }

// kernel: _lambda_.17
= control target key start
LH: loop header
LB: loop body
LE: loop exit
PB: predicated region body
PF: predicated region fallthrough
CT: control target
= control target key end

     0   :  { %8 = vsyncpa [#allocation3], 0  ;;  %s1390_s0 = inlined_call_operand.vmem [shape: bf16[2,10,10,32], index: 0, kind: input, shape index: {}]   ;;  %s1391_s1 = inlined_call_operand.vmem [shape: bf16[9,32,32], index: 1, kind: input, shape index: {}]   ;;  %s1392_s2 = inlined_call_operand.vmem [shape: f32[1,32], index: 2, kind: input, shape index: {}]   ;;  %s1393_s3 = inlined_call_operand.hbm [shape: f32[2,8,8,32], index: 3, kind: output, shape index: {}]  }
   0x1   :  { %10 = vsyncpa [#allocation3 + $0x1], 0  ;;  %s1021_s12 = smov 0   ;;  %s1023_s13 = smov 0  }
   0x2   :  { %s1025_s14 = smov 0   ;;  %s1027_s15 = smov 0  }
   0x3   :  { %s1029_s16 = smov 0   ;;  %s1031_s17 = smov 0  }
   0x4 LB: > { %s687_s18 = sadd.s32 4294967295, %s993_s17   ;;  %s688_s19 = sadd.s32 4294967294, %s993_s17   ;;  %s993_s17 = sphi %s1031_s17, %s16_s17   ;;  %s989_s16 = sphi %s1029_s16, %s1400_s16   ;;  %s985_s15 = sphi %s1027_s15, %s1399_s15   ;;  %s981_s14 = sphi %s1025_s14, %s1398_s14   ;;  %s977_s13 = sphi %s1023_s13, %s1397_s13   ;;  %s973_s12 = sphi %s1021_s12, %s1396_s12  }
   0x5   : > { %s28_s20 = sadd.s32 1, %s989_s16  ;;  %s105_s21 = sadd.s32 1, %s981_s14 }
   0x6   : > { %p30_p0 = scmp.ge.s32.totalorder %s28_s20, 2  ;;  %p115_p1 = scmp.ne.s32.totalorder %s981_s14, %s977_s13 }
   0x7   : > { %p116_p2 = scmp.eq.s32.totalorder %s687_s18, 1  ;;  %p121_p3 = scmp.ne.s32.totalorder %s977_s13, %s973_s12 }
   0x8   : > { %s1402_s20 = smov (%p30_p0, %s28_s20), 0  ;;  %p122_p5 = scmp.eq.s32.totalorder %s688_s19, 1 }
   0x9   : > { %p1061_p4 = por %p116_p2, %p115_p1  ;;  %s100_s23 = ssub.s32 %s989_s16, %s1402_s20 }
   0xa   : > { %p691_p6 = scmp.ge.s32.totalorder %s993_s17, 1  ;;  %p103_p7 = scmp.eq.s32.totalorder %s100_s23, 0 }
   0xb   : > { %p1068_p8 = por %p122_p5, %p121_p3  ;;  %p154_p9 = scmp.lt.s32.totalorder %s993_s17, 3 }
   0xc   : > { %s1074_s25 = scalar_select %p103_p7, %s981_s14, %s105_s21  }
   0xd   : > { %p155_p10 = pnand %p691_p6, %p154_p9 }
   0xe   : > { %s175_s26 = sand.u32 (!%p155_p10), 1, %s977_s13   ;;  %p178_p11 = scmp.lt.s32.totalorder (!%p155_p10), %s985_s15, 1 }
   0xf   : > { %158 = sbr.rel (%p155_p10) target bundleno = 216 (0xd8), region = 32  ;;  %s1090_s4 = sshll.u32 (!%p155_p10), %s175_s26, 6 }
  0x10   : > { %s177_s8 = scalar_lea.vmem (!%p155_p10), [#allocation2], %s1090_s4  ;;  %s1274_s10 = smov (!%p155_p10), 0  }
  0x14   : > { %v1081_v0 = vld [vmem:[%s1392_s2] sm:$0x1]  ;;  %v1095_v2 = vld [vmem:[%s1391_s1] sm:$0xf0]  ;;  %v1100_v3 = vld [vmem:[%s1391_s1 + $0x8] sm:$0xf] }
  0x15   : > { %v1086_v1 = vld [vmem:[%s1391_s1] sm:$0xf]  ;;  %v1105_v4 = vld [vmem:[%s1391_s1 + $0x8] sm:$0xf0]  ;;  %v1110_v5 = vld [vmem:[%s1391_s1 + $0x10] sm:$0xf] }
  0x16   : > { %s179_s19 = scalar_select %p178_p11, %s985_s15, 1  ;;  %v1116_v6 = vld [vmem:[%s1391_s1 + $0x10] sm:$0xf0]  ;;  %v1121_v7 = vld [vmem:[%s1391_s1 + $0x18] sm:$0xf] }
  0x17   : > { %v1126_v8 = vld [vmem:[%s1391_s1 + $0x18] sm:$0xf0]  ;;  %v1131_v9 = vld [vmem:[%s1391_s1 + $0x20] sm:$0xf]  ;;  %v1136_v10 = vld [vmem:[%s1391_s1 + $0x20] sm:$0xf0] }
  0x18   : > { %s845_s9 = smul.u32 80, %s179_s19  ;;  %v1141_v11 = vld [vmem:[%s1391_s1 + $0x28] sm:$0xf]  ;;  %v1146_v12 = vld [vmem:[%s1391_s1 + $0x28] sm:$0xf0] }
  0x19   : > { %v1151_v13 = vld [vmem:[%s1391_s1 + $0x30] sm:$0xf]  ;;  %v1156_v14 = vld [vmem:[%s1391_s1 + $0x30] sm:$0xf0]  ;;  %v1161_v15 = vld [vmem:[%s1391_s1 + $0x38] sm:$0xf] }
  0x1a   : > { %s1166_s7 = scalar_lea.vmem %s1390_s0, %s845_s9  ;;  %v1171_v16 = vld [vmem:[%s1391_s1 + $0x38] sm:$0xf0]  ;;  %v1176_v17 = vld [vmem:[%s1391_s1 + $0x40] sm:$0xf]  ;;  %v1181_v18 = vld [vmem:[%s1391_s1 + $0x40] sm:$0xf0] }
  0x1b   : > { %v1186_v19 = vld [vmem:[%s1391_s1 + $0x48] sm:$0xf]  ;;  %v1191_v20 = vld [vmem:[%s1391_s1 + $0x48] sm:$0xf0]  ;;  %v1196_v21 = vld [vmem:[%s1391_s1 + $0x50] sm:$0xf] }
  0x1c   : > { %v1201_v22 = vld [vmem:[%s1391_s1 + $0x50] sm:$0xf0]  ;;  %v1206_v23 = vld [vmem:[%s1391_s1 + $0x58] sm:$0xf]  ;;  %v1211_v24 = vld [vmem:[%s1391_s1 + $0x58] sm:$0xf0] }
  0x1d   : > { %v1216_v25 = vld [vmem:[%s1391_s1 + $0x60] sm:$0xf]  ;;  %v1221_v26 = vld [vmem:[%s1391_s1 + $0x60] sm:$0xf0]  ;;  %v1226_v27 = vld [vmem:[%s1391_s1 + $0x68] sm:$0xf] }
  0x1e   : > { %v1231_v28 = vld [vmem:[%s1391_s1 + $0x68] sm:$0xf0]  ;;  %v1236_v29 = vld [vmem:[%s1391_s1 + $0x70] sm:$0xf]  ;;  %v1241_v30 = vld [vmem:[%s1391_s1 + $0x70] sm:$0xf0] }
  0x1f   : > { %v1246_v31 = vld [vmem:[%s1391_s1 + $0x78] sm:$0xf]  ;;  %v1251_v32 = vld [vmem:[%s1391_s1 + $0x78] sm:$0xf0]  ;;  %v1256_v33 = vld [vmem:[%s1391_s1 + $0x80] sm:$0xf] }
  0x20   : > { %v1261_v34 = vld [vmem:[%s1391_s1 + $0x80] sm:$0xf0]  ;;  %v1266_v35 = vld [vmem:[%s1391_s1 + $0x88] sm:$0xf]  ;;  %v1271_v36 = vld [vmem:[%s1391_s1 + $0x88] sm:$0xf0] }
  0x21 LB: >> { %v753_v37 = vor.u32 %v1146_v12, %v1141_v11  ;;  %v764_v38 = vor.u32 %v1171_v16, %v1161_v15  ;;  %v735_v39 = vor.u32 %v1126_v8, %v1121_v7  ;;  %v744_v40 = vor.u32 %v1105_v4, %v1100_v3  ;;  %s843_s11 = sshll.u32 %s997_s10, 3  ;;  %s236_s10 = sadd.s32 1, %s997_s10   ;;  %s997_s10 = sphi %s1274_s10, %s236_s10  }
  0x22   : >> { %v749_v41 = vor.u32 %v1136_v10, %v1131_v9  ;;  %v760_v42 = vor.u32 %v1156_v14, %v1151_v13  ;;  %s1295_s18 = scalar_lea.vmem %s1166_s7, %s843_s11  ;;  %v731_v43 = vor.u32 %v1116_v6, %v1110_v5  ;;  %v740_v44 = vor.u32 %v1095_v2, %v1086_v1  ;;  %s573_s21 = scalar_lea.vmem %s177_s8, %s843_s11 [#allocation2] }
  0x23   : >> { %338 = vmatpush.bf16.msra.mxu2 %v753_v37  ;;  %372 = vmatpush.bf16.msra.mxu3 %v764_v38  ;;  %v242_v45 = vld [vmem:[%s1295_s18 + $0x4] sm:$0x1]  ;;  %v312_v46 = vld [vmem:[%s1295_s18] sm:$0xe]  ;;  %v775_v47 = vor.u32 %v1191_v20, %v1186_v19  ;;  %v796_v48 = vor.u32 %v1231_v28, %v1226_v27  ;;  %v785_v52 = vor.u32 %v1211_v24, %v1206_v23  ;;  %v756_v53 = vld [vmem:[%s1295_s18 + $0x8] sm:$0xf] }
  0x24   : >> { %277 = vmatpush.bf16.msra.mxu0 %v735_v39  ;;  %305 = vmatpush.bf16.msra.mxu1 %v744_v40  ;;  %v246_v49 = vunpack.c.l.b16 %v242_v45  ;;  %v314_v50 = vunpack.c.l.b16 %v312_v46  ;;  %v241_v51 = vld [vmem:[%s1295_s18] sm:$0xf]  ;;  %v807_v55 = vor.u32 %v1251_v32, %v1246_v31  ;;  %v798_v56 = vld [vmem:[%s1295_s18 + $0x10] sm:$0xf]  ;;  %v799_v57 = vld [vmem:[%s1295_s18 + $0x14] sm:$0x1]  ;;  %v771_v62 = vor.u32 %v1181_v18, %v1176_v17 }
  0x25   : >> { %v245_v54 = vunpack.c.l.b16 %v241_v51  ;;  %v495_v59 = vunpack.c.l.b16 %v798_v56  ;;  %v496_v60 = vunpack.c.l.b16 %v799_v57  ;;  %vm267_vm0 = vcmask 261120   ;;  %v766_v39 = vld [vmem:[%s1295_s18 + $0x8] sm:$0xf]  ;;  %v767_v40 = vld [vmem:[%s1295_s18 + $0xc] sm:$0x1]  ;;  %p233_p12 = scmp.ge.s32.totalorder %s236_s10, 8  }
  0x26   : >> { %v315_v58 = vpack.c.b16 %v246_v49, %v314_v50  ;;  %v792_v63 = vor.u32 %v1221_v26, %v1216_v25  ;;  %v781_v38 = vor.u32 %v1201_v22, %v1196_v21  ;;  %v777_v45 = vld [vmem:[%s1295_s18 + $0x8] sm:$0xe]  ;;  %v817_v50 = vor.u32 %v1271_v36, %v1266_v35  ;;  %s844_s23 = sshll.u32 (%p233_p12), %s985_s15, 6  ;;  %s590_s29 = sshll.u32 (%p233_p12), %s177_s8, 4  ;;  %s591_s29 = int_to_ptr.vmem [resolvable:$true] %s590_s29 }
  0x27   : >> { %339 = vmatpush.bf16.msra.mxu2 %v749_v41  ;;  %373 = vmatpush.bf16.msra.mxu3 %v760_v42  ;;  %v247_v61 = vpack.c.b16 %v246_v49, %v245_v54  ;;  %v497_v41 = vpack.c.b16 %v496_v60, %v495_v59  ;;  %v813_v56 = vor.u32 %v1261_v34, %v1256_v33  ;;  %s589_s9 = scalar_lea.hbm (%p233_p12), %s1393_s3, %s844_s23  ;;  %s576_s30 = scalar_lea.sflag (%p233_p12), [#allocation3], %s175_s26 }
  0x28   : >> { %278 = vmatpush.bf16.msra.mxu0 %v731_v43  ;;  %306 = vmatpush.bf16.msra.mxu1 %v740_v44  ;;  %v316_v37 = vrot.slane %v315_v58, 1  ;;  %v803_v44 = vor.u32 %v1241_v30, %v1236_v29  ;;  %s592_s19 = sshll.u32 (%p233_p12), %s589_s9, 4  ;;  %s931_s10 = scalar_lea.hbm (%p233_p12), %s1393_s3, 128  ;;  %s593_s19 = int_to_ptr.hbm [resolvable:$true] %s592_s19 }
  0x29   : >> { %v249_v42 = vshrl.u32 %v247_v61, 16  ;;  %v251_v43 = vshll.u32 %v247_v61, 16  ;;  %v501_v49 = vshll.u32 %v497_v41, 16  ;;  %v499_v54 = vshrl.u32 %v497_v41, 16  ;;  %s925_s5 = sshra.s32 (%p233_p12), %s593_s19, 4  ;;  %s926_s5 = int_to_ptr.hbm [resolvable:$true] %s925_s5 }
  0x2a   : >> { %765 = vmatmul.msk.bf16.vlgmr.msra.gmra.mxu3 %vm267_vm0, %v756_v53  ;;  %754 = vmatmul.msk.bf16.vlgmr.msra.gmra.mxu2 %vm267_vm0, %v316_v37  ;;  %s927_s6 = scalar_lea.hbm (%p233_p12), %s926_s5, 64  ;;  %p932_p2 = scmp.lt.s32.totalorder (%p233_p12), %s926_s5, %s1393_s3 }
  0x2b   : >> { %483 = vmatpush.bf16.msrb.mxu2 %v796_v48  ;;  %745 = vmatmul.msk.bf16.vlgmr.msra.gmra.mxu1 %vm267_vm0, %v241_v51  ;;  %v253_v46 = vrot.slane %v251_v43, 1  ;;  %v385_v48 = vunpack.c.l.b16 %v767_v40  ;;  %v425_v51 = vunpack.c.l.b16 %v777_v45  ;;  %p928_p13 = scmp.ne.s32.totalorder (%p233_p12), %s926_s5, %s927_s6  ;;  %p933_p3 = scmp.lt.s32.totalorder (%p233_p12), %s931_s10, %s927_s6 }
  0x2c   : >> { %415 = vmatpush.bf16.msrb.mxu0 %v775_v47  ;;  %449 = vmatpush.bf16.msrb.mxu1 %v785_v52  ;;  %v384_v47 = vunpack.c.l.b16 %v766_v39  ;;  %v809_v39 = vld [vmem:[%s1295_s18 + $0x10] sm:$0xe] }
  0x2d   : >> { %526 = vmatpush.bf16.msrb.mxu3 %v807_v55  ;;  %v254_v52 = vor.u32 %v253_v46, %v249_v42  ;;  %v503_v55 = vrot.slane %v501_v49, 1  ;;  %v426_v57 = vpack.c.b16 %v385_v48, %v425_v51  ;;  %v536_v40 = vunpack.c.l.b16 %v809_v39  ;;  %p929_p0 = pnand (%p233_p12), %p928_p13, %p1061_p4  ;;  %p934_p5 = por (%p233_p12), %p933_p3, %p932_p2 }
  0x2e   : >> { %v386_v53 = vpack.c.b16 %v385_v48, %v384_v47  ;;  %v569_v39 = vperm.slane %v1081_v0, 0 }
  0x2f   : >> { %484 = vmatpush.bf16.msrb.mxu2 %v792_v63  ;;  %736 = vmatmul.msk.bf16.vlgmr.msra.gmra.mxu0 %vm267_vm0, %v254_v52  ;;  %v504_v59 = vor.u32 %v503_v55, %v499_v54  ;;  %v427_v61 = vrot.slane %v426_v57, 1  ;;  %v537_v41 = vpack.c.b16 %v496_v60, %v536_v40  ;;  %p930_p1 = pneg (%p233_p12), %p929_p0 }
  0x30   : >> { %416 = vmatpush.bf16.msrb.mxu0 %v771_v62  ;;  %450 = vmatpush.bf16.msrb.mxu1 %v781_v38  ;;  %v390_v58 = vshll.u32 %v386_v53, 16  ;;  %v788_v62 = vld [vmem:[%s1295_s18 + $0x10] sm:$0xf]  ;;  %v388_v63 = vshrl.u32 %v386_v53, 16 }
  0x31   : >> { %527 = vmatpush.bf16.msrb.mxu3 %v803_v44  ;;  %v538_v42 = vrot.slane %v537_v41, 1  ;;  %p935_p6 = pnand (%p233_p12), %p934_p5, %p930_p1 }
  0x32   : >> { %v392_v37 = vrot.slane %v390_v58, 1 }
  0x34   : >> { %560 = vmatpush.bf16.msra.mxu0 %v817_v50  ;;  %v393_v38 = vor.u32 %v392_v37, %v388_v63 }
  0x38   : >> { %561 = vmatpush.bf16.msra.mxu0 %v813_v56 }
  0x3a   : >> { %808 = vmatmul.msk.bf16.vlgmr.msrb.gmra.mxu3 %vm267_vm0, %v504_v59  ;;  %797 = vmatmul.msk.bf16.vlgmr.msrb.gmra.mxu2 %vm267_vm0, %v788_v62 }
  0x3b   : >> { %786 = vmatmul.msk.bf16.vlgmr.msrb.gmra.mxu1 %vm267_vm0, %v427_v61 }
  0x3f   : >> { %776 = vmatmul.msk.bf16.vlgmr.msrb.gmra.mxu0 %vm267_vm0, %v393_v38 }
  0x4f   : >> { %818 = vmatmul.msk.bf16.vlgmr.msra.gmra.mxu0 %vm267_vm0, %v538_v42 }
  0xa8   : >> { %v308_v43 = vpop.f32.mrf.mxu1 }
  0xac   : >> { %v280_v45 = vpop.f32.mrf.mxu0 }
  0xad   : >> { %v375_v44 = vpop.f32.mrf.mxu3  ;;  %v341_v46 = vpop.f32.mrf.mxu2  ;;  %v309_v50 = vadd.f32 %v308_v43, %v280_v45 }
  0xaf   : >> { %v345_v53 = vadd.f32 %v341_v46, %v309_v50 }
  0xb0   : >> { %v310_v47 = vpop.f32.mrf.mxu1 }
  0xb1   : >> { %v379_v56 = vadd.f32 %v375_v44, %v345_v53 }
  0xb4   : >> { %v282_v49 = vpop.f32.mrf.mxu0 }
  0xb5   : >> { %v377_v48 = vpop.f32.mrf.mxu3  ;;  %v343_v52 = vpop.f32.mrf.mxu2 }
  0xb8   : >> { %v452_v51 = vpop.f32.mrf.mxu1 }
  0xbc   : >> { %v418_v55 = vpop.f32.mrf.mxu0 }
  0xbd   : >> { %v529_v54 = vpop.f32.mrf.mxu3  ;;  %v486_v60 = vpop.f32.mrf.mxu2  ;;  %v422_v58 = vadd.f32 %v418_v55, %v379_v56 }
  0xbf   : >> { %v456_v59 = vadd.f32 %v452_v51, %v422_v58 }
  0xc0   : >> { %v454_v57 = vpop.f32.mrf.mxu1 }
  0xc1   : >> { %v490_v37 = vadd.f32 %v486_v60, %v456_v59 }
  0xc3   : >> { %v533_v38 = vadd.f32 %v529_v54, %v490_v37 }
  0xc4   : >> { %v420_v62 = vpop.f32.mrf.mxu0 }
  0xc5   : >> { %v531_v61 = vpop.f32.mrf.mxu3  ;;  %v488_v63 = vpop.f32.mrf.mxu2 }
  0xcc   : >> { %v563_v40 = vpop.f32.mrf.mxu0 }
  0xcd   : >> { %v567_v41 = vadd.f32 %v563_v40, %v533_v38 }
  0xcf   : >> { %v571_v42 = vadd.f32 %v569_v39, %v567_v41 }
  0xd0   : > { %235 = sbr.rel (!%p233_p12) target bundleno = 33 (0x21), region = 86 }
  0xd1   : >> { %574 = vst.msk [vmem:[%s573_s21] sm:$0xff] %vm267_vm0, %v571_v42 }
  0xd4   : >> { %v565_v43 = vpop.f32.mrf.mxu0 }
  0xd5   : > { %938 = shalt.err (!%p935_p6)
}
  0xd6   : > { %s999_s26 = smov 128   ;;  %s1000_s4 = smov 8  }
  0xd7   : > { %846 = dma.vmem_to_hbm [thread:$0]  (%p1061_p4), %s591_s29, 1024, %s593_s19, %s576_s30, %s999_s26, %s999_s26, %s1000_s4  }
  0xd8 PF: > { %p852_p7 = scmp.ge.s32.totalorder %s993_s17, 2  ;;  %s607_s8 = sand.u32 1, %s973_s12  }
  0xd9   : > { %s608_s21 = scalar_lea.sflag [#allocation3], %s607_s8 }
  0xda   : > { %p849_p9 = pnand %p852_p7, %p1068_p8 }
  0xdc   : > { %p850_p10 = pneg %p849_p9 }
  0xde   : > { %968 = dma.done.wait (%p850_p10), %s608_s21, 1024  }
  0xdf   : > { %970 = vsyncadd (%p850_p10), %s608_s21, 4294966272  ;;  %s16_s17 = sadd.s32 1, %s993_s17   ;;  %s1396_s12 = smov %s977_s13 }
  0xe0   : > { %p13_p11 = scmp.ge.s32.totalorder %s16_s17, 4   ;;  %s1397_s13 = smov %s981_s14 }
  0xe1   : > { %s1398_s14 = smov %s1074_s25  ;;  %s1399_s15 = smov %s989_s16 }
  0xe2   : > { %s1400_s16 = smov %s1402_s20  ;;  %15 = sbr.rel (!%p13_p11) target bundleno = 4 (0x4), region = 97 }
  0xe7   :  { %614 = vsyncpa [#allocation3], 1 }
  0xe8   :  { %616 = vsyncpa [#allocation3 + $0x1], 1 }

// kernel: _lambda_.15
= control target key start
LH: loop header
LB: loop body
LE: loop exit
PB: predicated region body
PF: predicated region fallthrough
CT: control target
= control target key end

     0   :  { %8 = vsyncpa [#allocation3], 0  ;;  %s1373_s0 = inlined_call_operand.vmem [shape: bf16[2,6,6,32], index: 0, kind: input, shape index: {}]   ;;  %s1374_s1 = inlined_call_operand.vmem [shape: bf16[9,32,32], index: 1, kind: input, shape index: {}]   ;;  %s1375_s2 = inlined_call_operand.vmem [shape: f32[1,32], index: 2, kind: input, shape index: {}]   ;;  %s1376_s3 = inlined_call_operand.hbm [shape: f32[2,4,4,32], index: 3, kind: output, shape index: {}]  }
   0x1   :  { %10 = vsyncpa [#allocation3 + $0x1], 0  ;;  %s1007_s12 = smov 0   ;;  %s1009_s13 = smov 0  }
   0x2   :  { %s1011_s14 = smov 0   ;;  %s1013_s15 = smov 0  }
   0x3   :  { %s1015_s16 = smov 0   ;;  %s1017_s17 = smov 0  }
   0x4 LB: > { %s677_s18 = sadd.s32 4294967295, %s979_s17   ;;  %s678_s19 = sadd.s32 4294967294, %s979_s17   ;;  %s979_s17 = sphi %s1017_s17, %s16_s17   ;;  %s975_s16 = sphi %s1015_s16, %s1383_s16   ;;  %s971_s15 = sphi %s1013_s15, %s1382_s15   ;;  %s967_s14 = sphi %s1011_s14, %s1381_s14   ;;  %s963_s13 = sphi %s1009_s13, %s1380_s13   ;;  %s959_s12 = sphi %s1007_s12, %s1379_s12  }
   0x5   : > { %s28_s20 = sadd.s32 1, %s975_s16  ;;  %s105_s21 = sadd.s32 1, %s967_s14 }
   0x6   : > { %p30_p0 = scmp.ge.s32.totalorder %s28_s20, 2  ;;  %p115_p1 = scmp.ne.s32.totalorder %s967_s14, %s963_s13 }
   0x7   : > { %p116_p2 = scmp.eq.s32.totalorder %s677_s18, 1  ;;  %p121_p3 = scmp.ne.s32.totalorder %s963_s13, %s959_s12 }
   0x8   : > { %s1385_s20 = smov (%p30_p0, %s28_s20), 0  ;;  %p122_p5 = scmp.eq.s32.totalorder %s678_s19, 1 }
   0x9   : > { %p1047_p4 = por %p116_p2, %p115_p1  ;;  %s100_s23 = ssub.s32 %s975_s16, %s1385_s20 }
   0xa   : > { %p681_p6 = scmp.ge.s32.totalorder %s979_s17, 1  ;;  %p103_p7 = scmp.eq.s32.totalorder %s100_s23, 0 }
   0xb   : > { %p1054_p8 = por %p122_p5, %p121_p3  ;;  %p154_p9 = scmp.lt.s32.totalorder %s979_s17, 3 }
   0xc   : > { %s1060_s25 = scalar_select %p103_p7, %s967_s14, %s105_s21  }
   0xd   : > { %p155_p10 = pnand %p681_p6, %p154_p9 }
   0xe   : > { %s175_s26 = sand.u32 (!%p155_p10), 1, %s963_s13   ;;  %p178_p11 = scmp.lt.s32.totalorder (!%p155_p10), %s971_s15, 1 }
   0xf   : > { %158 = sbr.rel (%p155_p10) target bundleno = 216 (0xd8), region = 32  ;;  %s1076_s4 = sshll.u32 (!%p155_p10), %s175_s26, 4 }
  0x10   : > { %s177_s8 = scalar_lea.vmem (!%p155_p10), [#allocation2], %s1076_s4  ;;  %s1260_s10 = smov (!%p155_p10), 0  }
  0x14   : > { %v1067_v0 = vld [vmem:[%s1375_s2] sm:$0x1]  ;;  %v1081_v2 = vld [vmem:[%s1374_s1] sm:$0xf0]  ;;  %v1086_v3 = vld [vmem:[%s1374_s1 + $0x8] sm:$0xf] }
  0x15   : > { %v1072_v1 = vld [vmem:[%s1374_s1] sm:$0xf]  ;;  %v1091_v4 = vld [vmem:[%s1374_s1 + $0x8] sm:$0xf0]  ;;  %v1096_v5 = vld [vmem:[%s1374_s1 + $0x10] sm:$0xf] }
  0x16   : > { %s179_s19 = scalar_select %p178_p11, %s971_s15, 1  ;;  %v1102_v6 = vld [vmem:[%s1374_s1 + $0x10] sm:$0xf0]  ;;  %v1107_v7 = vld [vmem:[%s1374_s1 + $0x18] sm:$0xf] }
  0x17   : > { %v1112_v8 = vld [vmem:[%s1374_s1 + $0x18] sm:$0xf0]  ;;  %v1117_v9 = vld [vmem:[%s1374_s1 + $0x20] sm:$0xf]  ;;  %v1122_v10 = vld [vmem:[%s1374_s1 + $0x20] sm:$0xf0] }
  0x18   : > { %s831_s9 = smul.u32 24, %s179_s19  ;;  %v1127_v11 = vld [vmem:[%s1374_s1 + $0x28] sm:$0xf]  ;;  %v1132_v12 = vld [vmem:[%s1374_s1 + $0x28] sm:$0xf0] }
  0x19   : > { %v1137_v13 = vld [vmem:[%s1374_s1 + $0x30] sm:$0xf]  ;;  %v1142_v14 = vld [vmem:[%s1374_s1 + $0x30] sm:$0xf0]  ;;  %v1147_v15 = vld [vmem:[%s1374_s1 + $0x38] sm:$0xf] }
  0x1a   : > { %s1152_s7 = scalar_lea.vmem %s1373_s0, %s831_s9  ;;  %v1157_v16 = vld [vmem:[%s1374_s1 + $0x38] sm:$0xf0]  ;;  %v1162_v17 = vld [vmem:[%s1374_s1 + $0x40] sm:$0xf]  ;;  %v1167_v18 = vld [vmem:[%s1374_s1 + $0x40] sm:$0xf0] }
  0x1b   : > { %v1172_v19 = vld [vmem:[%s1374_s1 + $0x48] sm:$0xf]  ;;  %v1177_v20 = vld [vmem:[%s1374_s1 + $0x48] sm:$0xf0]  ;;  %v1182_v21 = vld [vmem:[%s1374_s1 + $0x50] sm:$0xf] }
  0x1c   : > { %v1187_v22 = vld [vmem:[%s1374_s1 + $0x50] sm:$0xf0]  ;;  %v1192_v23 = vld [vmem:[%s1374_s1 + $0x58] sm:$0xf]  ;;  %v1197_v24 = vld [vmem:[%s1374_s1 + $0x58] sm:$0xf0] }
  0x1d   : > { %v1202_v25 = vld [vmem:[%s1374_s1 + $0x60] sm:$0xf]  ;;  %v1207_v26 = vld [vmem:[%s1374_s1 + $0x60] sm:$0xf0]  ;;  %v1212_v27 = vld [vmem:[%s1374_s1 + $0x68] sm:$0xf] }
  0x1e   : > { %v1217_v28 = vld [vmem:[%s1374_s1 + $0x68] sm:$0xf0]  ;;  %v1222_v29 = vld [vmem:[%s1374_s1 + $0x70] sm:$0xf]  ;;  %v1227_v30 = vld [vmem:[%s1374_s1 + $0x70] sm:$0xf0] }
  0x1f   : > { %v1232_v31 = vld [vmem:[%s1374_s1 + $0x78] sm:$0xf]  ;;  %v1237_v32 = vld [vmem:[%s1374_s1 + $0x78] sm:$0xf0]  ;;  %v1242_v33 = vld [vmem:[%s1374_s1 + $0x80] sm:$0xf] }
  0x20   : > { %v1247_v34 = vld [vmem:[%s1374_s1 + $0x80] sm:$0xf0]  ;;  %v1252_v35 = vld [vmem:[%s1374_s1 + $0x88] sm:$0xf]  ;;  %v1257_v36 = vld [vmem:[%s1374_s1 + $0x88] sm:$0xf0] }
  0x21 LB: >> { %v742_v37 = vor.u32 %v1132_v12, %v1127_v11  ;;  %v753_v38 = vor.u32 %v1157_v16, %v1147_v15  ;;  %v724_v39 = vor.u32 %v1112_v8, %v1107_v7  ;;  %v733_v40 = vor.u32 %v1091_v4, %v1086_v3  ;;  %s716_s11 = sshll.u32 %s983_s10, 2  ;;  %s236_s10 = sadd.s32 1, %s983_s10   ;;  %s983_s10 = sphi %s1260_s10, %s236_s10  }
  0x22   : >> { %v738_v41 = vor.u32 %v1122_v10, %v1117_v9  ;;  %v749_v42 = vor.u32 %v1142_v14, %v1137_v13  ;;  %s1281_s18 = scalar_lea.vmem %s1152_s7, %s716_s11  ;;  %v720_v43 = vor.u32 %v1102_v6, %v1096_v5  ;;  %v729_v44 = vor.u32 %v1081_v2, %v1072_v1  ;;  %s562_s21 = scalar_lea.vmem %s177_s8, %s716_s11 [#allocation2] }
  0x23   : >> { %335 = vmatpush.bf16.msra.mxu2 %v742_v37  ;;  %368 = vmatpush.bf16.msra.mxu3 %v753_v38  ;;  %v309_v45 = vld [vmem:[%s1281_s18] sm:$0x6]  ;;  %v763_v47 = vor.u32 %v1177_v20, %v1172_v19  ;;  %v784_v48 = vor.u32 %v1217_v28, %v1212_v27  ;;  %v773_v51 = vor.u32 %v1197_v24, %v1192_v23  ;;  %v745_v52 = vld [vmem:[%s1281_s18 + $0x4] sm:$0x3]  ;;  %v786_v54 = vld [vmem:[%s1281_s18 + $0x8] sm:$0x7] }
  0x24   : >> { %274 = vmatpush.bf16.msra.mxu0 %v724_v39  ;;  %302 = vmatpush.bf16.msra.mxu1 %v733_v40  ;;  %v241_v46 = vld [vmem:[%s1281_s18] sm:$0x7]  ;;  %v311_v49 = vunpack.c.l.b16 %v309_v45  ;;  %v794_v53 = vor.u32 %v1237_v32, %v1232_v31  ;;  %v485_v58 = vunpack.c.l.b16 %v786_v54  ;;  %vm264_vm0 = vcmask 261120   ;;  %v755_v62 = vld [vmem:[%s1281_s18 + $0x4] sm:$0x7]  ;;  %p233_p12 = scmp.ge.s32.totalorder %s236_s10, 4  }
  0x25   : >> { %v243_v50 = vunpack.c.l.b16 %v241_v46  ;;  %v240_v57 = vld [vmem:[%s1281_s18] sm:$0x3]  ;;  %v759_v59 = vor.u32 %v1167_v18, %v1162_v17  ;;  %v780_v60 = vor.u32 %v1207_v26, %v1202_v25  ;;  %v769_v61 = vor.u32 %v1187_v22, %v1182_v21  ;;  %s830_s23 = sshll.u32 (%p233_p12), %s971_s15, 4  ;;  %s580_s29 = sshll.u32 (%p233_p12), %s177_s8, 4  ;;  %s581_s29 = int_to_ptr.vmem [resolvable:$true] %s580_s29 }
  0x26   : >> { %v312_v55 = vpack.c.b16 %v311_v49, %v311_v49  ;;  %v486_v39 = vpack.c.b16 %v485_v58, %v485_v58  ;;  %v790_v40 = vor.u32 %v1227_v30, %v1222_v29  ;;  %v800_v49 = vor.u32 %v1247_v34, %v1242_v33  ;;  %v776_v58 = vld [vmem:[%s1281_s18 + $0x8] sm:$0x3]  ;;  %s579_s9 = scalar_lea.hbm (%p233_p12), %s1376_s3, %s830_s23  ;;  %s566_s30 = scalar_lea.sflag (%p233_p12), [#allocation3], %s175_s26 }
  0x27   : >> { %336 = vmatpush.bf16.msra.mxu2 %v738_v41  ;;  %369 = vmatpush.bf16.msra.mxu3 %v749_v42  ;;  %v244_v56 = vpack.c.b16 %v243_v50, %v243_v50  ;;  %v378_v42 = vunpack.c.l.b16 %v755_v62  ;;  %vm563_vm1 = vcmask 257024   ;;  %s582_s19 = sshll.u32 (%p233_p12), %s579_s9, 4  ;;  %s917_s10 = scalar_lea.hbm (%p233_p12), %s1376_s3, 32  ;;  %s583_s19 = int_to_ptr.hbm [resolvable:$true] %s582_s19 }
  0x28   : >> { %275 = vmatpush.bf16.msra.mxu0 %v720_v43  ;;  %303 = vmatpush.bf16.msra.mxu1 %v729_v44  ;;  %v313_v63 = vrot.slane %v312_v55, 1  ;;  %v765_v43 = vld [vmem:[%s1281_s18 + $0x4] sm:$0x6]  ;;  %v804_v44 = vor.u32 %v1257_v36, %v1252_v35  ;;  %v490_v46 = vshll.u32 %v486_v39, 16  ;;  %v488_v50 = vshrl.u32 %v486_v39, 16  ;;  %s911_s5 = sshra.s32 (%p233_p12), %s583_s19, 4  ;;  %s912_s5 = int_to_ptr.hbm [resolvable:$true] %s911_s5 }
  0x29   : >> { %v246_v37 = vshrl.u32 %v244_v56, 16  ;;  %v248_v38 = vshll.u32 %v244_v56, 16  ;;  %s913_s6 = scalar_lea.hbm (%p233_p12), %s912_s5, 16  ;;  %p918_p2 = scmp.lt.s32.totalorder (%p233_p12), %s912_s5, %s1376_s3 }
  0x2a   : >> { %754 = vmatmul.msk.bf16.vlgmr.msra.gmra.mxu3 %vm264_vm0, %v745_v52  ;;  %743 = vmatmul.msk.bf16.vlgmr.msra.gmra.mxu2 %vm264_vm0, %v313_v63  ;;  %p914_p13 = scmp.ne.s32.totalorder (%p233_p12), %s912_s5, %s913_s6  ;;  %p919_p3 = scmp.lt.s32.totalorder (%p233_p12), %s917_s10, %s913_s6 }
  0x2b   : >> { %475 = vmatpush.bf16.msrb.mxu2 %v784_v48  ;;  %734 = vmatmul.msk.bf16.vlgmr.msra.gmra.mxu1 %vm264_vm0, %v240_v57  ;;  %v250_v41 = vrot.slane %v248_v38, 1  ;;  %v379_v48 = vpack.c.b16 %v378_v42, %v378_v42 }
  0x2c   : >> { %408 = vmatpush.bf16.msrb.mxu0 %v763_v47  ;;  %442 = vmatpush.bf16.msrb.mxu1 %v773_v51  ;;  %v418_v47 = vunpack.c.l.b16 %v765_v43  ;;  %v492_v51 = vrot.slane %v490_v46, 1  ;;  %p915_p0 = pnand (%p233_p12), %p914_p13, %p1047_p4  ;;  %p920_p5 = por (%p233_p12), %p919_p3, %p918_p2 }
  0x2d   : >> { %515 = vmatpush.bf16.msrb.mxu3 %v794_v53  ;;  %v251_v45 = vor.u32 %v250_v41, %v246_v37  ;;  %v383_v53 = vshll.u32 %v379_v48, 16  ;;  %v381_v56 = vshrl.u32 %v379_v48, 16 }
  0x2e   : >> { %v419_v52 = vpack.c.b16 %v418_v47, %v418_v47  ;;  %v493_v54 = vor.u32 %v492_v51, %v488_v50  ;;  %p916_p1 = pneg (%p233_p12), %p915_p0 }
  0x2f   : >> { %476 = vmatpush.bf16.msrb.mxu2 %v780_v60  ;;  %725 = vmatmul.msk.bf16.vlgmr.msra.gmra.mxu0 %vm264_vm0, %v251_v45  ;;  %v385_v57 = vrot.slane %v383_v53, 1  ;;  %v796_v60 = vld [vmem:[%s1281_s18 + $0x8] sm:$0x6] }
  0x30   : >> { %409 = vmatpush.bf16.msrb.mxu0 %v759_v59  ;;  %443 = vmatpush.bf16.msrb.mxu1 %v769_v61  ;;  %v420_v55 = vrot.slane %v419_v52, 1  ;;  %v525_v61 = vunpack.c.l.b16 %v796_v60  ;;  %v558_v60 = vperm.slane %v1067_v0, 0  ;;  %p921_p6 = pnand (%p233_p12), %p920_p5, %p916_p1 }
  0x31   : >> { %516 = vmatpush.bf16.msrb.mxu3 %v790_v40  ;;  %v386_v59 = vor.u32 %v385_v57, %v381_v56 }
  0x32   : >> { %v526_v62 = vpack.c.b16 %v525_v61, %v525_v61 }
  0x34   : >> { %549 = vmatpush.bf16.msra.mxu0 %v804_v44  ;;  %v527_v63 = vrot.slane %v526_v62, 1 }
  0x38   : >> { %550 = vmatpush.bf16.msra.mxu0 %v800_v49 }
  0x3a   : >> { %795 = vmatmul.msk.bf16.vlgmr.msrb.gmra.mxu3 %vm264_vm0, %v493_v54  ;;  %785 = vmatmul.msk.bf16.vlgmr.msrb.gmra.mxu2 %vm264_vm0, %v776_v58 }
  0x3b   : >> { %774 = vmatmul.msk.bf16.vlgmr.msrb.gmra.mxu1 %vm264_vm0, %v420_v55 }
  0x3f   : >> { %764 = vmatmul.msk.bf16.vlgmr.msrb.gmra.mxu0 %vm264_vm0, %v386_v59 }
  0x4f   : >> { %805 = vmatmul.msk.bf16.vlgmr.msra.gmra.mxu0 %vm264_vm0, %v527_v63 }
  0xa8   : >> { %v305_v37 = vpop.f32.mrf.mxu1 }
  0xac   : >> { %v277_v38 = vpop.f32.mrf.mxu0 }
  0xad   : >> { %v371_v39 = vpop.f32.mrf.mxu3  ;;  %v338_v40 = vpop.f32.mrf.mxu2  ;;  %v306_v44 = vadd.f32 %v305_v37, %v277_v38 }
  0xaf   : >> { %v342_v47 = vadd.f32 %v338_v40, %v306_v44 }
  0xb0   : >> { %v307_v41 = vpop.f32.mrf.mxu1 }
  0xb1   : >> { %v375_v50 = vadd.f32 %v371_v39, %v342_v47 }
  0xb4   : >> { %v279_v42 = vpop.f32.mrf.mxu0 }
  0xb5   : >> { %v373_v43 = vpop.f32.mrf.mxu3  ;;  %v340_v45 = vpop.f32.mrf.mxu2 }
  0xb8   : >> { %v445_v46 = vpop.f32.mrf.mxu1 }
  0xbc   : >> { %v411_v48 = vpop.f32.mrf.mxu0 }
  0xbd   : >> { %v518_v49 = vpop.f32.mrf.mxu3  ;;  %v478_v51 = vpop.f32.mrf.mxu2  ;;  %v415_v52 = vadd.f32 %v411_v48, %v375_v50 }
  0xbf   : >> { %v449_v54 = vadd.f32 %v445_v46, %v415_v52 }
  0xc0   : >> { %v447_v53 = vpop.f32.mrf.mxu1 }
  0xc1   : >> { %v482_v58 = vadd.f32 %v478_v51, %v449_v54 }
  0xc3   : >> { %v522_v59 = vadd.f32 %v518_v49, %v482_v58 }
  0xc4   : >> { %v413_v55 = vpop.f32.mrf.mxu0 }
  0xc5   : >> { %v520_v56 = vpop.f32.mrf.mxu3  ;;  %v480_v57 = vpop.f32.mrf.mxu2 }
  0xcc   : >> { %v552_v61 = vpop.f32.mrf.mxu0 }
  0xcd   : >> { %v556_v62 = vadd.f32 %v552_v61, %v522_v59 }
  0xcf   : >> { %v560_v63 = vadd.f32 %v558_v60, %v556_v62 }
  0xd0   : > { %235 = sbr.rel (!%p233_p12) target bundleno = 33 (0x21), region = 86 }
  0xd1   : >> { %564 = vst.msk [vmem:[%s562_s21] sm:$0xf] %vm563_vm1, %v560_v63 }
  0xd4   : >> { %v554_v37 = vpop.f32.mrf.mxu0 }
  0xd5   : > { %924 = shalt.err (!%p921_p6)
}
  0xd6   : > { %s985_s26 = smov 64   ;;  %s986_s4 = smov 4  }
  0xd7   : > { %832 = dma.vmem_to_hbm [thread:$0]  (%p1047_p4), %s581_s29, 256, %s583_s19, %s566_s30, %s985_s26, %s985_s26, %s986_s4  }
  0xd8 PF: > { %p838_p7 = scmp.ge.s32.totalorder %s979_s17, 2  ;;  %s597_s8 = sand.u32 1, %s959_s12  }
  0xd9   : > { %s598_s21 = scalar_lea.sflag [#allocation3], %s597_s8 }
  0xda   : > { %p835_p9 = pnand %p838_p7, %p1054_p8 }
  0xdc   : > { %p836_p10 = pneg %p835_p9 }
  0xde   : > { %954 = dma.done.wait (%p836_p10), %s598_s21, 256  }
  0xdf   : > { %956 = vsyncadd (%p836_p10), %s598_s21, 4294967040  ;;  %s16_s17 = sadd.s32 1, %s979_s17   ;;  %s1379_s12 = smov %s963_s13 }
  0xe0   : > { %p13_p11 = scmp.ge.s32.totalorder %s16_s17, 4   ;;  %s1380_s13 = smov %s967_s14 }
  0xe1   : > { %s1381_s14 = smov %s1060_s25  ;;  %s1382_s15 = smov %s975_s16 }
  0xe2   : > { %s1383_s16 = smov %s1385_s20  ;;  %15 = sbr.rel (!%p13_p11) target bundleno = 4 (0x4), region = 97 }
  0xe7   :  { %604 = vsyncpa [#allocation3], 1 }
  0xe8   :  { %606 = vsyncpa [#allocation3 + $0x1], 1 }

</bundles_post_ra>
